<compile_context>
chip_gen: v5e
topology: v5e:2x2
jax: 0.10.0
libtpu: 0.0.40
codegen_flags: <defaults>
</compile_context>

<pallas_src>
import functools

import jax
import jax.numpy as jnp
from jax.experimental import pallas as pl
from jax.experimental.pallas import tpu as pltpu


def _round_up(x, m):
    return (x + m - 1) // m * m


_INV_SQRT2 = 0.7071067811865476


def _gelu(x):
    # Exact (erf-based) GELU matching torch F.gelu; erf via A&S 7.1.26
    # (|abs err| <= 1.5e-7).  The 1/(1+p*z) term goes to the EUP reciprocal.
    a1, a2, a3, a4, a5 = (0.254829592, -0.284496736, 1.421413741,
                          -1.453152027, 1.061405429)
    p = 0.3275911
    z = jnp.abs(x) * _INV_SQRT2
    t = pl.reciprocal(1.0 + p * z, approx=True)
    poly = t * (a1 + t * (a2 + t * (a3 + t * (a4 + t * a5))))
    erf = 1.0 - poly * jnp.exp(-z * z)            # exp -> EUP slot
    erf = jnp.where(x < 0.0, -erf, erf)
    return 0.5 * x * (1.0 + erf)


# ----------------------------------------------------------------------------
# Pallas kernel 1: channel-major pointwise linear
#   y = [gelu](Wt @ x + b [+ add]),  x: (Cin, N), Wt: (Cout, Cin)
# Output blocks are (Cout, tile) with N on lanes -> lane-dense stores.
# ----------------------------------------------------------------------------
def _pointwise_kernel(x_ref, w_ref, b_ref, o_ref, *, use_gelu):
    y = jnp.dot(w_ref[...], x_ref[...], preferred_element_type=jnp.float32)
    y = y + b_ref[...]
    o_ref[...] = _gelu(y) if use_gelu else y


def _pointwise_add_kernel(x_ref, w_ref, b_ref, add_ref, o_ref, *, use_gelu):
    y = jnp.dot(w_ref[...], x_ref[...], preferred_element_type=jnp.float32)
    y = y + b_ref[...] + add_ref[...]
    o_ref[...] = _gelu(y) if use_gelu else y


def pointwise_linear(x_cm, wt, b, add=None, use_gelu=False, target_tile=512):
    """x_cm: (Cin, N), wt: (Cout, Cin), b: (Cout,), add: (Cout, N)|None."""
    Cin, N = x_cm.shape
    Cout = wt.shape[0]
    if N <= target_tile:
        n_blocks, tile = 1, N
    else:
        n_blocks = pl.cdiv(N, target_tile)
        tile = _round_up(pl.cdiv(N, n_blocks), 128)
    Np = n_blocks * tile
    if Np != N:
        x_cm = jnp.pad(x_cm, ((0, 0), (0, Np - N)))
        if add is not None:
            add = jnp.pad(add, ((0, 0), (0, Np - N)))
    b2 = b.reshape(Cout, 1)

    x_spec = pl.BlockSpec((Cin, tile), lambda i: (0, i))
    w_spec = pl.BlockSpec((Cout, Cin), lambda i: (0, 0))
    b_spec = pl.BlockSpec((Cout, 1), lambda i: (0, 0))
    o_spec = pl.BlockSpec((Cout, tile), lambda i: (0, i))
    cparams = pltpu.CompilerParams(dimension_semantics=("parallel",))
    cost = pl.CostEstimate(
        flops=2 * Np * Cin * Cout,
        transcendentals=Np * Cout if use_gelu else 0,
        bytes_accessed=4 * (Np * Cin + Cin * Cout + Cout + Np * Cout
                            + (Np * Cout if add is not None else 0)),
    )

    if add is None:
        out = pl.pallas_call(
            functools.partial(_pointwise_kernel, use_gelu=use_gelu),
            out_shape=jax.ShapeDtypeStruct((Cout, Np), jnp.float32),
            grid=(n_blocks,),
            in_specs=[x_spec, w_spec, b_spec],
            out_specs=o_spec,
            compiler_params=cparams,
            cost_estimate=cost,
        )(x_cm, wt, b2)
    else:
        a_spec = pl.BlockSpec((Cout, tile), lambda i: (0, i))
        out = pl.pallas_call(
            functools.partial(_pointwise_add_kernel, use_gelu=use_gelu),
            out_shape=jax.ShapeDtypeStruct((Cout, Np), jnp.float32),
            grid=(n_blocks,),
            in_specs=[x_spec, w_spec, b_spec, a_spec],
            out_specs=o_spec,
            compiler_params=cparams,
            cost_estimate=cost,
        )(x_cm, wt, b2, add)
    return out[:, :N]


# ----------------------------------------------------------------------------
# Pallas kernel 2: grouped spectral mode mixing.
# One grid step per retained kx row; the m2 ky-modes of that row are mixed with
# a single pair of block-diagonal real matmuls (weights pre-packed at init).
# The [Re;Im] row stack and the complex decode (rr-ii, ri+ir) are in-kernel.
# ----------------------------------------------------------------------------
def _mode_mix_kernel(a_re_ref, a_im_ref, w_ref, o_re_ref, o_im_ref, *, batch):
    a = jnp.concatenate([a_re_ref[0], a_im_ref[0]], axis=0)      # (2B, m2*Cin)
    w_re = w_ref[0, 0]                                           # (m2*Cin, m2*Cout)
    w_im = w_ref[0, 1]
    pr = jnp.dot(a, w_re, preferred_element_type=jnp.float32)    # [rr ; ir]
    pi = jnp.dot(a, w_im, preferred_element_type=jnp.float32)    # [ri ; ii]
    o_re_ref[0] = pr[:batch] - pi[batch:]
    o_im_ref[0] = pi[:batch] + pr[batch:]


def mode_mix(a_re, a_im, w_packed):
    """a_*: (2*m1, B, m2*Cin); w_packed: (2*m1, 2, m2*Cin, m2*Cout)."""
    K1, B, KC = a_re.shape
    KO = w_packed.shape[-1]
    cost = pl.CostEstimate(
        flops=2 * K1 * 2 * (2 * B) * KC * KO,
        transcendentals=0,
        bytes_accessed=4 * (2 * a_re.size + w_packed.size + 2 * K1 * B * KO),
    )
    a_spec = pl.BlockSpec((1, B, KC), lambda k: (k, 0, 0))
    w_spec = pl.BlockSpec((1, 2, KC, KO), lambda k: (k, 0, 0, 0))
    o_spec = pl.BlockSpec((1, B, KO), lambda k: (k, 0, 0))
    return pl.pallas_call(
        functools.partial(_mode_mix_kernel, batch=B),
        out_shape=(jax.ShapeDtypeStruct((K1, B, KO), jnp.float32),
                   jax.ShapeDtypeStruct((K1, B, KO), jnp.float32)),
        grid=(K1,),
        in_specs=[a_spec, a_spec, w_spec],
        out_specs=(o_spec, o_spec),
        compiler_params=pltpu.CompilerParams(dimension_semantics=("parallel",)),
        cost_estimate=cost,
    )(a_re, a_im, w_packed)


# ----------------------------------------------------------------------------
# SpectralConv2d: partial DFT -> Pallas mode mixing -> partial inverse DFT.
# ----------------------------------------------------------------------------
def _dft_matrices(H, W, m1, m2):
    assert 2 * m1 <= H and m2 <= W // 2, "mode counts exceed the padded grid"
    kx = jnp.concatenate([jnp.arange(m1), jnp.arange(H - m1, H)]).astype(jnp.float32)
    hh = jnp.arange(H, dtype=jnp.float32)
    ky = jnp.arange(m2, dtype=jnp.float32)
    ww = jnp.arange(W, dtype=jnp.float32)
    ang_h = (2.0 * jnp.pi / H) * kx[:, None] * hh[None, :]        # (2*m1, H)
    ang_w = (2.0 * jnp.pi / W) * ky[:, None] * ww[None, :]        # (m2, W)
    fhc, fhs = jnp.cos(ang_h), jnp.sin(ang_h)
    fwc, fws = jnp.cos(ang_w), jnp.sin(ang_w)
    # Inverse: exact complex iDFT over kx (1/H); numpy/torch-style irfft over
    # ky (imag of the DC bin dropped, factor 2 for ky>=1, no Nyquist since
    # m2 <= W//2).
    ghc, ghs = jnp.transpose(fhc) / H, jnp.transpose(fhs) / H     # (H, 2*m1)
    dup = jnp.where(ky == 0, 1.0, 2.0)[:, None] / W               # (m2, 1)
    cinv = dup * fwc
    sinv = (dup * fws).at[0].set(0.0)
    return dict(fhc=fhc, fhs=fhs, fwc=fwc, fws=fws,
                ghc=ghc, ghs=ghs, cinv=cinv, sinv=sinv)


def spectral_conv2d(x_cm, w_packed, dft, B, H, W, m1, m2):
    """x_cm: (Cin, B*H*W) channel-major. Returns (Cout, B*H*W).

    Equivalent to rfft2 -> complex mode multiply (weights1/weights2) -> irfft2
    of the original module, but only the retained modes are ever computed.
    """
    # TODO(synk): the partial-DFT contractions and mode pack/unpack reshapes
    # below are tiny and left to XLA; they are not fused into the Pallas calls.
    Cin = x_cm.shape[0]
    Cout = w_packed.shape[-1] // m2
    hp = jax.lax.Precision.HIGHEST
    x4 = x_cm.reshape(Cin, B, H, W)

    # forward: modes[k, b, q, c] for kx in {0..m1-1, H-m1..H-1}, ky in {0..m2-1}
    p = jnp.einsum('cbhw,kh->cbkw', x4, dft['fhc'], precision=hp)
    q = jnp.einsum('cbhw,kh->cbkw', x4, dft['fhs'], precision=hp)
    a_re = (jnp.einsum('cbkw,qw->kbqc', p, dft['fwc'], precision=hp)
            - jnp.einsum('cbkw,qw->kbqc', q, dft['fws'], precision=hp))
    a_im = -(jnp.einsum('cbkw,qw->kbqc', p, dft['fws'], precision=hp)
             + jnp.einsum('cbkw,qw->kbqc', q, dft['fwc'], precision=hp))
    K1 = 2 * m1
    a_re = a_re.reshape(K1, B, m2 * Cin)
    a_im = a_im.reshape(K1, B, m2 * Cin)

    o_re, o_im = mode_mix(a_re, a_im, w_packed)                   # Pallas
    o_re = o_re.reshape(K1, B, m2, Cout)
    o_im = o_im.reshape(K1, B, m2, Cout)

    # inverse: complex iDFT over kx, then real (irfft-style) inverse over ky
    z_re = (jnp.einsum('kbqo,hk->obhq', o_re, dft['ghc'], precision=hp)
            - jnp.einsum('kbqo,hk->obhq', o_im, dft['ghs'], precision=hp))
    z_im = (jnp.einsum('kbqo,hk->obhq', o_re, dft['ghs'], precision=hp)
            + jnp.einsum('kbqo,hk->obhq', o_im, dft['ghc'], precision=hp))
    y = (jnp.einsum('obhq,qw->obhw', z_re, dft['cinv'], precision=hp)
         - jnp.einsum('obhq,qw->obhw', z_im, dft['sinv'], precision=hp))
    return y.reshape(Cout, B * H * W)


# ----------------------------------------------------------------------------
# Pallas kernel 3: fused head fc2(gelu(fc1(x))) on channel-major input.
# ----------------------------------------------------------------------------
def _head_kernel(x_ref, w1_ref, b1_ref, w2_ref, b2_ref, o_ref):
    h = jnp.dot(w1_ref[...], x_ref[...], preferred_element_type=jnp.float32)
    h = _gelu(h + b1_ref[...])
    o_ref[...] = (jnp.dot(w2_ref[...], h, preferred_element_type=jnp.float32)
                  + b2_ref[0, 0])


def fused_head(x_cm, w1, b1, w2, b2, target_tile=256):
    """x_cm: (Cin, N) -> (N,); the (128, tile) intermediate never leaves VMEM."""
    Cin, N = x_cm.shape
    H1 = w1.shape[0]
    if N <= target_tile:
        n_blocks, tile = 1, N
    else:
        n_blocks = pl.cdiv(N, target_tile)
        tile = _round_up(pl.cdiv(N, n_blocks), 128)
    Np = n_blocks * tile
    if Np != N:
        x_cm = jnp.pad(x_cm, ((0, 0), (0, Np - N)))
    cost = pl.CostEstimate(
        flops=2 * Np * Cin * H1 + 2 * Np * H1,
        transcendentals=Np * H1,
        bytes_accessed=4 * (Cin * Np + H1 * Cin + 2 * H1 + 1 + Np),
    )
    out = pl.pallas_call(
        _head_kernel,
        out_shape=jax.ShapeDtypeStruct((1, Np), jnp.float32),
        grid=(n_blocks,),
        in_specs=[pl.BlockSpec((Cin, tile), lambda i: (0, i)),
                  pl.BlockSpec((H1, Cin), lambda i: (0, 0)),
                  pl.BlockSpec((H1, 1), lambda i: (0, 0)),
                  pl.BlockSpec((1, H1), lambda i: (0, 0)),
                  pl.BlockSpec(memory_space=pltpu.MemorySpace.SMEM)],
        out_specs=pl.BlockSpec((1, tile), lambda i: (0, i)),
        compiler_params=pltpu.CompilerParams(dimension_semantics=("parallel",)),
        cost_estimate=cost,
    )(x_cm, w1, b1.reshape(H1, 1), w2.reshape(1, H1), b2.reshape(1, 1))
    return out[0, :N]


# ----------------------------------------------------------------------------
# Parameters (deterministic synthetic init matching the torch module's shapes).
# Spectral weights are pre-packed once: per retained kx row, a block-diagonal
# (over ky) pair of real matrices ready for the mode-mix kernel.
# ----------------------------------------------------------------------------
def init_params(key, modes1, modes2, width):
    ks = jax.random.split(key, 11)

    def lin(k, cin, cout):
        kw, kb = jax.random.split(k)
        bound = 1.0 / jnp.sqrt(jnp.float32(cin))
        w = jax.random.uniform(kw, (cout, cin), jnp.float32, -bound, bound)
        b = jax.random.uniform(kb, (cout,), jnp.float32, -bound, bound)
        return w, b

    def spec(k):
        # torch: scale * rand(Cin, Cout, m1, m2, cfloat) for weights1/weights2.
        k1r, k1i, k2r, k2i = jax.random.split(k, 4)
        scale = 1.0 / (width * width)
        shp = (width, width, modes1, modes2)
        w1r = scale * jax.random.uniform(k1r, shp, jnp.float32)
        w1i = scale * jax.random.uniform(k1i, shp, jnp.float32)
        w2r = scale * jax.random.uniform(k2r, shp, jnp.float32)
        w2i = scale * jax.random.uniform(k2i, shp, jnp.float32)
        wr = jnp.concatenate([w1r, w2r], axis=2)          # (Cin, Cout, 2*m1, m2)
        wi = jnp.concatenate([w1i, w2i], axis=2)
        eye = jnp.eye(modes2, dtype=jnp.float32)

        def block_diag(w):
            bd = jnp.einsum('cokq,qr->kqcro', w, eye)     # (2m1, m2, Cin, m2, Cout)
            return bd.reshape(2 * modes1, modes2 * width, modes2 * width)

        # (2*m1, 2[Re,Im], m2*Cin, m2*Cout)
        return jnp.stack([block_diag(wr), block_diag(wi)], axis=1)

    p = {}
    p["fc0"] = lin(ks[0], 4, width)
    p["fc1"] = lin(ks[1], width, 128)
    p["fc2"] = lin(ks[2], 128, 1)
    for l in range(4):
        p[f"spec{l}"] = spec(ks[3 + l])
        p[f"w{l}"] = lin(ks[7 + l], width, width)
    return p


# ----------------------------------------------------------------------------
# FNO2d forward
# ----------------------------------------------------------------------------
def fno2d_forward(x, params, *, modes1, modes2, width, padding=8):
    # x: (B, sx, sy, 2) float32 (torch input before the grid concat)
    B, sx, sy, _ = x.shape
    # build the (a, x, y) features directly channel-major: (4, B, sx, sy)
    x_cm = jnp.transpose(x, (3, 0, 1, 2))
    gx = jnp.broadcast_to(
        jnp.linspace(0.0, 1.0, sx, dtype=jnp.float32).reshape(1, 1, sx, 1),
        (1, B, sx, sy))
    gy = jnp.broadcast_to(
        jnp.linspace(0.0, 1.0, sy, dtype=jnp.float32).reshape(1, 1, 1, sy),
        (1, B, sx, sy))
    x_cm = jnp.concatenate([x_cm, gx, gy], axis=0)

    w0, b0 = params["fc0"]
    h = pointwise_linear(x_cm.reshape(4, B * sx * sy), w0, b0)    # (width, N0)

    # F.pad(x_nchw, [0, pad, 0, pad]) == pad bottom/right of the spatial dims.
    h = h.reshape(width, B, sx, sy)
    h = jnp.pad(h, ((0, 0), (0, 0), (0, padding), (0, padding)))
    H, W = sx + padding, sy + padding
    N = B * H * W
    h = h.reshape(width, N)

    dft = _dft_matrices(H, W, modes1, modes2)
    for l in range(4):
        x1 = spectral_conv2d(h, params[f"spec{l}"], dft, B, H, W, modes1, modes2)
        wt, wb = params[f"w{l}"]       # 1x1 conv == channel-major matmul
        h = pointwise_linear(h, wt, wb, add=x1, use_gelu=(l < 3))

    # crop padding (x[..., :-pad, :-pad]) and project with the fused head
    h = h.reshape(width, B, H, W)[:, :, :sx, :sy].reshape(width, B * sx * sy)
    w1, b1 = params["fc1"]
    w2, b2 = params["fc2"]
    y = fused_head(h, w1, b1, w2, b2)
    return y.reshape(B, sx, sy, 1)


if __name__ == "__main__":
    key = jax.random.PRNGKey(0)
    kx, kp = jax.random.split(key)

    B, s = 2, 16
    modes1 = modes2 = 6
    width = 32

    x = jax.random.normal(kx, (B, s, s, 2), jnp.float32)
    params = init_params(kp, modes1, modes2, width)

    fwd = jax.jit(
        functools.partial(fno2d_forward, modes1=modes1, modes2=modes2, width=width)
    )
    y = fwd(x, params)
    jax.block_until_ready(y)
    assert y.shape == (B, s, s, 1) and y.dtype == jnp.float32
    print("KERNEL_OK")
</pallas_src>

<mosaic_0001>
module attributes {stable_mosaic.version = 11 : i64} {
  func.func @_pointwise_kernel(%arg0: i32, %arg1: memref<4x512xf32, #tpu.memory_space<vmem>>, %arg2: memref<32x4xf32, #tpu.memory_space<vmem>>, %arg3: memref<32x1xf32, #tpu.memory_space<vmem>>, %arg4: memref<32x512xf32, #tpu.memory_space<vmem>>) attributes {dimension_semantics = [#tpu.dimension_semantics<parallel>], iteration_bounds = array<i64: 1>, scalar_prefetch = 0 : i64, scratch_operands = 0 : i64, tpu.core_type = #tpu.core_type<tc>, window_params = [{transform_indices = @transform_0, window_bounds = array<i64: 4, 512>}, {pipeline_mode = #tpu.pipeline_mode<synchronous>, transform_indices = @transform_1, window_bounds = array<i64: 32, 4>}, {pipeline_mode = #tpu.pipeline_mode<synchronous>, transform_indices = @transform_2, window_bounds = array<i64: 32, 1>}, {transform_indices = @transform_3, window_bounds = array<i64: 32, 512>}]} {
    %c0 = arith.constant 0 : index
    %c0_0 = arith.constant 0 : index
    %0 = vector.load %arg2[%c0, %c0_0] : memref<32x4xf32, #tpu.memory_space<vmem>>, vector<32x4xf32>
    %c0_1 = arith.constant 0 : index
    %c0_2 = arith.constant 0 : index
    %1 = vector.load %arg1[%c0_1, %c0_2] : memref<4x512xf32, #tpu.memory_space<vmem>>, vector<4x512xf32>
    %cst = arith.constant dense<0.000000e+00> : vector<32x512xf32>
    %2 = tpu.matmul %0, %1, %cst {dimension_numbers = #tpu.dot_dimension_numbers<[1], [0], [0], [1], [0, 0, 1, 1], [], []>} : vector<32x4xf32>, vector<4x512xf32>, vector<32x512xf32> -> vector<32x512xf32>
    %c0_3 = arith.constant 0 : index
    %c0_4 = arith.constant 0 : index
    %3 = vector.load %arg3[%c0_3, %c0_4] : memref<32x1xf32, #tpu.memory_space<vmem>>, vector<32x1xf32>
    %4 = vector.broadcast %3 : vector<32x1xf32> to vector<32x512xf32>
    %5 = arith.addf %2, %4 : vector<32x512xf32>
    %c0_5 = arith.constant 0 : index
    %c0_6 = arith.constant 0 : index
    %6 = vector.load %arg4[%c0_5, %c0_6] : memref<32x512xf32, #tpu.memory_space<vmem>>, vector<32x512xf32>
    tpu.vector_store %arg4[%c0_5, %c0_6], %5 {strides = array<i32>} : memref<32x512xf32, #tpu.memory_space<vmem>>, vector<32x512xf32>,
    return
  }
  func.func @transform_0(%arg0: i32) -> (i32, i32) {
    %c0_i32 = arith.constant 0 : i32
    %c0_i32_0 = arith.constant 0 : i32
    return %c0_i32, %arg0 : i32, i32
  }
  func.func @transform_1(%arg0: i32) -> (i32, i32) {
    %c0_i32 = arith.constant 0 : i32
    %c0_i32_0 = arith.constant 0 : i32
    %c0_i32_1 = arith.constant 0 : i32
    return %c0_i32, %c0_i32_0 : i32, i32
  }
  func.func @transform_2(%arg0: i32) -> (i32, i32) {
    %c0_i32 = arith.constant 0 : i32
    %c0_i32_0 = arith.constant 0 : i32
    %c0_i32_1 = arith.constant 0 : i32
    return %c0_i32, %c0_i32_0 : i32, i32
  }
  func.func @transform_3(%arg0: i32) -> (i32, i32) {
    %c0_i32 = arith.constant 0 : i32
    %c0_i32_0 = arith.constant 0 : i32
    return %c0_i32, %arg0 : i32, i32
  }
}

module attributes {stable_mosaic.version = 11 : i64} {
  func.func @_mode_mix_kernel(%arg0: i32, %arg1: memref<1x2x192xf32, #tpu.memory_space<vmem>>, %arg2: memref<1x2x192xf32, #tpu.memory_space<vmem>>, %arg3: memref<1x2x192x192xf32, #tpu.memory_space<vmem>>, %arg4: memref<1x2x192xf32, #tpu.memory_space<vmem>>, %arg5: memref<1x2x192xf32, #tpu.memory_space<vmem>>) attributes {dimension_semantics = [#tpu.dimension_semantics<parallel>], iteration_bounds = array<i64: 12>, scalar_prefetch = 0 : i64, scratch_operands = 0 : i64, tpu.core_type = #tpu.core_type<tc>, window_params = [{transform_indices = @transform_0, window_bounds = array<i64: 1, 2, 192>}, {transform_indices = @transform_1, window_bounds = array<i64: 1, 2, 192>}, {transform_indices = @transform_2, window_bounds = array<i64: 1, 2, 192, 192>}, {transform_indices = @transform_3, window_bounds = array<i64: 1, 2, 192>}, {transform_indices = @transform_4, window_bounds = array<i64: 1, 2, 192>}]} {
    %c0 = arith.constant 0 : index
    %c0_0 = arith.constant 0 : index
    %c0_1 = arith.constant 0 : index
    %0 = vector.load %arg1[%c0, %c0_0, %c0_1] : memref<1x2x192xf32, #tpu.memory_space<vmem>>, vector<1x2x192xf32>
    %1 = vector.shape_cast %0 : vector<1x2x192xf32> to vector<2x192xf32>
    %c0_2 = arith.constant 0 : index
    %c0_3 = arith.constant 0 : index
    %c0_4 = arith.constant 0 : index
    %2 = vector.load %arg2[%c0_2, %c0_3, %c0_4] : memref<1x2x192xf32, #tpu.memory_space<vmem>>, vector<1x2x192xf32>
    %3 = vector.shape_cast %2 : vector<1x2x192xf32> to vector<2x192xf32>
    %4 = tpu.concatenate %1, %3 in 0 : vector<2x192xf32>, vector<2x192xf32> -> vector<4x192xf32>
    %c0_5 = arith.constant 0 : index
    %c0_6 = arith.constant 0 : index
    %c0_7 = arith.constant 0 : index
    %c0_8 = arith.constant 0 : index
    %5 = vector.load %arg3[%c0_5, %c0_6, %c0_7, %c0_8] : memref<1x2x192x192xf32, #tpu.memory_space<vmem>>, vector<1x1x192x192xf32>
    %6 = vector.shape_cast %5 : vector<1x1x192x192xf32> to vector<192x192xf32>
    %c0_9 = arith.constant 0 : index
    %c1 = arith.constant 1 : index
    %c0_10 = arith.constant 0 : index
    %c0_11 = arith.constant 0 : index
    %7 = vector.load %arg3[%c0_9, %c1, %c0_10, %c0_11] : memref<1x2x192x192xf32, #tpu.memory_space<vmem>>, vector<1x1x192x192xf32>
    %8 = vector.shape_cast %7 : vector<1x1x192x192xf32> to vector<192x192xf32>
    %cst = arith.constant dense<0.000000e+00> : vector<4x192xf32>
    %9 = tpu.matmul %4, %6, %cst {dimension_numbers = #tpu.dot_dimension_numbers<[1], [0], [0], [1], [0, 0, 1, 1], [], []>} : vector<4x192xf32>, vector<192x192xf32>, vector<4x192xf32> -> vector<4x192xf32>
    %cst_12 = arith.constant dense<0.000000e+00> : vector<4x192xf32>
    %10 = tpu.matmul %4, %8, %cst_12 {dimension_numbers = #tpu.dot_dimension_numbers<[1], [0], [0], [1], [0, 0, 1, 1], [], []>} : vector<4x192xf32>, vector<192x192xf32>, vector<4x192xf32> -> vector<4x192xf32>
    %11 = vector.extract_strided_slice %9 {offsets = [0, 0], sizes = [2, 192], strides = [1, 1]} : vector<4x192xf32> to vector<2x192xf32>
    %12 = vector.extract_strided_slice %10 {offsets = [2, 0], sizes = [2, 192], strides = [1, 1]} : vector<4x192xf32> to vector<2x192xf32>
    %13 = arith.subf %11, %12 : vector<2x192xf32>
    %c0_13 = arith.constant 0 : index
    %c0_14 = arith.constant 0 : index
    %c0_15 = arith.constant 0 : index
    %14 = vector.load %arg4[%c0_13, %c0_14, %c0_15] : memref<1x2x192xf32, #tpu.memory_space<vmem>>, vector<1x2x192xf32>
    %15 = vector.shape_cast %14 : vector<1x2x192xf32> to vector<2x192xf32>
    %16 = vector.shape_cast %13 : vector<2x192xf32> to vector<1x2x192xf32>
    tpu.vector_store %arg4[%c0_13, %c0_14, %c0_15], %16 {strides = array<i32>} : memref<1x2x192xf32, #tpu.memory_space<vmem>>, vector<1x2x192xf32>,
    %17 = vector.extract_strided_slice %10 {offsets = [0, 0], sizes = [2, 192], strides = [1, 1]} : vector<4x192xf32> to vector<2x192xf32>
    %18 = vector.extract_strided_slice %9 {offsets = [2, 0], sizes = [2, 192], strides = [1, 1]} : vector<4x192xf32> to vector<2x192xf32>
    %19 = arith.addf %17, %18 : vector<2x192xf32>
    %c0_16 = arith.constant 0 : index
    %c0_17 = arith.constant 0 : index
    %c0_18 = arith.constant 0 : index
    %20 = vector.load %arg5[%c0_16, %c0_17, %c0_18] : memref<1x2x192xf32, #tpu.memory_space<vmem>>, vector<1x2x192xf32>
    %21 = vector.shape_cast %20 : vector<1x2x192xf32> to vector<2x192xf32>
    %22 = vector.shape_cast %19 : vector<2x192xf32> to vector<1x2x192xf32>
    tpu.vector_store %arg5[%c0_16, %c0_17, %c0_18], %22 {strides = array<i32>} : memref<1x2x192xf32, #tpu.memory_space<vmem>>, vector<1x2x192xf32>,
    return
  }
  func.func @transform_0(%arg0: i32) -> (i32, i32, i32) {
    %c0_i32 = arith.constant 0 : i32
    %c0_i32_0 = arith.constant 0 : i32
    %c0_i32_1 = arith.constant 0 : i32
    return %arg0, %c0_i32, %c0_i32_0 : i32, i32, i32
  }
  func.func @transform_1(%arg0: i32) -> (i32, i32, i32) {
    %c0_i32 = arith.constant 0 : i32
    %c0_i32_0 = arith.constant 0 : i32
    %c0_i32_1 = arith.constant 0 : i32
    return %arg0, %c0_i32, %c0_i32_0 : i32, i32, i32
  }
  func.func @transform_2(%arg0: i32) -> (i32, i32, i32, i32) {
    %c0_i32 = arith.constant 0 : i32
    %c0_i32_0 = arith.constant 0 : i32
    %c0_i32_1 = arith.constant 0 : i32
    %c0_i32_2 = arith.constant 0 : i32
    return %arg0, %c0_i32, %c0_i32_0, %c0_i32_1 : i32, i32, i32, i32
  }
  func.func @transform_3(%arg0: i32) -> (i32, i32, i32) {
    %c0_i32 = arith.constant 0 : i32
    %c0_i32_0 = arith.constant 0 : i32
    %c0_i32_1 = arith.constant 0 : i32
    return %arg0, %c0_i32, %c0_i32_0 : i32, i32, i32
  }
  func.func @transform_4(%arg0: i32) -> (i32, i32, i32) {
    %c0_i32 = arith.constant 0 : i32
    %c0_i32_0 = arith.constant 0 : i32
    %c0_i32_1 = arith.constant 0 : i32
    return %arg0, %c0_i32, %c0_i32_0 : i32, i32, i32
  }
}

module attributes {stable_mosaic.version = 11 : i64} {
  func.func @_pointwise_add_kernel(%arg0: i32, %arg1: memref<32x384xf32, #tpu.memory_space<vmem>>, %arg2: memref<32x32xf32, #tpu.memory_space<vmem>>, %arg3: memref<32x1xf32, #tpu.memory_space<vmem>>, %arg4: memref<32x384xf32, #tpu.memory_space<vmem>>, %arg5: memref<32x384xf32, #tpu.memory_space<vmem>>) attributes {dimension_semantics = [#tpu.dimension_semantics<parallel>], iteration_bounds = array<i64: 3>, scalar_prefetch = 0 : i64, scratch_operands = 0 : i64, tpu.core_type = #tpu.core_type<tc>, window_params = [{transform_indices = @transform_0, window_bounds = array<i64: 32, 384>}, {pipeline_mode = #tpu.pipeline_mode<synchronous>, transform_indices = @transform_1, window_bounds = array<i64: 32, 32>}, {pipeline_mode = #tpu.pipeline_mode<synchronous>, transform_indices = @transform_2, window_bounds = array<i64: 32, 1>}, {transform_indices = @transform_3, window_bounds = array<i64: 32, 384>}, {transform_indices = @transform_4, window_bounds = array<i64: 32, 384>}]} {
    %c0 = arith.constant 0 : index
    %c0_0 = arith.constant 0 : index
    %0 = vector.load %arg2[%c0, %c0_0] : memref<32x32xf32, #tpu.memory_space<vmem>>, vector<32x32xf32>
    %c0_1 = arith.constant 0 : index
    %c0_2 = arith.constant 0 : index
    %1 = vector.load %arg1[%c0_1, %c0_2] : memref<32x384xf32, #tpu.memory_space<vmem>>, vector<32x384xf32>
    %cst = arith.constant dense<0.000000e+00> : vector<32x384xf32>
    %2 = tpu.matmul %0, %1, %cst {dimension_numbers = #tpu.dot_dimension_numbers<[1], [0], [0], [1], [0, 0, 1, 1], [], []>} : vector<32x32xf32>, vector<32x384xf32>, vector<32x384xf32> -> vector<32x384xf32>
    %c0_3 = arith.constant 0 : index
    %c0_4 = arith.constant 0 : index
    %3 = vector.load %arg3[%c0_3, %c0_4] : memref<32x1xf32, #tpu.memory_space<vmem>>, vector<32x1xf32>
    %4 = vector.broadcast %3 : vector<32x1xf32> to vector<32x384xf32>
    %5 = arith.addf %2, %4 : vector<32x384xf32>
    %c0_5 = arith.constant 0 : index
    %c0_6 = arith.constant 0 : index
    %6 = vector.load %arg4[%c0_5, %c0_6] : memref<32x384xf32, #tpu.memory_space<vmem>>, vector<32x384xf32>
    %7 = arith.addf %5, %6 : vector<32x384xf32>
    %8 = math.absf %7 : vector<32x384xf32>
    %cst_7 = arith.constant 0.707106769 : f32
    %9 = vector.broadcast %cst_7 : f32 to vector<32x384xf32>
    %10 = arith.mulf %8, %9 : vector<32x384xf32>
    %cst_8 = arith.constant 0.327591091 : f32
    %11 = vector.broadcast %cst_8 : f32 to vector<32x384xf32>
    %12 = arith.mulf %11, %10 : vector<32x384xf32>
    %cst_9 = arith.constant 1.000000e+00 : f32
    %13 = vector.broadcast %cst_9 : f32 to vector<32x384xf32>
    %14 = arith.addf %13, %12 : vector<32x384xf32>
    %15 = tpu.reciprocal %14 {approx = true} : vector<32x384xf32> -> vector<32x384xf32>
    %cst_10 = arith.constant 1.06140542 : f32
    %16 = vector.broadcast %cst_10 : f32 to vector<32x384xf32>
    %17 = arith.mulf %15, %16 : vector<32x384xf32>
    %cst_11 = arith.constant -1.45315206 : f32
    %18 = vector.broadcast %cst_11 : f32 to vector<32x384xf32>
    %19 = arith.addf %18, %17 : vector<32x384xf32>
    %20 = arith.mulf %15, %19 : vector<32x384xf32>
    %cst_12 = arith.constant 1.42141378 : f32
    %21 = vector.broadcast %cst_12 : f32 to vector<32x384xf32>
    %22 = arith.addf %21, %20 : vector<32x384xf32>
    %23 = arith.mulf %15, %22 : vector<32x384xf32>
    %cst_13 = arith.constant -0.284496725 : f32
    %24 = vector.broadcast %cst_13 : f32 to vector<32x384xf32>
    %25 = arith.addf %24, %23 : vector<32x384xf32>
    %26 = arith.mulf %15, %25 : vector<32x384xf32>
    %cst_14 = arith.constant 0.254829586 : f32
    %27 = vector.broadcast %cst_14 : f32 to vector<32x384xf32>
    %28 = arith.addf %27, %26 : vector<32x384xf32>
    %29 = arith.mulf %15, %28 : vector<32x384xf32>
    %cst_15 = arith.constant 0.000000e+00 : f32
    %30 = vector.broadcast %cst_15 : f32 to vector<32x384xf32>
    %31 = arith.subf %30, %10 : vector<32x384xf32>
    %32 = arith.mulf %31, %10 : vector<32x384xf32>
    %33 = math.exp %32 : vector<32x384xf32>
    %34 = arith.mulf %29, %33 : vector<32x384xf32>
    %cst_16 = arith.constant 1.000000e+00 : f32
    %35 = vector.broadcast %cst_16 : f32 to vector<32x384xf32>
    %36 = arith.subf %35, %34 : vector<32x384xf32>
    %cst_17 = arith.constant 0.000000e+00 : f32
    %37 = vector.broadcast %cst_17 : f32 to vector<32x384xf32>
    %38 = arith.cmpf olt, %7, %37 : vector<32x384xf32>
    %cst_18 = arith.constant 0.000000e+00 : f32
    %39 = vector.broadcast %cst_18 : f32 to vector<32x384xf32>
    %40 = arith.subf %39, %36 : vector<32x384xf32>
    %41 = arith.select %38, %40, %36 : vector<32x384xi1>, vector<32x384xf32>
    %cst_19 = arith.constant 5.000000e-01 : f32
    %42 = vector.broadcast %cst_19 : f32 to vector<32x384xf32>
    %43 = arith.mulf %42, %7 : vector<32x384xf32>
    %cst_20 = arith.constant 1.000000e+00 : f32
    %44 = vector.broadcast %cst_20 : f32 to vector<32x384xf32>
    %45 = arith.addf %44, %41 : vector<32x384xf32>
    %46 = arith.mulf %43, %45 : vector<32x384xf32>
    %c0_21 = arith.constant 0 : index
    %c0_22 = arith.constant 0 : index
    %47 = vector.load %arg5[%c0_21, %c0_22] : memref<32x384xf32, #tpu.memory_space<vmem>>, vector<32x384xf32>
    tpu.vector_store %arg5[%c0_21, %c0_22], %46 {strides = array<i32>} : memref<32x384xf32, #tpu.memory_space<vmem>>, vector<32x384xf32>,
    return
  }
  func.func @transform_0(%arg0: i32) -> (i32, i32) {
    %c0_i32 = arith.constant 0 : i32
    %c0_i32_0 = arith.constant 0 : i32
    return %c0_i32, %arg0 : i32, i32
  }
  func.func @transform_1(%arg0: i32) -> (i32, i32) {
    %c0_i32 = arith.constant 0 : i32
    %c0_i32_0 = arith.constant 0 : i32
    %c0_i32_1 = arith.constant 0 : i32
    return %c0_i32, %c0_i32_0 : i32, i32
  }
  func.func @transform_2(%arg0: i32) -> (i32, i32) {
    %c0_i32 = arith.constant 0 : i32
    %c0_i32_0 = arith.constant 0 : i32
    %c0_i32_1 = arith.constant 0 : i32
    return %c0_i32, %c0_i32_0 : i32, i32
  }
  func.func @transform_3(%arg0: i32) -> (i32, i32) {
    %c0_i32 = arith.constant 0 : i32
    %c0_i32_0 = arith.constant 0 : i32
    return %c0_i32, %arg0 : i32, i32
  }
  func.func @transform_4(%arg0: i32) -> (i32, i32) {
    %c0_i32 = arith.constant 0 : i32
    %c0_i32_0 = arith.constant 0 : i32
    return %c0_i32, %arg0 : i32, i32
  }
}

module attributes {stable_mosaic.version = 11 : i64} {
  func.func @_pointwise_add_kernel(%arg0: i32, %arg1: memref<32x384xf32, #tpu.memory_space<vmem>>, %arg2: memref<32x32xf32, #tpu.memory_space<vmem>>, %arg3: memref<32x1xf32, #tpu.memory_space<vmem>>, %arg4: memref<32x384xf32, #tpu.memory_space<vmem>>, %arg5: memref<32x384xf32, #tpu.memory_space<vmem>>) attributes {dimension_semantics = [#tpu.dimension_semantics<parallel>], iteration_bounds = array<i64: 3>, scalar_prefetch = 0 : i64, scratch_operands = 0 : i64, tpu.core_type = #tpu.core_type<tc>, window_params = [{transform_indices = @transform_0, window_bounds = array<i64: 32, 384>}, {pipeline_mode = #tpu.pipeline_mode<synchronous>, transform_indices = @transform_1, window_bounds = array<i64: 32, 32>}, {pipeline_mode = #tpu.pipeline_mode<synchronous>, transform_indices = @transform_2, window_bounds = array<i64: 32, 1>}, {transform_indices = @transform_3, window_bounds = array<i64: 32, 384>}, {transform_indices = @transform_4, window_bounds = array<i64: 32, 384>}]} {
    %c0 = arith.constant 0 : index
    %c0_0 = arith.constant 0 : index
    %0 = vector.load %arg2[%c0, %c0_0] : memref<32x32xf32, #tpu.memory_space<vmem>>, vector<32x32xf32>
    %c0_1 = arith.constant 0 : index
    %c0_2 = arith.constant 0 : index
    %1 = vector.load %arg1[%c0_1, %c0_2] : memref<32x384xf32, #tpu.memory_space<vmem>>, vector<32x384xf32>
    %cst = arith.constant dense<0.000000e+00> : vector<32x384xf32>
    %2 = tpu.matmul %0, %1, %cst {dimension_numbers = #tpu.dot_dimension_numbers<[1], [0], [0], [1], [0, 0, 1, 1], [], []>} : vector<32x32xf32>, vector<32x384xf32>, vector<32x384xf32> -> vector<32x384xf32>
    %c0_3 = arith.constant 0 : index
    %c0_4 = arith.constant 0 : index
    %3 = vector.load %arg3[%c0_3, %c0_4] : memref<32x1xf32, #tpu.memory_space<vmem>>, vector<32x1xf32>
    %4 = vector.broadcast %3 : vector<32x1xf32> to vector<32x384xf32>
    %5 = arith.addf %2, %4 : vector<32x384xf32>
    %c0_5 = arith.constant 0 : index
    %c0_6 = arith.constant 0 : index
    %6 = vector.load %arg4[%c0_5, %c0_6] : memref<32x384xf32, #tpu.memory_space<vmem>>, vector<32x384xf32>
    %7 = arith.addf %5, %6 : vector<32x384xf32>
    %c0_7 = arith.constant 0 : index
    %c0_8 = arith.constant 0 : index
    %8 = vector.load %arg5[%c0_7, %c0_8] : memref<32x384xf32, #tpu.memory_space<vmem>>, vector<32x384xf32>
    tpu.vector_store %arg5[%c0_7, %c0_8], %7 {strides = array<i32>} : memref<32x384xf32, #tpu.memory_space<vmem>>, vector<32x384xf32>,
    return
  }
  func.func @transform_0(%arg0: i32) -> (i32, i32) {
    %c0_i32 = arith.constant 0 : i32
    %c0_i32_0 = arith.constant 0 : i32
    return %c0_i32, %arg0 : i32, i32
  }
  func.func @transform_1(%arg0: i32) -> (i32, i32) {
    %c0_i32 = arith.constant 0 : i32
    %c0_i32_0 = arith.constant 0 : i32
    %c0_i32_1 = arith.constant 0 : i32
    return %c0_i32, %c0_i32_0 : i32, i32
  }
  func.func @transform_2(%arg0: i32) -> (i32, i32) {
    %c0_i32 = arith.constant 0 : i32
    %c0_i32_0 = arith.constant 0 : i32
    %c0_i32_1 = arith.constant 0 : i32
    return %c0_i32, %c0_i32_0 : i32, i32
  }
  func.func @transform_3(%arg0: i32) -> (i32, i32) {
    %c0_i32 = arith.constant 0 : i32
    %c0_i32_0 = arith.constant 0 : i32
    return %c0_i32, %arg0 : i32, i32
  }
  func.func @transform_4(%arg0: i32) -> (i32, i32) {
    %c0_i32 = arith.constant 0 : i32
    %c0_i32_0 = arith.constant 0 : i32
    return %c0_i32, %arg0 : i32, i32
  }
}

module attributes {stable_mosaic.version = 11 : i64} {
  func.func @_head_kernel(%arg0: i32, %arg1: memref<32x256xf32, #tpu.memory_space<vmem>>, %arg2: memref<128x32xf32, #tpu.memory_space<vmem>>, %arg3: memref<128x1xf32, #tpu.memory_space<vmem>>, %arg4: memref<1x128xf32, #tpu.memory_space<vmem>>, %arg5: memref<1x1xf32, #tpu.memory_space<smem>>, %arg6: memref<1x256xf32, #tpu.memory_space<vmem>>) attributes {dimension_semantics = [#tpu.dimension_semantics<parallel>], iteration_bounds = array<i64: 2>, scalar_prefetch = 0 : i64, scratch_operands = 0 : i64, tpu.core_type = #tpu.core_type<tc>, window_params = [{transform_indices = @transform_0, window_bounds = array<i64: 32, 256>}, {pipeline_mode = #tpu.pipeline_mode<synchronous>, transform_indices = @transform_1, window_bounds = array<i64: 128, 32>}, {pipeline_mode = #tpu.pipeline_mode<synchronous>, transform_indices = @transform_2, window_bounds = array<i64: 128, 1>}, {pipeline_mode = #tpu.pipeline_mode<synchronous>, transform_indices = @transform_3, window_bounds = array<i64: 1, 128>}, {transform_indices = @transform_4, window_bounds = array<i64: 1, 1>}, {transform_indices = @transform_5, window_bounds = array<i64: 1, 256>}]} {
    %c0 = arith.constant 0 : index
    %c0_0 = arith.constant 0 : index
    %0 = vector.load %arg2[%c0, %c0_0] : memref<128x32xf32, #tpu.memory_space<vmem>>, vector<128x32xf32>
    %c0_1 = arith.constant 0 : index
    %c0_2 = arith.constant 0 : index
    %1 = vector.load %arg1[%c0_1, %c0_2] : memref<32x256xf32, #tpu.memory_space<vmem>>, vector<32x256xf32>
    %cst = arith.constant dense<0.000000e+00> : vector<128x256xf32>
    %2 = tpu.matmul %0, %1, %cst {dimension_numbers = #tpu.dot_dimension_numbers<[1], [0], [0], [1], [0, 0, 1, 1], [], []>} : vector<128x32xf32>, vector<32x256xf32>, vector<128x256xf32> -> vector<128x256xf32>
    %c0_3 = arith.constant 0 : index
    %c0_4 = arith.constant 0 : index
    %3 = vector.load %arg3[%c0_3, %c0_4] : memref<128x1xf32, #tpu.memory_space<vmem>>, vector<128x1xf32>
    %4 = vector.broadcast %3 : vector<128x1xf32> to vector<128x256xf32>
    %5 = arith.addf %2, %4 : vector<128x256xf32>
    %6 = math.absf %5 : vector<128x256xf32>
    %cst_5 = arith.constant 0.707106769 : f32
    %7 = vector.broadcast %cst_5 : f32 to vector<128x256xf32>
    %8 = arith.mulf %6, %7 : vector<128x256xf32>
    %cst_6 = arith.constant 0.327591091 : f32
    %9 = vector.broadcast %cst_6 : f32 to vector<128x256xf32>
    %10 = arith.mulf %9, %8 : vector<128x256xf32>
    %cst_7 = arith.constant 1.000000e+00 : f32
    %11 = vector.broadcast %cst_7 : f32 to vector<128x256xf32>
    %12 = arith.addf %11, %10 : vector<128x256xf32>
    %13 = tpu.reciprocal %12 {approx = true} : vector<128x256xf32> -> vector<128x256xf32>
    %cst_8 = arith.constant 1.06140542 : f32
    %14 = vector.broadcast %cst_8 : f32 to vector<128x256xf32>
    %15 = arith.mulf %13, %14 : vector<128x256xf32>
    %cst_9 = arith.constant -1.45315206 : f32
    %16 = vector.broadcast %cst_9 : f32 to vector<128x256xf32>
    %17 = arith.addf %16, %15 : vector<128x256xf32>
    %18 = arith.mulf %13, %17 : vector<128x256xf32>
    %cst_10 = arith.constant 1.42141378 : f32
    %19 = vector.broadcast %cst_10 : f32 to vector<128x256xf32>
    %20 = arith.addf %19, %18 : vector<128x256xf32>
    %21 = arith.mulf %13, %20 : vector<128x256xf32>
    %cst_11 = arith.constant -0.284496725 : f32
    %22 = vector.broadcast %cst_11 : f32 to vector<128x256xf32>
    %23 = arith.addf %22, %21 : vector<128x256xf32>
    %24 = arith.mulf %13, %23 : vector<128x256xf32>
    %cst_12 = arith.constant 0.254829586 : f32
    %25 = vector.broadcast %cst_12 : f32 to vector<128x256xf32>
    %26 = arith.addf %25, %24 : vector<128x256xf32>
    %27 = arith.mulf %13, %26 : vector<128x256xf32>
    %cst_13 = arith.constant 0.000000e+00 : f32
    %28 = vector.broadcast %cst_13 : f32 to vector<128x256xf32>
    %29 = arith.subf %28, %8 : vector<128x256xf32>
    %30 = arith.mulf %29, %8 : vector<128x256xf32>
    %31 = math.exp %30 : vector<128x256xf32>
    %32 = arith.mulf %27, %31 : vector<128x256xf32>
    %cst_14 = arith.constant 1.000000e+00 : f32
    %33 = vector.broadcast %cst_14 : f32 to vector<128x256xf32>
    %34 = arith.subf %33, %32 : vector<128x256xf32>
    %cst_15 = arith.constant 0.000000e+00 : f32
    %35 = vector.broadcast %cst_15 : f32 to vector<128x256xf32>
    %36 = arith.cmpf olt, %5, %35 : vector<128x256xf32>
    %cst_16 = arith.constant 0.000000e+00 : f32
    %37 = vector.broadcast %cst_16 : f32 to vector<128x256xf32>
    %38 = arith.subf %37, %34 : vector<128x256xf32>
    %39 = arith.select %36, %38, %34 : vector<128x256xi1>, vector<128x256xf32>
    %cst_17 = arith.constant 5.000000e-01 : f32
    %40 = vector.broadcast %cst_17 : f32 to vector<128x256xf32>
    %41 = arith.mulf %40, %5 : vector<128x256xf32>
    %cst_18 = arith.constant 1.000000e+00 : f32
    %42 = vector.broadcast %cst_18 : f32 to vector<128x256xf32>
    %43 = arith.addf %42, %39 : vector<128x256xf32>
    %44 = arith.mulf %41, %43 : vector<128x256xf32>
    %c0_19 = arith.constant 0 : index
    %c0_20 = arith.constant 0 : index
    %45 = vector.load %arg4[%c0_19, %c0_20] : memref<1x128xf32, #tpu.memory_space<vmem>>, vector<1x128xf32>
    %cst_21 = arith.constant dense<0.000000e+00> : vector<1x256xf32>
    %46 = tpu.matmul %45, %44, %cst_21 {dimension_numbers = #tpu.dot_dimension_numbers<[1], [0], [0], [1], [0, 0, 1, 1], [], []>} : vector<1x128xf32>, vector<128x256xf32>, vector<1x256xf32> -> vector<1x256xf32>
    %c0_22 = arith.constant 0 : index
    %c0_23 = arith.constant 0 : index
    %47 = memref.load %arg5[%c0_22, %c0_23] : memref<1x1xf32, #tpu.memory_space<smem>>
    %48 = vector.broadcast %47 : f32 to vector<1x256xf32>
    %49 = arith.addf %46, %48 : vector<1x256xf32>
    %c0_24 = arith.constant 0 : index
    %c0_25 = arith.constant 0 : index
    %50 = vector.load %arg6[%c0_24, %c0_25] : memref<1x256xf32, #tpu.memory_space<vmem>>, vector<1x256xf32>
    tpu.vector_store %arg6[%c0_24, %c0_25], %49 {strides = array<i32>} : memref<1x256xf32, #tpu.memory_space<vmem>>, vector<1x256xf32>,
    return
  }
  func.func @transform_0(%arg0: i32) -> (i32, i32) {
    %c0_i32 = arith.constant 0 : i32
    %c0_i32_0 = arith.constant 0 : i32
    return %c0_i32, %arg0 : i32, i32
  }
  func.func @transform_1(%arg0: i32) -> (i32, i32) {
    %c0_i32 = arith.constant 0 : i32
    %c0_i32_0 = arith.constant 0 : i32
    %c0_i32_1 = arith.constant 0 : i32
    return %c0_i32, %c0_i32_0 : i32, i32
  }
  func.func @transform_2(%arg0: i32) -> (i32, i32) {
    %c0_i32 = arith.constant 0 : i32
    %c0_i32_0 = arith.constant 0 : i32
    %c0_i32_1 = arith.constant 0 : i32
    return %c0_i32, %c0_i32_0 : i32, i32
  }
  func.func @transform_3(%arg0: i32) -> (i32, i32) {
    %c0_i32 = arith.constant 0 : i32
    %c0_i32_0 = arith.constant 0 : i32
    %c0_i32_1 = arith.constant 0 : i32
    return %c0_i32, %c0_i32_0 : i32, i32
  }
  func.func @transform_4(%arg0: i32) -> (i32, i32) {
    %c0_i32 = arith.constant 0 : i32
    %c0_i32_0 = arith.constant 0 : i32
    %c0_i32_1 = arith.constant 0 : i32
    return %c0_i32, %c0_i32_0 : i32, i32
  }
  func.func @transform_5(%arg0: i32) -> (i32, i32) {
    %c0_i32 = arith.constant 0 : i32
    %c0_i32_0 = arith.constant 0 : i32
    return %c0_i32, %arg0 : i32, i32
  }
}

</mosaic_0001>

<bundles_post_ra>
// kernel: fno2d_forward.10
= control target key start
LH: loop header
LB: loop body
LE: loop exit
PB: predicated region body
PF: predicated region fallthrough
CT: control target
= control target key end

     0   :  { %v234_v2 = vmov 0   ;;  %vm66_vm0 = vcmask 1043456   ;;  %vm53_vm1 = vcmask 31744   ;;  %s349_s0 = inlined_call_operand.vmem [shape: f32[4,512], index: 0, kind: input, shape index: {}]   ;;  %s350_s2 = inlined_call_operand.vmem [shape: f32[32,1], index: 2, kind: input, shape index: {}]   ;;  %s351_s1 = inlined_call_operand.vmem [shape: f32[32,4], index: 1, kind: input, shape index: {}]   ;;  %s352_s3 = inlined_call_operand.vmem [shape: f32[32,512], index: 3, kind: output, shape index: {}]  }
   0x1   :  { %v18_v0 = vld [vmem:[%s349_s0] sm:$0xff]  ;;  %v19_v1 = vld [vmem:[%s349_s0 + $0x8] sm:$0xff]  ;;  %232 = vset.pattern.permute.xlu0 %v234_v2  ;;  %233 = vset.pattern.permute.xlu1 %v234_v2  ;;  %v22_v4 = vld [vmem:[%s350_s2 + $0x10] sm:$0xff] }
   0x2   :  { %46 = vst [vmem:[#allocation1] ss:$2 sm:$0xff] %v18_v0  ;;  %v20_v3 = vld [vmem:[%s350_s2] sm:$0xff]  ;;  %36 = vperm.xlu1 %233, %v22_v4   ;;  %v21_v10 = vld [vmem:[%s350_s2 + $0x8] sm:$0xff]  ;;  %v23_v11 = vld [vmem:[%s350_s2 + $0x18] sm:$0xff] }
   0x3   :  { %48 = vst [vmem:[#allocation1 + $0x10] ss:$2 sm:$0xff] %v19_v1  ;;  %26 = vperm.xlu0 %232, %v20_v3   ;;  %v14_v5 = vld [vmem:[%s351_s1] sm:$0xff]  ;;  %v15_v12 = vld [vmem:[%s351_s1 + $0x8] sm:$0xff]  ;;  %v16_v13 = vld [vmem:[%s351_s1 + $0x10] sm:$0xff] }
   0x4   :  { %v17_v14 = vld [vmem:[%s351_s1 + $0x18] sm:$0xff] }
   0x9   :  { %v49_v6 = vld.sshfl [vmem:[#allocation1] sm:$0xff pattern:$0x75316420]  ;;  %v50_v7 = vld.sshfl [vmem:[#allocation1 + $0x8] sm:$0xff pattern:$0x75316420] }
   0xa   :  { %211 = vmatpush.msk.msra.mxu0 %vm66_vm0, %v49_v6  ;;  %216 = vmatpush.msk.msra.mxu1 %vm66_vm0, %v50_v7  ;;  %v51_v8 = vld.sshfl [vmem:[#allocation1 + $0x10] sm:$0xff pattern:$0x75316420]  ;;  %v52_v9 = vld.sshfl [vmem:[#allocation1 + $0x18] sm:$0xff pattern:$0x75316420] }
   0xb   :  { %221 = vmatpush.msk.msra.mxu2 %vm66_vm0, %v51_v8  ;;  %226 = vmatpush.msk.msra.mxu3 %vm66_vm0, %v52_v9 }
   0xc   :  { %212 = vmatmul.msk.f32.vlgmr.msra.gmra.mxu0 %vm53_vm1, %v14_v5  ;;  %217 = vmatmul.msk.f32.vlgmr.msra.gmra.mxu1 %vm53_vm1, %v14_v5 }
   0xd   :  { %222 = vmatmul.msk.f32.vlgmr.msra.gmra.mxu2 %vm53_vm1, %v14_v5  ;;  %227 = vmatmul.msk.f32.vlgmr.msra.gmra.mxu3 %vm53_vm1, %v14_v5 }
   0xe   :  { %31 = vperm.xlu0 %232, %v21_v10   ;;  %41 = vperm.xlu1 %233, %v23_v11  }
  0x14   :  { %213 = vmatmul.msk.f32.gmra.mxu0 %vm53_vm1, %v15_v12  ;;  %218 = vmatmul.msk.f32.gmra.mxu1 %vm53_vm1, %v15_v12 }
  0x15   :  { %223 = vmatmul.msk.f32.gmra.mxu2 %vm53_vm1, %v15_v12  ;;  %228 = vmatmul.msk.f32.gmra.mxu3 %vm53_vm1, %v15_v12 }
  0x1c   :  { %214 = vmatmul.msk.f32.gmra.mxu0 %vm53_vm1, %v16_v13  ;;  %219 = vmatmul.msk.f32.gmra.mxu1 %vm53_vm1, %v16_v13 }
  0x1d   :  { %224 = vmatmul.msk.f32.gmra.mxu2 %vm53_vm1, %v16_v13  ;;  %229 = vmatmul.msk.f32.gmra.mxu3 %vm53_vm1, %v16_v13 }
  0x24   :  { %215 = vmatmul.msk.f32.gmra.mxu0 %vm53_vm1, %v17_v14  ;;  %220 = vmatmul.msk.f32.gmra.mxu1 %vm53_vm1, %v17_v14 }
  0x25   :  { %225 = vmatmul.msk.f32.gmra.mxu2 %vm53_vm1, %v17_v14  ;;  %230 = vmatmul.msk.f32.gmra.mxu3 %vm53_vm1, %v17_v14 }
  0x74   :  { %v37_v29 = vpop.permute.xlu1 %36 }
  0x75   :  { %v27_v15 = vpop.permute.xlu0 %26 }
  0x80   :  { %v32_v20 = vpop.permute.xlu0 %31  ;;  %v42_v38 = vpop.permute.xlu1 %41 }
  0x89   :  { %v92_v16 = vpop.f32.mrf.mxu0  ;;  %v121_v17 = vpop.f32.mrf.mxu1 }
  0x8a   :  { %v93_v18 = vadd.f32 %v92_v16, %v27_v15  ;;  %v122_v19 = vadd.f32 %v121_v17, %v27_v15 }
  0x8c   :  { %191 = vst [vmem:[%s352_s3] sm:$0xff] %v93_v18 }
  0x8d   :  { %192 = vst [vmem:[%s352_s3 + $0x8] sm:$0xff] %v122_v19 }
  0x90   :  { %v150_v21 = vpop.f32.mrf.mxu2  ;;  %v179_v22 = vpop.f32.mrf.mxu3 }
  0x91   :  { %v151_v23 = vadd.f32 %v150_v21, %v27_v15  ;;  %v180_v24 = vadd.f32 %v179_v22, %v27_v15  ;;  %v95_v25 = vpop.f32.mrf.mxu0  ;;  %v124_v26 = vpop.f32.mrf.mxu1 }
  0x92   :  { %v96_v27 = vadd.f32 %v95_v25, %v32_v20  ;;  %v125_v28 = vadd.f32 %v124_v26, %v32_v20 }
  0x93   :  { %193 = vst [vmem:[%s352_s3 + $0x10] sm:$0xff] %v151_v23 }
  0x94   :  { %194 = vst [vmem:[%s352_s3 + $0x18] sm:$0xff] %v180_v24 }
  0x95   :  { %195 = vst [vmem:[%s352_s3 + $0x20] sm:$0xff] %v96_v27 }
  0x96   :  { %196 = vst [vmem:[%s352_s3 + $0x28] sm:$0xff] %v125_v28 }
  0x98   :  { %v153_v30 = vpop.f32.mrf.mxu2  ;;  %v182_v31 = vpop.f32.mrf.mxu3 }
  0x99   :  { %v154_v32 = vadd.f32 %v153_v30, %v32_v20  ;;  %v183_v33 = vadd.f32 %v182_v31, %v32_v20  ;;  %v98_v34 = vpop.f32.mrf.mxu0  ;;  %v127_v35 = vpop.f32.mrf.mxu1 }
  0x9a   :  { %v99_v36 = vadd.f32 %v98_v34, %v37_v29  ;;  %v128_v37 = vadd.f32 %v127_v35, %v37_v29 }
  0x9b   :  { %197 = vst [vmem:[%s352_s3 + $0x30] sm:$0xff] %v154_v32 }
  0x9c   :  { %198 = vst [vmem:[%s352_s3 + $0x38] sm:$0xff] %v183_v33 }
  0x9d   :  { %199 = vst [vmem:[%s352_s3 + $0x40] sm:$0xff] %v99_v36 }
  0x9e   :  { %200 = vst [vmem:[%s352_s3 + $0x48] sm:$0xff] %v128_v37 }
  0xa0   :  { %v156_v39 = vpop.f32.mrf.mxu2  ;;  %v185_v40 = vpop.f32.mrf.mxu3 }
  0xa1   :  { %v157_v41 = vadd.f32 %v156_v39, %v37_v29  ;;  %v186_v42 = vadd.f32 %v185_v40, %v37_v29  ;;  %v101_v43 = vpop.f32.mrf.mxu0  ;;  %v130_v44 = vpop.f32.mrf.mxu1 }
  0xa2   :  { %v102_v45 = vadd.f32 %v101_v43, %v42_v38  ;;  %v131_v46 = vadd.f32 %v130_v44, %v42_v38 }
  0xa3   :  { %201 = vst [vmem:[%s352_s3 + $0x50] sm:$0xff] %v157_v41 }
  0xa4   :  { %202 = vst [vmem:[%s352_s3 + $0x58] sm:$0xff] %v186_v42 }
  0xa5   :  { %203 = vst [vmem:[%s352_s3 + $0x60] sm:$0xff] %v102_v45 }
  0xa6   :  { %204 = vst [vmem:[%s352_s3 + $0x68] sm:$0xff] %v131_v46 }
  0xa8   :  { %v159_v47 = vpop.f32.mrf.mxu2  ;;  %v188_v48 = vpop.f32.mrf.mxu3 }
  0xa9   :  { %v160_v49 = vadd.f32 %v159_v47, %v42_v38  ;;  %v189_v50 = vadd.f32 %v188_v48, %v42_v38 }
  0xab   :  { %205 = vst [vmem:[%s352_s3 + $0x70] sm:$0xff] %v160_v49 }
  0xac   :  { %206 = vst [vmem:[%s352_s3 + $0x78] sm:$0xff] %v189_v50 }

// kernel: fno2d_forward.11
= control target key start
LH: loop header
LB: loop body
LE: loop exit
PB: predicated region body
PF: predicated region fallthrough
CT: control target
= control target key end

     0   :  { %s786_s15 = smov 0   ;;  %s934_s0 = inlined_call_operand.vmem [shape: f32[12,2,192], index: 0, kind: input, shape index: {}]   ;;  %s935_s1 = inlined_call_operand.vmem [shape: f32[12,2,192], index: 1, kind: input, shape index: {}]   ;;  %s936_s2 = inlined_call_operand.vmem [shape: f32[12,2,192,192], index: 2, kind: input, shape index: {}]   ;;  %s937_s3 = inlined_call_operand.vmem [shape: f32[12,2,192], index: 3, kind: output, shape index: {0}]   ;;  %s938_s4 = inlined_call_operand.vmem [shape: f32[12,2,192], index: 4, kind: output, shape index: {1}]  }
   0x1 LB: > { %s672_s16 = sadd.s32 4294967295, %s759_s15   ;;  %p676_p0 = scmp.ge.s32.totalorder %s759_s15, 1  ;;  %s759_s15 = sphi %s786_s15, %s15_s15  }
   0x2   : > { %p185_p1 = scmp.lt.s32.totalorder %s759_s15, 13 }
   0x4   : > { %p186_p2 = pnand %p676_p0, %p185_p1 }
   0x5   : > { %p226_p3 = scmp.lt.s32.totalorder (!%p186_p2), %s672_s16, 11 }
   0x6   : > { %189 = sbr.rel (%p186_p2) target bundleno = 215 (0xd7), region = 32 }
   0xb   : > { %s940_s16 = smov (!%p226_p3, %s672_s16), 11  ;;  %vm266_vm0 = vcmask 1041408   ;;  %vm366_vm1 = vcmask 523264   ;;  %vm543_vm2 = vcmask 519170  }
   0xc   : > { %s744_s17 = smul.u32 768, %s940_s16  ;;  %s794_s18 = sshll.u32 %s940_s16, 2  ;;  %vm544_vm3 = vmor %vm543_vm2, %vm266_vm0 }
   0xd   : > { %s230_s21 = scalar_lea.vmem %s934_s0, %s794_s18  ;;  %s235_s27 = scalar_lea.vmem %s935_s1, %s794_s18 }
   0xe   : > { %s803_s24 = scalar_lea.vmem %s936_s2, %s744_s17  ;;  %v251_v0 = vld [vmem:[%s230_s21] sm:$0xf]  ;;  %s250_s30 = scalar_lea.vmem %s938_s4, %s794_s18 }
   0xf   : > { %v299_v1 = vld [vmem:[%s803_s24 + $0xf0] sm:$0xff]  ;;  %v297_v2 = vld [vmem:[%s803_s24 + $0xe0] sm:$0xff]  ;;  %254 = vst [vmem:[#allocation1] ss:$4 sm:$0xff] %v251_v0  ;;  %v300_v7 = vld [vmem:[%s803_s24 + $0xf8] sm:$0xff]  ;;  %s245_s7 = scalar_lea.vmem %s937_s3, %s794_s18 }
  0x10   : > { %370 = vmatpush.msra.mxu0 %v299_v1  ;;  %v315_v3 = vld [vmem:[%s803_s24 + $0x170] sm:$0xff]  ;;  %v313_v5 = vld [vmem:[%s803_s24 + $0x160] sm:$0xff]  ;;  %410 = vmatpush.msra.mxu2 %v300_v7  ;;  %v298_v9 = vld [vmem:[%s803_s24 + $0xe8] sm:$0xff] }
  0x11   : > { %v295_v4 = vld [vmem:[%s803_s24 + $0xd0] sm:$0xff]  ;;  %398 = vmatpush.msra.mxu1 %v315_v3  ;;  %v293_v8 = vld [vmem:[%s803_s24 + $0xc0] sm:$0xff]  ;;  %v296_v11 = vld [vmem:[%s803_s24 + $0xd8] sm:$0xff] }
  0x12   : > { %371 = vmatpush.msra.mxu0 %v297_v2  ;;  %v311_v6 = vld [vmem:[%s803_s24 + $0x150] sm:$0xff]  ;;  %v309_v10 = vld [vmem:[%s803_s24 + $0x140] sm:$0xff]  ;;  %411 = vmatpush.msra.mxu2 %v298_v9  ;;  %v316_v13 = vld [vmem:[%s803_s24 + $0x178] sm:$0xff] }
  0x13   : > { %399 = vmatpush.msra.mxu1 %v313_v5  ;;  %v291_v12 = vld [vmem:[%s803_s24 + $0xb0] sm:$0xff]  ;;  %v294_v15 = vld [vmem:[%s803_s24 + $0xc8] sm:$0xff]  ;;  %438 = vmatpush.msra.mxu3 %v316_v13  ;;  %v289_v17 = vld [vmem:[%s803_s24 + $0xa0] sm:$0xff] }
  0x14   : > { %372 = vmatpush.msra.mxu0 %v295_v4  ;;  %v307_v14 = vld [vmem:[%s803_s24 + $0x130] sm:$0xff]  ;;  %v314_v16 = vld [vmem:[%s803_s24 + $0x168] sm:$0xff]  ;;  %412 = vmatpush.msra.mxu2 %v296_v11  ;;  %v305_v18 = vld [vmem:[%s803_s24 + $0x120] sm:$0xff] }
  0x15   : > { %400 = vmatpush.msra.mxu1 %v311_v6  ;;  %v292_v19 = vld [vmem:[%s803_s24 + $0xb8] sm:$0xff]  ;;  %439 = vmatpush.msra.mxu3 %v314_v16  ;;  %v287_v21 = vld [vmem:[%s803_s24 + $0x90] sm:$0xff]  ;;  %v310_v22 = vld [vmem:[%s803_s24 + $0x148] sm:$0xff] }
  0x16   : > { %373 = vmatpush.msra.mxu0 %v293_v8  ;;  %v312_v20 = vld [vmem:[%s803_s24 + $0x158] sm:$0xff]  ;;  %413 = vmatpush.msra.mxu2 %v294_v15  ;;  %v303_v23 = vld [vmem:[%s803_s24 + $0x110] sm:$0xff]  ;;  %v290_v24 = vld [vmem:[%s803_s24 + $0xa8] sm:$0xff] }
  0x17   : > { %401 = vmatpush.msra.mxu1 %v309_v10  ;;  %440 = vmatpush.msra.mxu3 %v312_v20  ;;  %v285_v25 = vld [vmem:[%s803_s24 + $0x80] sm:$0xff]  ;;  %v308_v26 = vld [vmem:[%s803_s24 + $0x138] sm:$0xff]  ;;  %v283_v29 = vld [vmem:[%s803_s24 + $0x70] sm:$0xff] }
  0x18   : > { %374 = vmatpush.msra.mxu0 %v291_v12  ;;  %414 = vmatpush.msra.mxu2 %v292_v19  ;;  %v301_v27 = vld [vmem:[%s803_s24 + $0x100] sm:$0xff]  ;;  %v288_v28 = vld [vmem:[%s803_s24 + $0x98] sm:$0xff]  ;;  %v716_v30 = vld [vmem:[%s803_s24 + $0x270] sm:$0xff] }
  0x19   : > { %402 = vmatpush.msra.mxu1 %v307_v14  ;;  %441 = vmatpush.msra.mxu3 %v310_v22  ;;  %v286_v31 = vld [vmem:[%s803_s24 + $0x88] sm:$0xff]  ;;  %v281_v33 = vld [vmem:[%s803_s24 + $0x60] sm:$0xff]  ;;  %v284_v35 = vld [vmem:[%s803_s24 + $0x78] sm:$0xff] }
  0x1a   : > { %375 = vmatpush.msra.mxu0 %v289_v17  ;;  %415 = vmatpush.msra.mxu2 %v290_v24  ;;  %v306_v32 = vld [vmem:[%s803_s24 + $0x128] sm:$0xff]  ;;  %v714_v34 = vld [vmem:[%s803_s24 + $0x260] sm:$0xff]  ;;  %v304_v36 = vld [vmem:[%s803_s24 + $0x118] sm:$0xff] }
  0x1b   : > { %403 = vmatpush.msra.mxu1 %v305_v18  ;;  %442 = vmatpush.msra.mxu3 %v308_v26  ;;  %v279_v37 = vld [vmem:[%s803_s24 + $0x50] sm:$0xff]  ;;  %v282_v39 = vld [vmem:[%s803_s24 + $0x68] sm:$0xff]  ;;  %v277_v41 = vld [vmem:[%s803_s24 + $0x40] sm:$0xff] }
  0x1c   : > { %376 = vmatpush.msra.mxu0 %v287_v21  ;;  %416 = vmatpush.msra.mxu2 %v288_v28  ;;  %v712_v38 = vld [vmem:[%s803_s24 + $0x250] sm:$0xff]  ;;  %v302_v40 = vld [vmem:[%s803_s24 + $0x108] sm:$0xff]  ;;  %v710_v42 = vld [vmem:[%s803_s24 + $0x240] sm:$0xff] }
  0x1d   : > { %404 = vmatpush.msra.mxu1 %v303_v23  ;;  %443 = vmatpush.msra.mxu3 %v306_v32  ;;  %v252_v43 = vld [vmem:[%s235_s27] sm:$0xf]  ;;  %v280_v44 = vld [vmem:[%s803_s24 + $0x58] sm:$0xff]  ;;  %v732_v45 = vld [vmem:[%s803_s24 + $0x2f0] sm:$0xff] }
  0x1e   : > { %377 = vmatpush.msra.mxu0 %v285_v25  ;;  %417 = vmatpush.msra.mxu2 %v286_v31  ;;  %v853_v46 = vld.sshfl [vmem:[#allocation1] sm:$0xff pattern:$0x73625140]  ;;  %v275_v47 = vld [vmem:[%s803_s24 + $0x30] sm:$0xff]  ;;  %v278_v50 = vld [vmem:[%s803_s24 + $0x48] sm:$0xff] }
  0x1f   : > { %405 = vmatpush.msra.mxu1 %v301_v27  ;;  %444 = vmatpush.msra.mxu3 %v304_v36  ;;  %v708_v48 = vld [vmem:[%s803_s24 + $0x230] sm:$0xff]  ;;  %v256_v49 = vld.sshfl [vmem:[#allocation1 + $0x8] sm:$0xff pattern:$0x73625140]  ;;  %v730_v51 = vld [vmem:[%s803_s24 + $0x2e0] sm:$0xff] }
  0x20   : > { %378 = vmatpush.msra.mxu0 %v283_v29  ;;  %418 = vmatpush.msra.mxu2 %v284_v35  ;;  %261 = vst [vmem:[#allocation1 + $0x1] ss:$4 sm:$0xff] %v252_v43  ;;  %v273_v52 = vld [vmem:[%s803_s24 + $0x20] sm:$0xff]  ;;  %v276_v54 = vld [vmem:[%s803_s24 + $0x38] sm:$0xff]  ;;  %v728_v55 = vld [vmem:[%s803_s24 + $0x2d0] sm:$0xff] }
  0x21   : > { %450 = vmatpush.msrb.mxu1 %v716_v30  ;;  %445 = vmatpush.msra.mxu3 %v302_v40  ;;  %v706_v53 = vld [vmem:[%s803_s24 + $0x220] sm:$0xff]  ;;  %v271_v56 = vld [vmem:[%s803_s24 + $0x10] sm:$0xff]  ;;  %v274_v58 = vld [vmem:[%s803_s24 + $0x28] sm:$0xff] }
  0x22   : > { %379 = vmatpush.msra.mxu0 %v281_v33  ;;  %419 = vmatpush.msra.mxu2 %v282_v39  ;;  %v704_v57 = vld [vmem:[%s803_s24 + $0x210] sm:$0xff]  ;;  %v726_v59 = vld [vmem:[%s803_s24 + $0x2c0] sm:$0xff]  ;;  %v717_v62 = vld [vmem:[%s803_s24 + $0x278] sm:$0xff] }
  0x23   : > { %451 = vmatpush.msrb.mxu1 %v714_v34  ;;  %478 = vmatpush.msrb.mxu3 %v732_v45  ;;  %v269_v60 = vld [vmem:[%s803_s24] sm:$0xff]  ;;  %v272_v63 = vld [vmem:[%s803_s24 + $0x18] sm:$0xff]  ;;  %v700_v0 = vld [vmem:[%s803_s24 + $0x1f0] sm:$0xff] }
  0x24   : > { %380 = vmatpush.msra.mxu0 %v279_v37  ;;  %420 = vmatpush.msra.mxu2 %v280_v44  ;;  %v702_v61 = vld [vmem:[%s803_s24 + $0x200] sm:$0xff]  ;;  %v715_v2 = vld [vmem:[%s803_s24 + $0x268] sm:$0xff]  ;;  %v724_v4 = vld [vmem:[%s803_s24 + $0x2b0] sm:$0xff] }
  0x25   : > { %452 = vmatpush.msrb.mxu1 %v712_v38  ;;  %479 = vmatpush.msrb.mxu3 %v730_v51  ;;  %v698_v5 = vld [vmem:[%s803_s24 + $0x1e0] sm:$0xff]  ;;  %v270_v6 = vld [vmem:[%s803_s24 + $0x8] sm:$0xff]  ;;  %v713_v7 = vld [vmem:[%s803_s24 + $0x258] sm:$0xff] }
  0x26   : > { %381 = vmatpush.msra.mxu0 %v277_v41  ;;  %421 = vmatpush.msra.mxu2 %v278_v50  ;;  %v722_v8 = vld [vmem:[%s803_s24 + $0x2a0] sm:$0xff]  ;;  %v696_v9 = vld [vmem:[%s803_s24 + $0x1d0] sm:$0xff]  ;;  %v733_v10 = vld [vmem:[%s803_s24 + $0x2f8] sm:$0xff] }
  0x27   : > { %453 = vmatpush.msrb.mxu1 %v710_v42  ;;  %480 = vmatpush.msrb.mxu3 %v728_v55  ;;  %v263_v1 = vld.sshfl [vmem:[#allocation1 + $0x8] sm:$0xff pattern:$0x73625140]  ;;  %v720_v12 = vld [vmem:[%s803_s24 + $0x290] sm:$0xff]  ;;  %v694_v13 = vld [vmem:[%s803_s24 + $0x1c0] sm:$0xff] }
  0x28   : > { %382 = vmatpush.msra.mxu0 %v275_v47  ;;  %422 = vmatpush.msra.mxu2 %v276_v54  ;;  %v874_v3 = vsel %vm266_vm0, %v256_v49, %v263_v1  ;;  %v711_v11 = vld [vmem:[%s803_s24 + $0x248] sm:$0xff]  ;;  %v709_v15 = vld [vmem:[%s803_s24 + $0x238] sm:$0xff]  ;;  %v692_v16 = vld [vmem:[%s803_s24 + $0x1b0] sm:$0xff] }
  0x29   : > { %454 = vmatpush.msrb.mxu1 %v708_v48  ;;  %481 = vmatpush.msrb.mxu3 %v726_v59  ;;  %v731_v14 = vld [vmem:[%s803_s24 + $0x2e8] sm:$0xff]  ;;  %v718_v17 = vld [vmem:[%s803_s24 + $0x280] sm:$0xff]  ;;  %v729_v19 = vld [vmem:[%s803_s24 + $0x2d8] sm:$0xff] }
  0x2a   : > { %383 = vmatpush.msra.mxu0 %v273_v52  ;;  %423 = vmatpush.msra.mxu2 %v274_v58  ;;  %v707_v18 = vld [vmem:[%s803_s24 + $0x228] sm:$0xff]  ;;  %v262_v20 = vld.sshfl [vmem:[#allocation1] sm:$0xff pattern:$0x73625140]  ;;  %v705_v22 = vld [vmem:[%s803_s24 + $0x218] sm:$0xff] }
  0x2b   : > { %455 = vmatpush.msrb.mxu1 %v706_v53  ;;  %735 = vmatmul.msk.f32.vlgmr.msra.gmra.mxu3 %vm366_vm1, %v874_v3  ;;  %v690_v21 = vld [vmem:[%s803_s24 + $0x1a0] sm:$0xff]  ;;  %v727_v23 = vld [vmem:[%s803_s24 + $0x2c8] sm:$0xff]  ;;  %v267_v24 = vsel %vm266_vm0, %v853_v46, %v262_v20  ;;  %v688_v25 = vld [vmem:[%s803_s24 + $0x190] sm:$0xff] }
  0x2c   : > { %384 = vmatpush.msra.mxu0 %v271_v56  ;;  %424 = vmatpush.msra.mxu2 %v272_v63  ;;  %v703_v26 = vld [vmem:[%s803_s24 + $0x208] sm:$0xff]  ;;  %v725_v27 = vld [vmem:[%s803_s24 + $0x2b8] sm:$0xff]  ;;  %v686_v28 = vld [vmem:[%s803_s24 + $0x180] sm:$0xff] }
  0x2d   : > { %456 = vmatpush.msrb.mxu1 %v704_v57  ;;  %482 = vmatpush.msrb.mxu3 %v724_v4  ;;  %v701_v29 = vld [vmem:[%s803_s24 + $0x1f8] sm:$0xff]  ;;  %v723_v30 = vld [vmem:[%s803_s24 + $0x2a8] sm:$0xff] }
  0x2e   : > { %385 = vmatpush.msra.mxu0 %v269_v60  ;;  %425 = vmatpush.msra.mxu2 %v270_v6  ;;  %v699_v31 = vld [vmem:[%s803_s24 + $0x1e8] sm:$0xff]  ;;  %v721_v32 = vld [vmem:[%s803_s24 + $0x298] sm:$0xff] }
  0x2f   : > { %457 = vmatpush.msrb.mxu1 %v702_v61  ;;  %483 = vmatpush.msrb.mxu3 %v722_v8  ;;  %v697_v33 = vld [vmem:[%s803_s24 + $0x1d8] sm:$0xff]  ;;  %v719_v34 = vld [vmem:[%s803_s24 + $0x288] sm:$0xff] }
  0x30   : > { %490 = vmatpush.msrb.mxu0 %v717_v62  ;;  %518 = vmatpush.msrb.mxu2 %v733_v10  ;;  %v695_v35 = vld [vmem:[%s803_s24 + $0x1c8] sm:$0xff]  ;;  %v693_v36 = vld [vmem:[%s803_s24 + $0x1b8] sm:$0xff] }
  0x31   : > { %458 = vmatpush.msrb.mxu1 %v700_v0  ;;  %484 = vmatpush.msrb.mxu3 %v720_v12  ;;  %v691_v37 = vld [vmem:[%s803_s24 + $0x1a8] sm:$0xff]  ;;  %v689_v38 = vld [vmem:[%s803_s24 + $0x198] sm:$0xff] }
  0x32   : > { %491 = vmatpush.msrb.mxu0 %v715_v2  ;;  %519 = vmatpush.msrb.mxu2 %v731_v14  ;;  %v687_v39 = vld [vmem:[%s803_s24 + $0x188] sm:$0xff] }
  0x33   : > { %459 = vmatpush.msrb.mxu1 %v698_v5  ;;  %485 = vmatpush.msrb.mxu3 %v718_v17 }
  0x34   : > { %492 = vmatpush.msrb.mxu0 %v713_v7  ;;  %734 = vmatmul.msk.f32.vlgmr.msra.gmra.mxu1 %vm366_vm1, %v874_v3 }
  0x35   : > { %460 = vmatpush.msrb.mxu1 %v696_v9  ;;  %520 = vmatpush.msrb.mxu2 %v729_v19 }
  0x36   : > { %493 = vmatpush.msrb.mxu0 %v711_v11  ;;  %736 = vmatmul.msk.f32.vlgmr.msrb.gmra.mxu3 %vm366_vm1, %v874_v3 }
  0x37   : > { %461 = vmatpush.msrb.mxu1 %v694_v13  ;;  %521 = vmatpush.msrb.mxu2 %v727_v23 }
  0x38   : > { %494 = vmatpush.msrb.mxu0 %v709_v15  ;;  %426 = vmatmul.f32.vlgmr.msra.gmra.mxu2 %v267_v24 }
  0x39   : > { %462 = vmatpush.msrb.mxu1 %v692_v16  ;;  %522 = vmatpush.msrb.mxu2 %v725_v27 }
  0x3a   : > { %495 = vmatpush.msrb.mxu0 %v707_v18 }
  0x3b   : > { %463 = vmatpush.msrb.mxu1 %v690_v21  ;;  %386 = vmatmul.f32.vlgmr.msra.gmra.mxu0 %v267_v24 }
  0x3c   : > { %496 = vmatpush.msrb.mxu0 %v705_v22  ;;  %523 = vmatpush.msrb.mxu2 %v723_v30 }
  0x3d   : > { %464 = vmatpush.msrb.mxu1 %v688_v25 }
  0x3e   : > { %497 = vmatpush.msrb.mxu0 %v703_v26  ;;  %524 = vmatpush.msrb.mxu2 %v721_v32 }
  0x3f   : > { %465 = vmatpush.msrb.mxu1 %v686_v28 }
  0x40   : > { %498 = vmatpush.msrb.mxu0 %v701_v29  ;;  %466 = vmatmul.f32.vlgmr.msrb.gmra.mxu1 %v267_v24 }
  0x41   : > { %525 = vmatpush.msrb.mxu2 %v719_v34 }
  0x42   : > { %499 = vmatpush.msrb.mxu0 %v699_v31  ;;  %737 = vmatmul.msk.f32.vlgmr.msrb.gmra.mxu2 %vm366_vm1, %v874_v3 }
  0x44   : > { %500 = vmatpush.msrb.mxu0 %v697_v33 }
  0x46   : > { %501 = vmatpush.msrb.mxu0 %v695_v35 }
  0x48   : > { %502 = vmatpush.msrb.mxu0 %v693_v36 }
  0x4a   : > { %503 = vmatpush.msrb.mxu0 %v691_v37 }
  0x4c   : > { %504 = vmatpush.msrb.mxu0 %v689_v38 }
  0x4e   : > { %505 = vmatpush.msrb.mxu0 %v687_v39 }
  0x4f   : > { %506 = vmatmul.f32.vlgmr.msrb.gmra.mxu0 %v267_v24 }
  0xae   : > { %v447_v41 = vpop.f32.mrf.mxu3 }
  0xb1   : > { %v407_v40 = vpop.f32.mrf.mxu1 }
  0xb8   : > { %v387_v43 = vpop.f32.mrf.mxu0 }
  0xb9   : > { %v487_v45 = vpop.f32.mrf.mxu3  ;;  %v408_v46 = vadd.f32 %v407_v40, %v387_v43 }
  0xbb   : > { %v427_v42 = vpop.f32.mrf.mxu2  ;;  %v548_v51 = vrot.slane %v408_v46, 2 }
  0xbc   : > { %v448_v47 = vadd.f32 %v447_v41, %v427_v42 }
  0xbd   : > { %v467_v44 = vpop.f32.mrf.mxu1 }
  0xbe   : > { %v488_v49 = vadd.f32 %v487_v45, %v467_v44  ;;  %v549_v52 = vrot.slane %v448_v47, 2 }
  0xc0   : > { %v532_v54 = vrot.slane %v488_v49, 2  ;;  %v552_v57 = vadd.f32 %v548_v51, %v488_v49 }
  0xc2   : > { %v536_v60 = vsub.f32 %v408_v46, %v532_v54 }
  0xc5   : > { %v527_v48 = vpop.f32.mrf.mxu2 }
  0xcc   : > { %v507_v50 = vpop.f32.mrf.mxu0 }
  0xcd   : > { %v528_v53 = vadd.f32 %v527_v48, %v507_v50 }
  0xcf   : > { %v533_v55 = vrot.slane %v528_v53, 2  ;;  %v553_v56 = vadd.f32 %v549_v52, %v528_v53 }
  0xd1   : > { %v537_v58 = vsub.f32 %v448_v47, %v533_v55  ;;  %v556_v59 = vrot.slane %v553_v56, 6 }
  0xd3   : > { %v540_v61 = vrot.slane %v537_v58, 6  ;;  %v557_v62 = vsel %vm266_vm0, %v552_v57, %v556_v59 }
  0xd4   : > { %559 = vst.msk [vmem:[%s250_s30] sm:$0xf] %vm544_vm3, %v557_v62 }
  0xd5   : > { %v541_v63 = vsel %vm266_vm0, %v536_v60, %v540_v61 }
  0xd6   : > { %545 = vst.msk [vmem:[%s245_s7] sm:$0xf] %vm544_vm3, %v541_v63 }
  0xd7 PF: > { %s15_s15 = sadd.s32 1, %s759_s15  }
  0xd8   : > { %p12_p4 = scmp.ge.s32.totalorder %s15_s15, 14  }
  0xda   :  { %14 = sbr.rel (!%p12_p4) target bundleno = 1 (0x1), region = 82 }

// kernel: fno2d_forward.12
= control target key start
LH: loop header
LB: loop body
LE: loop exit
PB: predicated region body
PF: predicated region fallthrough
CT: control target
= control target key end

     0   :  { %s1075_s15 = smov 0   ;;  %s1077_s16 = smov 0   ;;  %s1390_s0 = inlined_call_operand.vmem [shape: f32[32,1152], index: 0, kind: input, shape index: {}]   ;;  %s1391_s1 = inlined_call_operand.vmem [shape: f32[32,32], index: 1, kind: input, shape index: {}]   ;;  %s1392_s2 = inlined_call_operand.vmem [shape: f32[32,1], index: 2, kind: input, shape index: {}]   ;;  %s1393_s3 = inlined_call_operand.vmem [shape: f32[32,1152], index: 3, kind: input, shape index: {}]   ;;  %s1394_s4 = inlined_call_operand.vmem [shape: f32[32,1152], index: 4, kind: output, shape index: {}]  }
   0x1   :  { %s1079_s17 = smov 0  }
   0x2 LB: > { %s910_s18 = sadd.s32 4294967295, %s1047_s17   ;;  %s1092_s19 = sadd.s32 1, %s1047_s17   ;;  %s1047_s17 = sphi %s1079_s17, %s1399_s17   ;;  %s1043_s16 = sphi %s1077_s16, %s1398_s16   ;;  %s1039_s15 = sphi %s1075_s15, %s1397_s15  }
   0x3   : > { %s18_s20 = ssub.s32 %s1047_s17, %s1092_s19  ;;  %s21_s21 = sadd.s32 1, %s1043_s16 }
   0x4   : > { %p19_p0 = scmp.eq.s32.totalorder %s18_s20, 0  ;;  %p28_p1 = scmp.ne.s32.totalorder %s1043_s16, %s1039_s15 }
   0x5   : > { %p29_p2 = scmp.eq.s32.totalorder %s1047_s17, 0  ;;  %p126_p3 = scmp.eq.s32.totalorder %s910_s18, 2 }
   0x6   : > { %s1103_s22 = scalar_select %p19_p0, %s1043_s16, %s21_s21  }
   0x7   : > { %p1105_p4 = por %p29_p2, %p28_p1  ;;  %p1109_p5 = por %p126_p3, %p28_p1 }
   0x8   : > { %p913_p6 = scmp.ge.s32.totalorder %s1047_s17, 3 }
   0xa   : > { %154 = sbr.rel (%p913_p6) target bundleno = 49 (0x31), region = 24 }
   0xf   : > { %157 = sbr.rel (!%p1105_p4) target bundleno = 32 (0x20), region = 28  ;;  %s159_s25 = sand.u32 (%p1105_p4), 1, %s1043_s16  }
  0x10   : > { %s932_s26 = smul.u32 (%p1105_p4), 24, %s1047_s17 }
  0x11   : > { %s947_s27 = smul.u32 (%p1105_p4), 96, %s159_s25 }
  0x12   : > { %s164_s30 = scalar_lea.vmem (%p1105_p4), %s1390_s0, %s932_s26 }
  0x13   : > { %v177_v0 = vld [vmem:[%s164_s30] sm:$0xff] (%p1105_p4)  ;;  %v179_v1 = vld [vmem:[%s164_s30 + $0x8] sm:$0xff] (%p1105_p4)  ;;  %v181_v2 = vld [vmem:[%s164_s30 + $0x10] sm:$0xff] (%p1105_p4)  ;;  %s161_s5 = scalar_lea.vmem (%p1105_p4), [#allocation2], %s947_s27 }
  0x14   : > { %178 = vst [vmem:[%s161_s5] sm:$0xff] %v177_v0  ;;  %v183_v3 = vld [vmem:[%s164_s30 + $0x48] sm:$0xff]  ;;  %v185_v4 = vld [vmem:[%s164_s30 + $0x50] sm:$0xff]  ;;  %v187_v5 = vld [vmem:[%s164_s30 + $0x58] sm:$0xff] }
  0x15   : > { %180 = vst [vmem:[%s161_s5 + $0x8] sm:$0xff] %v179_v1  ;;  %v189_v6 = vld [vmem:[%s164_s30 + $0x90] sm:$0xff]  ;;  %v191_v7 = vld [vmem:[%s164_s30 + $0x98] sm:$0xff]  ;;  %v193_v8 = vld [vmem:[%s164_s30 + $0xa0] sm:$0xff] }
  0x16   : > { %182 = vst [vmem:[%s161_s5 + $0x10] sm:$0xff] %v181_v2  ;;  %v195_v9 = vld [vmem:[%s164_s30 + $0xd8] sm:$0xff]  ;;  %v197_v10 = vld [vmem:[%s164_s30 + $0xe0] sm:$0xff]  ;;  %v199_v11 = vld [vmem:[%s164_s30 + $0xe8] sm:$0xff] }
  0x17   : > { %184 = vst [vmem:[%s161_s5 + $0x18] sm:$0xff] %v183_v3 }
  0x18   : > { %186 = vst [vmem:[%s161_s5 + $0x20] sm:$0xff] %v185_v4 }
  0x19   : > { %188 = vst [vmem:[%s161_s5 + $0x28] sm:$0xff] %v187_v5 }
  0x1a   : > { %190 = vst [vmem:[%s161_s5 + $0x30] sm:$0xff] %v189_v6 }
  0x1b   : > { %192 = vst [vmem:[%s161_s5 + $0x38] sm:$0xff] %v191_v7 }
  0x1c   : > { %194 = vst [vmem:[%s161_s5 + $0x40] sm:$0xff] %v193_v8 }
  0x1d   : > { %196 = vst [vmem:[%s161_s5 + $0x48] sm:$0xff] %v195_v9 }
  0x1e   : > { %198 = vst [vmem:[%s161_s5 + $0x50] sm:$0xff] %v197_v10 }
  0x1f   : > { %200 = vst [vmem:[%s161_s5 + $0x58] sm:$0xff] %v199_v11 }
  0x20 PF: > { %206 = sbr.rel (!%p1105_p4) target bundleno = 49 (0x31), region = 51  ;;  %s208_s6 = sand.u32 (%p1105_p4), 1, %s1043_s16  }
  0x21   : > { %s933_s7 = smul.u32 (%p1105_p4), 24, %s1047_s17 }
  0x22   : > { %s948_s8 = smul.u32 (%p1105_p4), 96, %s208_s6 }
  0x23   : > { %s213_s11 = scalar_lea.vmem (%p1105_p4), %s1393_s3, %s933_s7 }
  0x24   : > { %v226_v12 = vld [vmem:[%s213_s11] sm:$0xff] (%p1105_p4)  ;;  %v228_v13 = vld [vmem:[%s213_s11 + $0x8] sm:$0xff] (%p1105_p4)  ;;  %v230_v14 = vld [vmem:[%s213_s11 + $0x10] sm:$0xff] (%p1105_p4)  ;;  %s210_s12 = scalar_lea.vmem (%p1105_p4), [#allocation3], %s948_s8 }
  0x25   : > { %227 = vst [vmem:[%s210_s12] sm:$0xff] %v226_v12  ;;  %v232_v15 = vld [vmem:[%s213_s11 + $0x48] sm:$0xff]  ;;  %v234_v16 = vld [vmem:[%s213_s11 + $0x50] sm:$0xff]  ;;  %v236_v17 = vld [vmem:[%s213_s11 + $0x58] sm:$0xff] }
  0x26   : > { %229 = vst [vmem:[%s210_s12 + $0x8] sm:$0xff] %v228_v13  ;;  %v238_v18 = vld [vmem:[%s213_s11 + $0x90] sm:$0xff]  ;;  %v240_v19 = vld [vmem:[%s213_s11 + $0x98] sm:$0xff]  ;;  %v242_v20 = vld [vmem:[%s213_s11 + $0xa0] sm:$0xff] }
  0x27   : > { %231 = vst [vmem:[%s210_s12 + $0x10] sm:$0xff] %v230_v14  ;;  %v244_v21 = vld [vmem:[%s213_s11 + $0xd8] sm:$0xff]  ;;  %v246_v22 = vld [vmem:[%s213_s11 + $0xe0] sm:$0xff]  ;;  %v248_v23 = vld [vmem:[%s213_s11 + $0xe8] sm:$0xff] }
  0x28   : > { %233 = vst [vmem:[%s210_s12 + $0x18] sm:$0xff] %v232_v15 }
  0x29   : > { %235 = vst [vmem:[%s210_s12 + $0x20] sm:$0xff] %v234_v16 }
  0x2a   : > { %237 = vst [vmem:[%s210_s12 + $0x28] sm:$0xff] %v236_v17 }
  0x2b   : > { %239 = vst [vmem:[%s210_s12 + $0x30] sm:$0xff] %v238_v18 }
  0x2c   : > { %241 = vst [vmem:[%s210_s12 + $0x38] sm:$0xff] %v240_v19 }
  0x2d   : > { %243 = vst [vmem:[%s210_s12 + $0x40] sm:$0xff] %v242_v20 }
  0x2e   : > { %245 = vst [vmem:[%s210_s12 + $0x48] sm:$0xff] %v244_v21 }
  0x2f   : > { %247 = vst [vmem:[%s210_s12 + $0x50] sm:$0xff] %v246_v22 }
  0x30   : > { %249 = vst [vmem:[%s210_s12 + $0x58] sm:$0xff] %v248_v23 }
  0x31 PF: > { %p916_p7 = scmp.ge.s32.totalorder %s1047_s17, 1  ;;  %p254_p8 = scmp.lt.s32.totalorder %s1047_s17, 4 }
  0x33   : > { %p255_p9 = pnand %p916_p7, %p254_p8 }
  0x34   : > { %s261_s13 = sand.u32 (!%p255_p9), 1, %s1039_s15  }
  0x35   : > { %258 = sbr.rel (%p255_p9) target bundleno = 310 (0x136), region = 74 }
  0x36   : > { %s1134_s21 = smul.u32 (!%p255_p9), 96, %s261_s13 }
  0x38   : > { %s263_s26 = scalar_lea.vmem (!%p255_p9), [#allocation2], %s1134_s21  ;;  %s1173_s12 = scalar_lea.vmem (!%p255_p9), [#allocation3], %s1134_s21 }
  0x39   : > { %s1293_s13 = scalar_lea.vmem (!%p255_p9), [#allocation4], %s1134_s21 }
  0x3a   : > { %v315_v24 = vld [vmem:[%s1392_s2] sm:$0xff]  ;;  %v1049_v25 = vmov 0   ;;  %v317_v26 = vld [vmem:[%s1392_s2 + $0x10] sm:$0xff]  ;;  %v312_v27 = vld [vmem:[%s263_s26 + $0x48] sm:$0xff]  ;;  %vm339_vm0 = vcmask 261120   ;;  %s934_s14 = smul.u32 (%p1109_p5), 24, %s910_s18 }
  0x3b   : > { %975 = vset.pattern.permute.xlu0 %v1049_v25  ;;  %976 = vset.pattern.permute.xlu1 %v1049_v25  ;;  %v313_v28 = vld [vmem:[%s263_s26 + $0x50] sm:$0xff]  ;;  %v314_v29 = vld [vmem:[%s263_s26 + $0x58] sm:$0xff]  ;;  %v311_v32 = vld [vmem:[%s263_s26 + $0x40] sm:$0xff] }
  0x3c   : > { %321 = vperm.xlu0 %975, %v315_v24   ;;  %331 = vperm.xlu1 %976, %v317_v26   ;;  %v309_v30 = vld [vmem:[%s263_s26 + $0x30] sm:$0xff]  ;;  %v310_v31 = vld [vmem:[%s263_s26 + $0x38] sm:$0xff]  ;;  %v307_v34 = vld [vmem:[%s263_s26 + $0x20] sm:$0xff]  ;;  %s796_s24 = scalar_lea.vmem (%p1109_p5), %s1394_s4, %s934_s14 }
  0x3d   : > { %364 = vmatpush.msra.mxu0 %v312_v27  ;;  %935 = vmatpush.msra.mxu3 %v312_v27  ;;  %v306_v33 = vld [vmem:[%s263_s26 + $0x18] sm:$0xff]  ;;  %v308_v35 = vld [vmem:[%s263_s26 + $0x28] sm:$0xff]  ;;  %v303_v36 = vld [vmem:[%s263_s26] sm:$0xff] }
  0x3e   : > { %939 = vmatpush.msra.mxu1 %v313_v28  ;;  %943 = vmatpush.msra.mxu2 %v314_v29  ;;  %v304_v37 = vld [vmem:[%s263_s26 + $0x8] sm:$0xff]  ;;  %v305_v38 = vld [vmem:[%s263_s26 + $0x10] sm:$0xff]  ;;  %v299_v39 = vld [vmem:[%s1391_s1] sm:$0xff] }
  0x3f   : > { %365 = vmatpush.msra.mxu0 %v309_v30  ;;  %936 = vmatpush.msra.mxu3 %v309_v30  ;;  %v300_v40 = vld [vmem:[%s1391_s1 + $0x8] sm:$0xff]  ;;  %v318_v42 = vld [vmem:[%s1392_s2 + $0x18] sm:$0xff]  ;;  %v301_v43 = vld [vmem:[%s1391_s1 + $0x10] sm:$0xff] }
  0x40   : > { %940 = vmatpush.msra.mxu1 %v310_v31  ;;  %944 = vmatpush.msra.mxu2 %v311_v32  ;;  %v316_v41 = vld [vmem:[%s1392_s2 + $0x8] sm:$0xff]  ;;  %v302_v44 = vld [vmem:[%s1391_s1 + $0x18] sm:$0xff]  ;;  %v439_v48 = vld [vmem:[%s1173_s12] sm:$0xff] }
  0x41   : > { %366 = vmatpush.msra.mxu0 %v306_v33  ;;  %937 = vmatpush.msra.mxu3 %v306_v33  ;;  %v443_v51 = vld [vmem:[%s1173_s12 + $0x20] sm:$0xff]  ;;  %v442_v58 = vld [vmem:[%s1173_s12 + $0x18] sm:$0xff]  ;;  %v444_v62 = vld [vmem:[%s1173_s12 + $0x28] sm:$0xff] }
  0x42   : > { %941 = vmatpush.msra.mxu1 %v307_v34  ;;  %945 = vmatpush.msra.mxu2 %v308_v35  ;;  %v440_v13 = vld [vmem:[%s1173_s12 + $0x8] sm:$0xff]  ;;  %v446_v23 = vld [vmem:[%s1173_s12 + $0x38] sm:$0xff] }
  0x43   : > { %367 = vmatpush.msra.mxu0 %v303_v36  ;;  %938 = vmatpush.msra.mxu3 %v303_v36 }
  0x44   : > { %942 = vmatpush.msra.mxu1 %v304_v37  ;;  %946 = vmatpush.msra.mxu2 %v305_v38 }
  0x45   : > { %917 = vmatmul.msk.f32.vlgmr.msra.gmra.mxu0 %vm339_vm0, %v299_v39  ;;  %918 = vmatmul.msk.f32.vlgmr.msra.gmra.mxu3 %vm339_vm0, %v300_v40 }
  0x46   : > { %922 = vmatmul.msk.f32.vlgmr.msra.gmra.mxu1 %vm339_vm0, %v300_v40  ;;  %926 = vmatmul.msk.f32.vlgmr.msra.gmra.mxu2 %vm339_vm0, %v300_v40 }
  0x47   : > { %393 = vmatpush.msrb.mxu0 %v313_v28  ;;  %326 = vperm.xlu0 %975, %v316_v41  }
  0x48   : > { %336 = vperm.xlu1 %976, %v318_v42  }
  0x49   : > { %394 = vmatpush.msrb.mxu0 %v310_v31 }
  0x4b   : > { %395 = vmatpush.msrb.mxu0 %v307_v34 }
  0x4d   : > { %396 = vmatpush.msrb.mxu0 %v304_v37  ;;  %919 = vmatmul.msk.f32.gmra.mxu3 %vm339_vm0, %v301_v43 }
  0x4e   : > { %921 = vmatmul.msk.f32.vlgmr.msrb.gmra.mxu0 %vm339_vm0, %v299_v39  ;;  %923 = vmatmul.msk.f32.gmra.mxu1 %vm339_vm0, %v301_v43 }
  0x4f   : > { %927 = vmatmul.msk.f32.gmra.mxu2 %vm339_vm0, %v301_v43  ;;  %422 = vmatpush.msra.mxu0 %v314_v29 }
  0x51   : > { %423 = vmatpush.msra.mxu0 %v311_v32 }
  0x53   : > { %424 = vmatpush.msra.mxu0 %v308_v35 }
  0x55   : > { %425 = vmatpush.msra.mxu0 %v305_v38  ;;  %920 = vmatmul.msk.f32.gmra.mxu3 %vm339_vm0, %v302_v44 }
  0x56   : > { %924 = vmatmul.msk.f32.gmra.mxu1 %vm339_vm0, %v302_v44  ;;  %925 = vmatmul.msk.f32.vlgmr.msra.gmra.mxu0 %vm339_vm0, %v299_v39 }
  0x57   : > { %928 = vmatmul.msk.f32.gmra.mxu2 %vm339_vm0, %v302_v44  ;;  %v445_v44 = vld [vmem:[%s1173_s12 + $0x30] sm:$0xff] }
  0xae   : > { %v1170_v45 = vpop.permute.xlu0 %321  ;;  %v1194_v19 = vpop.permute.xlu1 %331 }
  0xb9   : > { %v327_v46 = vpop.permute.xlu0 %326 }
  0xc2   : > { %v369_v47 = vpop.f32.mrf.mxu0 }
  0xc3   : > { %v370_v49 = vadd.f32 %v369_v47, %v1170_v45  ;;  %v401_v50 = vpop.f32.mrf.mxu1 }
  0xc4   : > { %v402_v52 = vadd.f32 %v401_v50, %v327_v46 }
  0xc5   : > { %v1178_v53 = vadd.f32 %v439_v48, %v370_v49 }
  0xc6   : > { %v1180_v54 = vadd.f32 %v443_v51, %v402_v52 }
  0xc7   : > { %v463_v55 = vand.u32 2147483647, %v1178_v53  ;;  %v1201_v27 = vmul.f32 0.5, %v1178_v53  ;;  %vm703_vm1 = vcmp.lt.f32.partialorder %v1178_v53, 0.0 }
  0xc8   : > { %v467_v56 = vand.u32 2147483647, %v1180_v54  ;;  %v372_v57 = vpop.f32.mrf.mxu3  ;;  %v1204_v28 = vmul.f32 0.5, %v1180_v54  ;;  %vm707_vm2 = vcmp.lt.f32.partialorder %v1180_v54, 0.0 }
  0xc9   : > { %v475_v59 = vmul.f32 0.70710677, %v463_v55  ;;  %v373_v60 = vadd.f32 %v372_v57, %v327_v46  ;;  %v430_v61 = vpop.f32.mrf.mxu2 }
  0xca   : > { %v479_v63 = vmul.f32 0.70710677, %v467_v56  ;;  %v431_v0 = vadd.f32 %v430_v61, %v327_v46 }
  0xcb   : > { %v487_v1 = vmul.f32 0.3275911, %v475_v59  ;;  %v1186_v2 = vadd.f32 %v442_v58, %v373_v60  ;;  %v398_v3 = vpop.f32.mrf.mxu0  ;;  %v631_v4 = vsub.f32 0.0, %v475_v59  ;;  %v404_v15 = vpop.f32.mrf.mxu1 }
  0xcc   : > { %v491_v5 = vmul.f32 0.3275911, %v479_v63  ;;  %v635_v6 = vsub.f32 0.0, %v479_v63  ;;  %v1188_v7 = vadd.f32 %v444_v62, %v431_v0  ;;  %v399_v10 = vadd.f32 %v398_v3, %v1170_v45 }
  0xcd   : > { %v499_v8 = vadd.f32 1.0, %v487_v1  ;;  %v466_v9 = vand.u32 2147483647, %v1186_v2  ;;  %v643_v16 = vmul.f32 %v631_v4, %v475_v59  ;;  %v405_v26 = vadd.f32 %v404_v15, %v1194_v19 }
  0xce   : > { %v503_v11 = vadd.f32 1.0, %v491_v5  ;;  %v468_v12 = vand.u32 2147483647, %v1188_v7  ;;  %v647_v17 = vmul.f32 %v635_v6, %v479_v63  ;;  %v1196_v22 = vadd.f32 %v440_v13, %v399_v10 }
  0xcf   : > { %977 = vrcp.f32 %v499_v8  ;;  %v478_v14 = vmul.f32 0.70710677, %v466_v9  ;;  %v655_v32 = vmul.f32 1.442695, %v643_v16  ;;  %v1207_v35 = vadd.f32 %v446_v23, %v405_v26  ;;  %v447_v23 = vld [vmem:[%s1173_s12 + $0x40] sm:$0xff] }
  0xd0   : > { %979 = vrcp.f32 %v503_v11  ;;  %v480_v18 = vmul.f32 0.70710677, %v468_v12  ;;  %v464_v30 = vand.u32 2147483647, %v1196_v22  ;;  %v375_v31 = vpop.f32.mrf.mxu3  ;;  %v663_v33 = vmul.f32 1.442695, %v647_v17 }
  0xd1   : > { %v490_v20 = vmul.f32 0.3275911, %v478_v14  ;;  %v634_v21 = vsub.f32 0.0, %v478_v14  ;;  %v470_v42 = vand.u32 2147483647, %v1207_v35  ;;  %v376_v43 = vadd.f32 %v375_v31, %v1194_v19 }
  0xd2   : > { %v492_v24 = vmul.f32 0.3275911, %v480_v18  ;;  %v636_v25 = vsub.f32 0.0, %v480_v18  ;;  %v476_v39 = vmul.f32 0.70710677, %v464_v30  ;;  %v1219_v47 = vmul.f32 0.5, %v1186_v2  ;;  %v433_v4 = vpop.f32.mrf.mxu2 }
  0xd3   : > { %v502_v29 = vadd.f32 1.0, %v490_v20  ;;  %v646_v37 = vmul.f32 %v634_v21, %v478_v14  ;;  %v1222_v51 = vmul.f32 0.5, %v1188_v7  ;;  %v482_v52 = vmul.f32 0.70710677, %v470_v42 }
  0xd4   : > { %v504_v34 = vadd.f32 1.0, %v492_v24  ;;  %v648_v38 = vmul.f32 %v636_v25, %v480_v18  ;;  %v488_v48 = vmul.f32 0.3275911, %v476_v39  ;;  %v632_v49 = vsub.f32 0.0, %v476_v39 }
  0xd5   : > { %v1209_v36 = vpop.eup %977  ;;  %981 = vrcp.f32 %v502_v29  ;;  %v661_v56 = vmul.f32 1.442695, %v646_v37  ;;  %v494_v61 = vmul.f32 0.3275911, %v482_v52  ;;  %v1225_v62 = vadd.f32 %v445_v44, %v376_v43 }
  0xd6   : > { %v1211_v40 = vpop.eup %979  ;;  %v523_v41 = vmul.f32 1.0614054, %v1209_v36  ;;  %983 = vrcp.f32 %v504_v34  ;;  %v500_v57 = vadd.f32 1.0, %v488_v48  ;;  %v644_v58 = vmul.f32 %v632_v49, %v476_v39 }
  0xd7   : > { %v527_v46 = vmul.f32 1.0614054, %v1211_v40  ;;  %985 = vpow2.f32 %v655_v32  ;;  %v665_v60 = vmul.f32 1.442695, %v648_v38  ;;  %v638_v3 = vsub.f32 0.0, %v482_v52 }
  0xd8   : > { %v535_v50 = vadd.f32 -1.4531521, %v523_v41  ;;  %987 = vrcp.f32 %v500_v57  ;;  %v657_v1 = vmul.f32 1.442695, %v644_v58  ;;  %v506_v9 = vadd.f32 1.0, %v494_v61 }
  0xd9   : > { %v539_v55 = vadd.f32 -1.4531521, %v527_v46  ;;  %989 = vpow2.f32 %v663_v33  ;;  %v469_v12 = vand.u32 2147483647, %v1225_v62  ;;  %v434_v16 = vadd.f32 %v433_v4, %v1194_v19 }
  0xda   : > { %v547_v59 = vmul.f32 %v1209_v36, %v535_v50  ;;  %991 = vpow2.f32 %v661_v56  ;;  %v650_v20 = vmul.f32 %v638_v3, %v482_v52  ;;  %v1241_v26 = vmul.f32 0.5, %v1196_v22 }
  0xdb   : > { %v1227_v63 = vpop.eup %981  ;;  %v551_v0 = vmul.f32 %v1211_v40, %v539_v55  ;;  %993 = vrcp.f32 %v506_v9  ;;  %v481_v21 = vmul.f32 0.70710677, %v469_v12  ;;  %v1248_v38 = vadd.f32 %v447_v23, %v434_v16 }
  0xdc   : > { %v1230_v5 = vpop.eup %983  ;;  %v559_v6 = vadd.f32 1.4214138, %v547_v59  ;;  %v526_v8 = vmul.f32 1.0614054, %v1227_v63  ;;  %995 = vpow2.f32 %v665_v60  ;;  %v669_v43 = vmul.f32 1.442695, %v650_v20 }
  0xdd   : > { %v563_v10 = vadd.f32 1.4214138, %v551_v0  ;;  %v528_v11 = vmul.f32 1.0614054, %v1230_v5  ;;  %v986_v13 = vpop.eup %985  ;;  %997 = vpow2.f32 %v657_v1  ;;  %v493_v19 = vmul.f32 0.3275911, %v481_v21 }
  0xde   : > { %v571_v14 = vmul.f32 %v1209_v36, %v559_v6  ;;  %v538_v15 = vadd.f32 -1.4531521, %v526_v8  ;;  %v1243_v29 = vpop.eup %987  ;;  %v471_v52 = vand.u32 2147483647, %v1248_v38  ;;  %v637_v0 = vsub.f32 0.0, %v481_v21 }
  0xdf   : > { %v575_v17 = vmul.f32 %v1211_v40, %v563_v10  ;;  %v540_v18 = vadd.f32 -1.4531521, %v528_v11  ;;  %v990_v32 = vpop.eup %989  ;;  %v524_v37 = vmul.f32 1.0614054, %v1243_v29  ;;  %v505_v44 = vadd.f32 1.0, %v493_v19 }
  0xe0   : > { %v583_v24 = vadd.f32 -0.28449672, %v571_v14  ;;  %v550_v25 = vmul.f32 %v1227_v63, %v538_v15  ;;  %v992_v39 = vpop.eup %991  ;;  %v1264_v8 = vmul.f32 0.70710677, %v471_v52  ;;  %vm706_vm3 = vcmp.lt.f32.partialorder %v1186_v2, 0.0  ;;  %v449_v2 = vld [vmem:[%s1173_s12 + $0x50] sm:$0xff] }
  0xe1   : > { %v587_v30 = vadd.f32 -0.28449672, %v575_v17  ;;  %v552_v31 = vmul.f32 %v1230_v5, %v540_v18  ;;  %v1251_v46 = vpop.eup %993  ;;  %v536_v50 = vadd.f32 -1.4531521, %v524_v37  ;;  %999 = vrcp.f32 %v505_v44 }
  0xe2   : > { %v595_v33 = vmul.f32 %v1209_v36, %v583_v24  ;;  %v562_v34 = vadd.f32 1.4214138, %v550_v25  ;;  %v530_v57 = vmul.f32 1.0614054, %v1251_v46  ;;  %v996_v58 = vpop.eup %995  ;;  %1001 = vpow2.f32 %v669_v43 }
  0xe3   : > { %v599_v41 = vmul.f32 %v1211_v40, %v587_v30  ;;  %v564_v42 = vadd.f32 1.4214138, %v552_v31  ;;  %v548_v61 = vmul.f32 %v1243_v29, %v536_v50  ;;  %v1261_v1 = vpop.eup %997  ;;  %v495_v15 = vmul.f32 0.3275911, %v1264_v8 }
  0xe4   : > { %v607_v48 = vadd.f32 0.2548296, %v595_v33  ;;  %v574_v49 = vmul.f32 %v1227_v63, %v562_v34  ;;  %v542_v6 = vadd.f32 -1.4531521, %v530_v57  ;;  %v649_v18 = vmul.f32 %v637_v0, %v481_v21 }
  0xe5   : > { %v611_v55 = vadd.f32 0.2548296, %v599_v41  ;;  %v576_v56 = vmul.f32 %v1230_v5, %v564_v42  ;;  %v560_v11 = vadd.f32 1.4214138, %v548_v61  ;;  %v507_v25 = vadd.f32 1.0, %v495_v15  ;;  %v337_v15 = vpop.permute.xlu1 %336 }
  0xe6   : > { %v619_v59 = vmul.f32 %v1209_v36, %v607_v48  ;;  %v586_v60 = vadd.f32 -0.28449672, %v574_v49  ;;  %v554_v14 = vmul.f32 %v1251_v46, %v542_v6  ;;  %vm708_vm4 = vcmp.lt.f32.partialorder %v1188_v7, 0.0 }
  0xe7   : > { %v623_v3 = vmul.f32 %v1211_v40, %v611_v55  ;;  %v588_v4 = vadd.f32 -0.28449672, %v576_v56  ;;  %v572_v40 = vmul.f32 %v1243_v29, %v560_v11  ;;  %v1271_v20 = vpop.eup %999  ;;  %1003 = vrcp.f32 %v507_v25  ;;  %v407_v11 = vpop.f32.mrf.mxu1 }
  0xe8   : > { %v679_v9 = vmul.f32 %v986_v13, %v619_v59  ;;  %v598_v10 = vmul.f32 %v1227_v63, %v586_v60  ;;  %v566_v24 = vadd.f32 1.4214138, %v554_v14  ;;  %v1002_v37 = vpop.eup %1001  ;;  %vm704_vm5 = vcmp.lt.f32.partialorder %v1196_v22, 0.0 }
  0xe9   : > { %v683_v36 = vmul.f32 %v990_v32, %v623_v3  ;;  %v600_v12 = vmul.f32 %v1230_v5, %v588_v4  ;;  %v584_v19 = vadd.f32 -0.28449672, %v572_v40  ;;  %v529_v32 = vmul.f32 1.0614054, %v1271_v20 }
  0xea   : > { %v691_v16 = vsub.f32 1.0, %v679_v9  ;;  %v610_v17 = vadd.f32 0.2548296, %v598_v10  ;;  %v578_v21 = vmul.f32 %v1251_v46, %v566_v24  ;;  %v667_v59 = vmul.f32 1.442695, %v649_v18  ;;  %v427_v18 = vpop.f32.mrf.mxu0 }
  0xeb   : > { %v695_v23 = vsub.f32 1.0, %v683_v36  ;;  %v612_v13 = vadd.f32 0.2548296, %v600_v12  ;;  %v596_v43 = vmul.f32 %v1243_v29, %v584_v19  ;;  %v541_v44 = vadd.f32 -1.4531521, %v529_v32 }
  0xec   : > { %v715_v30 = vsub.f32 0.0, %v691_v16  ;;  %v622_v31 = vmul.f32 %v1227_v63, %v610_v17  ;;  %v590_v50 = vadd.f32 -0.28449672, %v578_v21  ;;  %v746_v4 = vmul.f32 0.5, %v1207_v35  ;;  %v441_v21 = vld [vmem:[%s1173_s12 + $0x10] sm:$0xff] }
  0xed   : > { %v719_v33 = vsub.f32 0.0, %v695_v23  ;;  %v624_v34 = vmul.f32 %v1230_v5, %v612_v13  ;;  %v608_v55 = vadd.f32 0.2548296, %v596_v43  ;;  %v553_v56 = vmul.f32 %v1271_v20, %v541_v44  ;;  %v1290_v0 = vpop.eup %1003 }
  0xee   : > { %v727_v41 = vsel %vm703_vm1, %v715_v30, %v691_v16  ;;  %v682_v42 = vmul.f32 %v992_v39, %v622_v31  ;;  %v602_v39 = vmul.f32 %v1251_v46, %v590_v50  ;;  %v639_v6 = vsub.f32 0.0, %v1264_v8 }
  0xef   : > { %v751_v63 = vadd.f32 1.0, %v727_v41  ;;  %v731_v48 = vsel %vm707_vm2, %v719_v33, %v695_v23  ;;  %v684_v49 = vmul.f32 %v996_v58, %v624_v34  ;;  %v620_v58 = vmul.f32 %v1243_v29, %v608_v55  ;;  %v378_v23 = vpop.f32.mrf.mxu3 }
  0xf0   : > { %v755_v52 = vadd.f32 1.0, %v731_v48  ;;  %v694_v5 = vsub.f32 1.0, %v682_v42  ;;  %v565_v61 = vadd.f32 1.4214138, %v553_v56  ;;  %v614_v3 = vadd.f32 0.2548296, %v602_v39 }
  0xf1   : > { %v763_v57 = vmul.f32 %v751_v63, %v1201_v27  ;;  %v696_v53 = vsub.f32 1.0, %v684_v49  ;;  %v680_v29 = vmul.f32 %v1261_v1, %v620_v58  ;;  %vm710_vm6 = vcmp.lt.f32.partialorder %v1207_v35, 0.0  ;;  %v448_v42 = vld [vmem:[%s1173_s12 + $0x48] sm:$0xff] }
  0xf2   : > { %v767_v60 = vmul.f32 %v755_v52, %v1204_v28  ;;  %v718_v54 = vsub.f32 0.0, %v694_v5  ;;  %v577_v9 = vmul.f32 %v1271_v20, %v565_v61  ;;  %v531_v10 = vmul.f32 1.0614054, %v1290_v0 }
  0xf3   : > { %775 = vst [vmem:[%s1293_s13] sm:$0xff] %v763_v57  ;;  %v720_v27 = vsub.f32 0.0, %v696_v53  ;;  %v626_v14 = vmul.f32 %v1251_v46, %v614_v3  ;;  %1005 = vpow2.f32 %v667_v59  ;;  %v692_v17 = vsub.f32 1.0, %v680_v29 }
  0xf4   : > { %779 = vst [vmem:[%s1293_s13 + $0x20] sm:$0xff] %v767_v60  ;;  %v730_v28 = vsel %vm706_vm3, %v718_v54, %v694_v5  ;;  %v589_v1 = vadd.f32 -0.28449672, %v577_v9  ;;  %v543_v40 = vadd.f32 -1.4531521, %v531_v10  ;;  %v651_v7 = vmul.f32 %v639_v6, %v1264_v8  ;;  %v450_v54 = vld [vmem:[%s1173_s12 + $0x58] sm:$0xff] }
  0xf5   : > { %v754_v36 = vadd.f32 1.0, %v730_v28  ;;  %v732_v12 = vsel %vm708_vm4, %v720_v27, %v696_v53  ;;  %v686_v24 = vmul.f32 %v1002_v37, %v626_v14  ;;  %v408_v25 = vadd.f32 %v407_v11, %v337_v15  ;;  %v436_v37 = vpop.f32.mrf.mxu2 }
  0xf6   : > { %v756_v16 = vadd.f32 1.0, %v732_v12  ;;  %v716_v30 = vsub.f32 0.0, %v692_v17  ;;  %v601_v31 = vmul.f32 %v1271_v20, %v589_v1  ;;  %v555_v19 = vmul.f32 %v1290_v0, %v543_v40 }
  0xf7   : > { %v766_v13 = vmul.f32 %v754_v36, %v1219_v47  ;;  %v698_v32 = vsub.f32 1.0, %v686_v24  ;;  %v1315_v33 = vadd.f32 %v449_v2, %v408_v25  ;;  %v428_v34 = vadd.f32 %v427_v18, %v1170_v45 }
  0xf8   : > { %v768_v46 = vmul.f32 %v756_v16, %v1222_v51  ;;  %v379_v47 = vadd.f32 %v378_v23, %v337_v15  ;;  %v728_v8 = vsel %vm704_vm5, %v716_v30, %v692_v17  ;;  %v613_v41 = vadd.f32 0.2548296, %v601_v31 }
  0xf9   : > { %778 = vst [vmem:[%s1293_s13 + $0x18] sm:$0xff] %v766_v13  ;;  %v567_v51 = vadd.f32 1.4214138, %v555_v19  ;;  %v1006_v43 = vpop.eup %1005  ;;  %v752_v44 = vadd.f32 1.0, %v728_v8  ;;  %v722_v63 = vsub.f32 0.0, %v698_v32  ;;  %v1326_v52 = vadd.f32 %v441_v21, %v428_v34 }
  0xfa   : > { %780 = vst [vmem:[%s1293_s13 + $0x28] sm:$0xff] %v768_v46  ;;  %v671_v48 = vmul.f32 1.442695, %v651_v7  ;;  %v473_v49 = vand.u32 2147483647, %v1315_v33  ;;  %v625_v45 = vmul.f32 %v1271_v20, %v613_v41  ;;  %v437_v5 = vadd.f32 %v436_v37, %v337_v15 }
  0xfb   : > { %v579_v50 = vmul.f32 %v1290_v0, %v567_v51  ;;  %v764_v22 = vmul.f32 %v752_v44, %v1241_v26  ;;  %v734_v55 = vsel %vm710_vm6, %v722_v63, %v698_v32  ;;  %v1331_v57 = vadd.f32 %v448_v42, %v379_v47 }
  0xfc   : > { %v485_v56 = vmul.f32 0.70710677, %v473_v49  ;;  %v758_v53 = vadd.f32 1.0, %v734_v55  ;;  %v685_v39 = vmul.f32 %v1006_v43, %v625_v45  ;;  %v465_v60 = vand.u32 2147483647, %v1326_v52 }
  0xfd   : > { %v591_v59 = vadd.f32 -0.28449672, %v579_v50  ;;  %776 = vst [vmem:[%s1293_s13 + $0x8] sm:$0xff] %v764_v22  ;;  %1007 = vpow2.f32 %v671_v48  ;;  %v472_v3 = vand.u32 2147483647, %v1331_v57  ;;  %v1339_v9 = vadd.f32 %v450_v54, %v437_v5 }
  0xfe   : > { %v497_v20 = vmul.f32 0.3275911, %v485_v56  ;;  %v770_v58 = vmul.f32 %v758_v53, %v746_v4  ;;  %v697_v61 = vsub.f32 1.0, %v685_v39  ;;  %v477_v27 = vmul.f32 0.70710677, %v465_v60 }
  0xff   : > { %v603_v26 = vmul.f32 %v1290_v0, %v591_v59  ;;  %vm709_vm7 = vcmp.lt.f32.partialorder %v1225_v62, 0.0  ;;  %v484_v10 = vmul.f32 0.70710677, %v472_v3  ;;  %v745_v14 = vmul.f32 0.5, %v1225_v62 }
 0x100   : > { %v509_v35 = vadd.f32 1.0, %v497_v20  ;;  %782 = vst [vmem:[%s1293_s13 + $0x38] sm:$0xff] %v770_v58  ;;  %v721_v6 = vsub.f32 0.0, %v697_v61  ;;  %v489_v29 = vmul.f32 0.3275911, %v477_v27  ;;  %v641_v24 = vsub.f32 0.0, %v485_v56 }
 0x101   : > { %v615_v28 = vadd.f32 0.2548296, %v603_v26  ;;  %v496_v2 = vmul.f32 0.3275911, %v484_v10  ;;  %v474_v17 = vand.u32 2147483647, %v1339_v9 }
 0x102   : > { %1009 = vrcp.f32 %v509_v35  ;;  %v733_v11 = vsel %vm709_vm7, %v721_v6, %v697_v61  ;;  %v501_v36 = vadd.f32 1.0, %v489_v29  ;;  %vm711_vm8 = vcmp.lt.f32.partialorder %v1248_v38, 0.0 }
 0x103   : > { %v627_v4 = vmul.f32 %v1290_v0, %v615_v28  ;;  %v1008_v12 = vpop.eup %1007  ;;  %v757_v15 = vadd.f32 1.0, %v733_v11  ;;  %v508_v40 = vadd.f32 1.0, %v496_v2  ;;  %v486_v23 = vmul.f32 0.70710677, %v474_v17 }
 0x104   : > { %1011 = vrcp.f32 %v501_v36  ;;  %v747_v30 = vmul.f32 0.5, %v1248_v38  ;;  %v633_v19 = vsub.f32 0.0, %v477_v27  ;;  %v653_v34 = vmul.f32 %v641_v24, %v485_v56 }
 0x105   : > { %v687_v16 = vmul.f32 %v1008_v12, %v627_v4  ;;  %v769_v1 = vmul.f32 %v757_v15, %v745_v14  ;;  %1013 = vrcp.f32 %v508_v40  ;;  %v498_v0 = vmul.f32 0.3275911, %v486_v23 }
 0x106   : > { %v645_v43 = vmul.f32 %v633_v19, %v477_v27  ;;  %v640_v44 = vsub.f32 0.0, %v484_v10  ;;  %v675_v63 = vmul.f32 1.442695, %v653_v34  ;;  %v642_v59 = vsub.f32 0.0, %v486_v23 }
 0x107   : > { %v699_v18 = vsub.f32 1.0, %v687_v16  ;;  %781 = vst [vmem:[%s1293_s13 + $0x30] sm:$0xff] %v769_v1  ;;  %v510_v47 = vadd.f32 1.0, %v498_v0  ;;  %vm713_vm9 = vcmp.lt.f32.partialorder %v1315_v33, 0.0  ;;  %vm705_vm10 = vcmp.lt.f32.partialorder %v1326_v52, 0.0 }
 0x108   : > { %v1010_v13 = vpop.eup %1009  ;;  %v659_v22 = vmul.f32 1.442695, %v645_v43  ;;  %v652_v55 = vmul.f32 %v640_v44, %v484_v10  ;;  %v654_v6 = vmul.f32 %v642_v59, %v486_v23  ;;  %vm712_vm11 = vcmp.lt.f32.partialorder %v1331_v57, 0.0 }
 0x109   : > { %v723_v7 = vsub.f32 0.0, %v699_v18  ;;  %v533_v25 = vmul.f32 1.0614054, %v1010_v13  ;;  %1015 = vrcp.f32 %v510_v47  ;;  %vm714_vm12 = vcmp.lt.f32.partialorder %v1339_v9, 0.0 }
 0x10a   : > { %v1012_v62 = vpop.eup %1011  ;;  %1017 = vpow2.f32 %v675_v63  ;;  %v673_v26 = vmul.f32 1.442695, %v652_v55  ;;  %v677_v2 = vmul.f32 1.442695, %v654_v6  ;;  %v748_v63 = vmul.f32 0.5, %v1331_v57  ;;  %v809_v57 = vld [vmem:[%s1293_s13] sm:$0xff] (%p1109_p5) }
 0x10b   : > { %v735_v46 = vsel %vm711_vm8, %v723_v7, %v699_v18  ;;  %v545_v31 = vadd.f32 -1.4531521, %v533_v25  ;;  %v525_v21 = vmul.f32 1.0614054, %v1012_v62  ;;  %v1014_v51 = vpop.eup %1013  ;;  %1019 = vpow2.f32 %v659_v22  ;;  %810 = vst [vmem:[%s796_s24] sm:$0xff] (%p1109_p5), %v809_v57 }
 0x10c   : > { %v759_v32 = vadd.f32 1.0, %v735_v46  ;;  %v532_v49 = vmul.f32 1.0614054, %v1014_v51  ;;  %1021 = vpow2.f32 %v673_v26 }
 0x10d   : > { %v557_v37 = vmul.f32 %v1010_v13, %v545_v31  ;;  %v537_v41 = vadd.f32 -1.4531521, %v525_v21  ;;  %1023 = vpow2.f32 %v677_v2 }
 0x10e   : > { %v771_v8 = vmul.f32 %v759_v32, %v747_v30  ;;  %v544_v50 = vadd.f32 -1.4531521, %v532_v49  ;;  %v821_v59 = vld [vmem:[%s1293_s13 + $0x30] sm:$0xff] (%p1109_p5) }
 0x10f   : > { %v569_v42 = vadd.f32 1.4214138, %v557_v37  ;;  %v549_v48 = vmul.f32 %v1012_v62, %v537_v41  ;;  %v1016_v56 = vpop.eup %1015  ;;  %v741_v37 = vmul.f32 0.5, %v1326_v52  ;;  %822 = vst [vmem:[%s796_s24 + $0x90] sm:$0xff] (%p1109_p5), %v821_v59 }
 0x110   : > { %783 = vst [vmem:[%s1293_s13 + $0x40] sm:$0xff] %v771_v8  ;;  %v556_v39 = vmul.f32 %v1014_v51, %v544_v50  ;;  %v534_v20 = vmul.f32 1.0614054, %v1016_v56  ;;  %v1018_v11 = vpop.eup %1017  ;;  %v750_v50 = vmul.f32 0.5, %v1339_v9  ;;  %v811_v9 = vld [vmem:[%s1293_s13 + $0x8] sm:$0xff] (%p1109_p5) }
 0x111   : > { %v581_v45 = vmul.f32 %v1010_v13, %v569_v42  ;;  %v561_v38 = vadd.f32 1.4214138, %v549_v48  ;;  %v1020_v16 = vpop.eup %1019  ;;  %812 = vst [vmem:[%s796_s24 + $0x8] sm:$0xff] (%p1109_p5), %v811_v9 }
 0x112   : > { %v568_v58 = vadd.f32 1.4214138, %v556_v39  ;;  %v546_v27 = vadd.f32 -1.4531521, %v534_v20  ;;  %v1022_v25 = vpop.eup %1021  ;;  %v819_v39 = vld [vmem:[%s1293_s13 + $0x28] sm:$0xff] (%p1109_p5) }
 0x113   : > { %v593_v5 = vadd.f32 -0.28449672, %v581_v45  ;;  %v573_v53 = vmul.f32 %v1012_v62, %v561_v38  ;;  %820 = vst [vmem:[%s796_s24 + $0x58] sm:$0xff] (%p1109_p5), %v819_v39 }
 0x114   : > { %v580_v3 = vmul.f32 %v1014_v51, %v568_v58  ;;  %v558_v29 = vmul.f32 %v1016_v56, %v546_v27 }
 0x115   : > { %v605_v60 = vmul.f32 %v1010_v13, %v593_v5  ;;  %v585_v54 = vadd.f32 -0.28449672, %v573_v53  ;;  %v817_v53 = vld [vmem:[%s1293_s13 + $0x20] sm:$0xff] (%p1109_p5) }
 0x116   : > { %v592_v4 = vadd.f32 -0.28449672, %v580_v3  ;;  %v570_v12 = vadd.f32 1.4214138, %v558_v29  ;;  %818 = vst [vmem:[%s796_s24 + $0x50] sm:$0xff] (%p1109_p5), %v817_v53 }
 0x117   : > { %v617_v61 = vadd.f32 0.2548296, %v605_v60  ;;  %v597_v35 = vmul.f32 %v1012_v62, %v585_v54  ;;  %v823_v60 = vld [vmem:[%s1293_s13 + $0x38] sm:$0xff] (%p1109_p5)  ;;  %v825_v20 = vld [vmem:[%s1293_s13 + $0x40] sm:$0xff] (%p1109_p5) }
 0x118   : > { %v604_v15 = vmul.f32 %v1014_v51, %v592_v4  ;;  %v582_v1 = vmul.f32 %v1016_v56, %v570_v12  ;;  %824 = vst [vmem:[%s796_s24 + $0x98] sm:$0xff] (%p1109_p5), %v823_v60 }
 0x119   : > { %v629_v28 = vmul.f32 %v1010_v13, %v617_v61  ;;  %v609_v10 = vadd.f32 0.2548296, %v597_v35  ;;  %826 = vst [vmem:[%s796_s24 + $0xa0] sm:$0xff] (%p1109_p5), %v825_v20 }
 0x11a   : > { %v616_v18 = vadd.f32 0.2548296, %v604_v15  ;;  %v594_v7 = vadd.f32 -0.28449672, %v582_v1 }
 0x11b   : > { %v689_v36 = vmul.f32 %v1018_v11, %v629_v28  ;;  %v621_v14 = vmul.f32 %v1012_v62, %v609_v10  ;;  %v749_v62 = vmul.f32 0.5, %v1315_v33 }
 0x11c   : > { %v628_v13 = vmul.f32 %v1014_v51, %v616_v18  ;;  %v606_v46 = vmul.f32 %v1016_v56, %v594_v7  ;;  %v1024_v51 = vpop.eup %1023 }
 0x11d   : > { %v701_v17 = vsub.f32 1.0, %v689_v36  ;;  %v681_v40 = vmul.f32 %v1020_v16, %v621_v14 }
 0x11e   : > { %v688_v19 = vmul.f32 %v1022_v25, %v628_v13  ;;  %v618_v32 = vadd.f32 0.2548296, %v606_v46 }
 0x11f   : > { %v725_v24 = vsub.f32 0.0, %v701_v17  ;;  %v693_v23 = vsub.f32 1.0, %v681_v40 }
 0x120   : > { %v700_v47 = vsub.f32 1.0, %v688_v19  ;;  %v630_v41 = vmul.f32 %v1016_v56, %v618_v32  ;;  %v815_v56 = vld [vmem:[%s1293_s13 + $0x18] sm:$0xff] (%p1109_p5) }
 0x121   : > { %v737_v0 = vsel %vm713_vm9, %v725_v24, %v701_v17  ;;  %v717_v31 = vsub.f32 0.0, %v693_v23  ;;  %816 = vst [vmem:[%s796_s24 + $0x48] sm:$0xff] (%p1109_p5), %v815_v56 }
 0x122   : > { %v761_v30 = vadd.f32 1.0, %v737_v0  ;;  %v724_v42 = vsub.f32 0.0, %v700_v47  ;;  %v690_v33 = vmul.f32 %v1024_v51, %v630_v41 }
 0x123   : > { %v729_v21 = vsel %vm705_vm10, %v717_v31, %v693_v23 }
 0x124   : > { %v773_v34 = vmul.f32 %v761_v30, %v749_v62  ;;  %v753_v8 = vadd.f32 1.0, %v729_v21  ;;  %v736_v44 = vsel %vm712_vm11, %v724_v42, %v700_v47  ;;  %v702_v49 = vsub.f32 1.0, %v690_v33 }
 0x125   : > { %v760_v48 = vadd.f32 1.0, %v736_v44 }
 0x126   : > { %785 = vst [vmem:[%s1293_s13 + $0x50] sm:$0xff] %v773_v34  ;;  %v765_v43 = vmul.f32 %v753_v8, %v741_v37  ;;  %v726_v38 = vsub.f32 0.0, %v702_v49 }
 0x127   : > { %v772_v45 = vmul.f32 %v760_v48, %v748_v63 }
 0x128   : > { %777 = vst [vmem:[%s1293_s13 + $0x10] sm:$0xff] %v765_v43  ;;  %v738_v52 = vsel %vm714_vm12, %v726_v38, %v702_v49 }
 0x129   : > { %784 = vst [vmem:[%s1293_s13 + $0x48] sm:$0xff] %v772_v45  ;;  %v762_v5 = vadd.f32 1.0, %v738_v52  ;;  %793 = sbr.rel (!%p1109_p5) target bundleno = 310 (0x136), region = 86 }
 0x12b   : > { %v774_v22 = vmul.f32 %v762_v5, %v750_v50 }
 0x12d   : > { %786 = vst [vmem:[%s1293_s13 + $0x58] sm:$0xff] %v774_v22  ;;  %v829_v58 = vld [vmem:[%s1293_s13 + $0x50] sm:$0xff] (%p1109_p5) }
 0x12e   : > { %830 = vst [vmem:[%s796_s24 + $0xe0] sm:$0xff] %v829_v58 }
 0x12f   : > { %v813_v55 = vld [vmem:[%s1293_s13 + $0x10] sm:$0xff] }
 0x130   : > { %814 = vst [vmem:[%s796_s24 + $0x10] sm:$0xff] %v813_v55  ;;  %v827_v54 = vld [vmem:[%s1293_s13 + $0x48] sm:$0xff] }
 0x131   : > { %828 = vst [vmem:[%s796_s24 + $0xd8] sm:$0xff] %v827_v54 }
 0x134   : > { %v831_v61 = vld [vmem:[%s1293_s13 + $0x58] sm:$0xff] }
 0x135   : > { %832 = vst [vmem:[%s796_s24 + $0xe8] sm:$0xff] %v831_v61 }
 0x136 PF: > { %p11_p10 = scmp.ge.s32.totalorder %s1092_s19, 5   ;;  %s1397_s15 = smov %s1043_s16 }
 0x137   : > { %s1398_s16 = smov %s1103_s22  ;;  %s1399_s17 = smov %s1092_s19 }
 0x138   :  { %13 = sbr.rel (!%p11_p10) target bundleno = 2 (0x2), region = 148 }

// kernel: fno2d_forward.18
= control target key start
LH: loop header
LB: loop body
LE: loop exit
PB: predicated region body
PF: predicated region fallthrough
CT: control target
= control target key end

     0   :  { %s715_s15 = smov 0   ;;  %s717_s16 = smov 0   ;;  %s869_s0 = inlined_call_operand.vmem [shape: f32[32,1152], index: 0, kind: input, shape index: {}]   ;;  %s870_s1 = inlined_call_operand.vmem [shape: f32[32,32], index: 1, kind: input, shape index: {}]   ;;  %s871_s2 = inlined_call_operand.vmem [shape: f32[32,1], index: 2, kind: input, shape index: {}]   ;;  %s872_s3 = inlined_call_operand.vmem [shape: f32[32,1152], index: 3, kind: input, shape index: {}]   ;;  %s873_s4 = inlined_call_operand.vmem [shape: f32[32,1152], index: 4, kind: output, shape index: {}]  }
   0x1   :  { %s719_s17 = smov 0  }
   0x2 LB: > { %s598_s18 = sadd.s32 4294967295, %s687_s17   ;;  %s732_s19 = sadd.s32 1, %s687_s17   ;;  %s687_s17 = sphi %s719_s17, %s878_s17   ;;  %s683_s16 = sphi %s717_s16, %s877_s16   ;;  %s679_s15 = sphi %s715_s15, %s876_s15  }
   0x3   : > { %s18_s20 = ssub.s32 %s687_s17, %s732_s19  ;;  %s21_s21 = sadd.s32 1, %s683_s16 }
   0x4   : > { %p19_p0 = scmp.eq.s32.totalorder %s18_s20, 0  ;;  %p28_p1 = scmp.ne.s32.totalorder %s683_s16, %s679_s15 }
   0x5   : > { %p29_p2 = scmp.eq.s32.totalorder %s687_s17, 0  ;;  %p126_p3 = scmp.eq.s32.totalorder %s598_s18, 2 }
   0x6   : > { %s743_s22 = scalar_select %p19_p0, %s683_s16, %s21_s21  }
   0x7   : > { %p745_p4 = por %p29_p2, %p28_p1  ;;  %p749_p5 = por %p126_p3, %p28_p1 }
   0x8   : > { %p601_p6 = scmp.ge.s32.totalorder %s687_s17, 3 }
   0xa   : > { %154 = sbr.rel (%p601_p6) target bundleno = 49 (0x31), region = 24 }
   0xf   : > { %157 = sbr.rel (!%p745_p4) target bundleno = 32 (0x20), region = 28  ;;  %s159_s25 = sand.u32 (%p745_p4), 1, %s683_s16  }
  0x10   : > { %s620_s26 = smul.u32 (%p745_p4), 24, %s687_s17 }
  0x11   : > { %s635_s27 = smul.u32 (%p745_p4), 96, %s159_s25 }
  0x12   : > { %s164_s30 = scalar_lea.vmem (%p745_p4), %s869_s0, %s620_s26 }
  0x13   : > { %v177_v0 = vld [vmem:[%s164_s30] sm:$0xff] (%p745_p4)  ;;  %v179_v1 = vld [vmem:[%s164_s30 + $0x8] sm:$0xff] (%p745_p4)  ;;  %v181_v2 = vld [vmem:[%s164_s30 + $0x10] sm:$0xff] (%p745_p4)  ;;  %s161_s5 = scalar_lea.vmem (%p745_p4), [#allocation2], %s635_s27 }
  0x14   : > { %178 = vst [vmem:[%s161_s5] sm:$0xff] %v177_v0  ;;  %v183_v3 = vld [vmem:[%s164_s30 + $0x48] sm:$0xff]  ;;  %v185_v4 = vld [vmem:[%s164_s30 + $0x50] sm:$0xff]  ;;  %v187_v5 = vld [vmem:[%s164_s30 + $0x58] sm:$0xff] }
  0x15   : > { %180 = vst [vmem:[%s161_s5 + $0x8] sm:$0xff] %v179_v1  ;;  %v189_v6 = vld [vmem:[%s164_s30 + $0x90] sm:$0xff]  ;;  %v191_v7 = vld [vmem:[%s164_s30 + $0x98] sm:$0xff]  ;;  %v193_v8 = vld [vmem:[%s164_s30 + $0xa0] sm:$0xff] }
  0x16   : > { %182 = vst [vmem:[%s161_s5 + $0x10] sm:$0xff] %v181_v2  ;;  %v195_v9 = vld [vmem:[%s164_s30 + $0xd8] sm:$0xff]  ;;  %v197_v10 = vld [vmem:[%s164_s30 + $0xe0] sm:$0xff]  ;;  %v199_v11 = vld [vmem:[%s164_s30 + $0xe8] sm:$0xff] }
  0x17   : > { %184 = vst [vmem:[%s161_s5 + $0x18] sm:$0xff] %v183_v3 }
  0x18   : > { %186 = vst [vmem:[%s161_s5 + $0x20] sm:$0xff] %v185_v4 }
  0x19   : > { %188 = vst [vmem:[%s161_s5 + $0x28] sm:$0xff] %v187_v5 }
  0x1a   : > { %190 = vst [vmem:[%s161_s5 + $0x30] sm:$0xff] %v189_v6 }
  0x1b   : > { %192 = vst [vmem:[%s161_s5 + $0x38] sm:$0xff] %v191_v7 }
  0x1c   : > { %194 = vst [vmem:[%s161_s5 + $0x40] sm:$0xff] %v193_v8 }
  0x1d   : > { %196 = vst [vmem:[%s161_s5 + $0x48] sm:$0xff] %v195_v9 }
  0x1e   : > { %198 = vst [vmem:[%s161_s5 + $0x50] sm:$0xff] %v197_v10 }
  0x1f   : > { %200 = vst [vmem:[%s161_s5 + $0x58] sm:$0xff] %v199_v11 }
  0x20 PF: > { %206 = sbr.rel (!%p745_p4) target bundleno = 49 (0x31), region = 51  ;;  %s208_s6 = sand.u32 (%p745_p4), 1, %s683_s16  }
  0x21   : > { %s621_s7 = smul.u32 (%p745_p4), 24, %s687_s17 }
  0x22   : > { %s636_s8 = smul.u32 (%p745_p4), 96, %s208_s6 }
  0x23   : > { %s213_s11 = scalar_lea.vmem (%p745_p4), %s872_s3, %s621_s7 }
  0x24   : > { %v226_v12 = vld [vmem:[%s213_s11] sm:$0xff] (%p745_p4)  ;;  %v228_v13 = vld [vmem:[%s213_s11 + $0x8] sm:$0xff] (%p745_p4)  ;;  %v230_v14 = vld [vmem:[%s213_s11 + $0x10] sm:$0xff] (%p745_p4)  ;;  %s210_s12 = scalar_lea.vmem (%p745_p4), [#allocation3], %s636_s8 }
  0x25   : > { %227 = vst [vmem:[%s210_s12] sm:$0xff] %v226_v12  ;;  %v232_v15 = vld [vmem:[%s213_s11 + $0x48] sm:$0xff]  ;;  %v234_v16 = vld [vmem:[%s213_s11 + $0x50] sm:$0xff]  ;;  %v236_v17 = vld [vmem:[%s213_s11 + $0x58] sm:$0xff] }
  0x26   : > { %229 = vst [vmem:[%s210_s12 + $0x8] sm:$0xff] %v228_v13  ;;  %v238_v18 = vld [vmem:[%s213_s11 + $0x90] sm:$0xff]  ;;  %v240_v19 = vld [vmem:[%s213_s11 + $0x98] sm:$0xff]  ;;  %v242_v20 = vld [vmem:[%s213_s11 + $0xa0] sm:$0xff] }
  0x27   : > { %231 = vst [vmem:[%s210_s12 + $0x10] sm:$0xff] %v230_v14  ;;  %v244_v21 = vld [vmem:[%s213_s11 + $0xd8] sm:$0xff]  ;;  %v246_v22 = vld [vmem:[%s213_s11 + $0xe0] sm:$0xff]  ;;  %v248_v23 = vld [vmem:[%s213_s11 + $0xe8] sm:$0xff] }
  0x28   : > { %233 = vst [vmem:[%s210_s12 + $0x18] sm:$0xff] %v232_v15 }
  0x29   : > { %235 = vst [vmem:[%s210_s12 + $0x20] sm:$0xff] %v234_v16 }
  0x2a   : > { %237 = vst [vmem:[%s210_s12 + $0x28] sm:$0xff] %v236_v17 }
  0x2b   : > { %239 = vst [vmem:[%s210_s12 + $0x30] sm:$0xff] %v238_v18 }
  0x2c   : > { %241 = vst [vmem:[%s210_s12 + $0x38] sm:$0xff] %v240_v19 }
  0x2d   : > { %243 = vst [vmem:[%s210_s12 + $0x40] sm:$0xff] %v242_v20 }
  0x2e   : > { %245 = vst [vmem:[%s210_s12 + $0x48] sm:$0xff] %v244_v21 }
  0x2f   : > { %247 = vst [vmem:[%s210_s12 + $0x50] sm:$0xff] %v246_v22 }
  0x30   : > { %249 = vst [vmem:[%s210_s12 + $0x58] sm:$0xff] %v248_v23 }
  0x31 PF: > { %p604_p7 = scmp.ge.s32.totalorder %s687_s17, 1  ;;  %p254_p8 = scmp.lt.s32.totalorder %s687_s17, 4 }
  0x33   : > { %p255_p9 = pnand %p604_p7, %p254_p8 }
  0x34   : > { %s261_s13 = sand.u32 (!%p255_p9), 1, %s679_s15  }
  0x35   : > { %258 = sbr.rel (%p255_p9) target bundleno = 232 (0xe8), region = 74 }
  0x36   : > { %s771_s14 = smul.u32 (!%p255_p9), 96, %s261_s13 }
  0x38   : > { %s263_s26 = scalar_lea.vmem (!%p255_p9), [#allocation2], %s771_s14  ;;  %s811_s12 = scalar_lea.vmem (!%p255_p9), [#allocation3], %s771_s14 }
  0x39   : > { %s816_s13 = scalar_lea.vmem (!%p255_p9), [#allocation4], %s771_s14 }
  0x3a   : > { %v689_v24 = vmov 0   ;;  %v315_v25 = vld [vmem:[%s871_s2] sm:$0xff]  ;;  %v317_v26 = vld [vmem:[%s871_s2 + $0x10] sm:$0xff]  ;;  %v312_v27 = vld [vmem:[%s263_s26 + $0x48] sm:$0xff]  ;;  %vm339_vm0 = vcmask 261120   ;;  %s622_s14 = smul.u32 (%p749_p5), 24, %s598_s18 }
  0x3b   : > { %663 = vset.pattern.permute.xlu0 %v689_v24  ;;  %664 = vset.pattern.permute.xlu1 %v689_v24  ;;  %v313_v28 = vld [vmem:[%s263_s26 + $0x50] sm:$0xff]  ;;  %v314_v29 = vld [vmem:[%s263_s26 + $0x58] sm:$0xff]  ;;  %v311_v32 = vld [vmem:[%s263_s26 + $0x40] sm:$0xff] }
  0x3c   : > { %321 = vperm.xlu0 %663, %v315_v25   ;;  %331 = vperm.xlu1 %664, %v317_v26   ;;  %v309_v30 = vld [vmem:[%s263_s26 + $0x30] sm:$0xff]  ;;  %v310_v31 = vld [vmem:[%s263_s26 + $0x38] sm:$0xff]  ;;  %v307_v34 = vld [vmem:[%s263_s26 + $0x20] sm:$0xff]  ;;  %s484_s24 = scalar_lea.vmem (%p749_p5), %s873_s4, %s622_s14 }
  0x3d   : > { %364 = vmatpush.msra.mxu0 %v312_v27  ;;  %623 = vmatpush.msra.mxu3 %v312_v27  ;;  %v306_v33 = vld [vmem:[%s263_s26 + $0x18] sm:$0xff]  ;;  %v308_v35 = vld [vmem:[%s263_s26 + $0x28] sm:$0xff]  ;;  %v303_v36 = vld [vmem:[%s263_s26] sm:$0xff] }
  0x3e   : > { %627 = vmatpush.msra.mxu1 %v313_v28  ;;  %631 = vmatpush.msra.mxu2 %v314_v29  ;;  %v304_v37 = vld [vmem:[%s263_s26 + $0x8] sm:$0xff]  ;;  %v305_v38 = vld [vmem:[%s263_s26 + $0x10] sm:$0xff]  ;;  %v299_v39 = vld [vmem:[%s870_s1] sm:$0xff] }
  0x3f   : > { %365 = vmatpush.msra.mxu0 %v309_v30  ;;  %624 = vmatpush.msra.mxu3 %v309_v30  ;;  %v300_v40 = vld [vmem:[%s870_s1 + $0x8] sm:$0xff]  ;;  %v318_v42 = vld [vmem:[%s871_s2 + $0x18] sm:$0xff]  ;;  %v301_v43 = vld [vmem:[%s870_s1 + $0x10] sm:$0xff] }
  0x40   : > { %628 = vmatpush.msra.mxu1 %v310_v31  ;;  %632 = vmatpush.msra.mxu2 %v311_v32  ;;  %v316_v41 = vld [vmem:[%s871_s2 + $0x8] sm:$0xff]  ;;  %v302_v44 = vld [vmem:[%s870_s1 + $0x18] sm:$0xff]  ;;  %v439_v48 = vld [vmem:[%s811_s12] sm:$0xff] }
  0x41   : > { %366 = vmatpush.msra.mxu0 %v306_v33  ;;  %625 = vmatpush.msra.mxu3 %v306_v33  ;;  %v443_v51 = vld [vmem:[%s811_s12 + $0x20] sm:$0xff]  ;;  %v442_v57 = vld [vmem:[%s811_s12 + $0x18] sm:$0xff]  ;;  %v444_v60 = vld [vmem:[%s811_s12 + $0x28] sm:$0xff] }
  0x42   : > { %629 = vmatpush.msra.mxu1 %v307_v34  ;;  %633 = vmatpush.msra.mxu2 %v308_v35  ;;  %v440_v0 = vld [vmem:[%s811_s12 + $0x8] sm:$0xff]  ;;  %v446_v2 = vld [vmem:[%s811_s12 + $0x38] sm:$0xff]  ;;  %v445_v9 = vld [vmem:[%s811_s12 + $0x30] sm:$0xff] }
  0x43   : > { %367 = vmatpush.msra.mxu0 %v303_v36  ;;  %626 = vmatpush.msra.mxu3 %v303_v36  ;;  %v447_v13 = vld [vmem:[%s811_s12 + $0x40] sm:$0xff]  ;;  %v449_v17 = vld [vmem:[%s811_s12 + $0x50] sm:$0xff]  ;;  %v448_v26 = vld [vmem:[%s811_s12 + $0x48] sm:$0xff] }
  0x44   : > { %630 = vmatpush.msra.mxu1 %v304_v37  ;;  %634 = vmatpush.msra.mxu2 %v305_v38  ;;  %v441_v19 = vld [vmem:[%s811_s12 + $0x10] sm:$0xff] }
  0x45   : > { %605 = vmatmul.msk.f32.vlgmr.msra.gmra.mxu0 %vm339_vm0, %v299_v39  ;;  %606 = vmatmul.msk.f32.vlgmr.msra.gmra.mxu3 %vm339_vm0, %v300_v40 }
  0x46   : > { %610 = vmatmul.msk.f32.vlgmr.msra.gmra.mxu1 %vm339_vm0, %v300_v40  ;;  %614 = vmatmul.msk.f32.vlgmr.msra.gmra.mxu2 %vm339_vm0, %v300_v40 }
  0x47   : > { %393 = vmatpush.msrb.mxu0 %v313_v28  ;;  %326 = vperm.xlu0 %663, %v316_v41  }
  0x48   : > { %336 = vperm.xlu1 %664, %v318_v42  }
  0x49   : > { %394 = vmatpush.msrb.mxu0 %v310_v31 }
  0x4b   : > { %395 = vmatpush.msrb.mxu0 %v307_v34 }
  0x4d   : > { %396 = vmatpush.msrb.mxu0 %v304_v37  ;;  %607 = vmatmul.msk.f32.gmra.mxu3 %vm339_vm0, %v301_v43 }
  0x4e   : > { %609 = vmatmul.msk.f32.vlgmr.msrb.gmra.mxu0 %vm339_vm0, %v299_v39  ;;  %611 = vmatmul.msk.f32.gmra.mxu1 %vm339_vm0, %v301_v43 }
  0x4f   : > { %615 = vmatmul.msk.f32.gmra.mxu2 %vm339_vm0, %v301_v43  ;;  %422 = vmatpush.msra.mxu0 %v314_v29  ;;  %v450_v29 = vld [vmem:[%s811_s12 + $0x58] sm:$0xff] }
  0x51   : > { %423 = vmatpush.msra.mxu0 %v311_v32 }
  0x53   : > { %424 = vmatpush.msra.mxu0 %v308_v35 }
  0x55   : > { %425 = vmatpush.msra.mxu0 %v305_v38  ;;  %608 = vmatmul.msk.f32.gmra.mxu3 %vm339_vm0, %v302_v44 }
  0x56   : > { %612 = vmatmul.msk.f32.gmra.mxu1 %vm339_vm0, %v302_v44  ;;  %613 = vmatmul.msk.f32.vlgmr.msra.gmra.mxu0 %vm339_vm0, %v299_v39 }
  0x57   : > { %616 = vmatmul.msk.f32.gmra.mxu2 %vm339_vm0, %v302_v44 }
  0xae   : > { %v322_v45 = vpop.permute.xlu0 %321  ;;  %v332_v55 = vpop.permute.xlu1 %331 }
  0xb9   : > { %v327_v46 = vpop.permute.xlu0 %326 }
  0xba   : > { %v337_v11 = vpop.permute.xlu1 %336 }
  0xc2   : > { %v369_v47 = vpop.f32.mrf.mxu0 }
  0xc3   : > { %v370_v49 = vadd.f32 %v369_v47, %v322_v45  ;;  %v401_v50 = vpop.f32.mrf.mxu1 }
  0xc4   : > { %v402_v52 = vadd.f32 %v401_v50, %v327_v46 }
  0xc5   : > { %v451_v53 = vadd.f32 %v439_v48, %v370_v49 }
  0xc6   : > { %v455_v54 = vadd.f32 %v443_v51, %v402_v52 }
  0xc7   : > { %463 = vst [vmem:[%s816_s13] sm:$0xff] %v451_v53 }
  0xc8   : > { %467 = vst [vmem:[%s816_s13 + $0x20] sm:$0xff] %v455_v54  ;;  %v372_v56 = vpop.f32.mrf.mxu3 }
  0xc9   : > { %v373_v58 = vadd.f32 %v372_v56, %v327_v46  ;;  %v430_v59 = vpop.f32.mrf.mxu2 }
  0xca   : > { %v431_v61 = vadd.f32 %v430_v59, %v327_v46 }
  0xcb   : > { %v454_v62 = vadd.f32 %v442_v57, %v373_v58  ;;  %v398_v63 = vpop.f32.mrf.mxu0  ;;  %v404_v1 = vpop.f32.mrf.mxu1 }
  0xcc   : > { %v456_v3 = vadd.f32 %v444_v60, %v431_v61  ;;  %v399_v4 = vadd.f32 %v398_v63, %v322_v45  ;;  %v405_v5 = vadd.f32 %v404_v1, %v332_v55 }
  0xcd   : > { %466 = vst [vmem:[%s816_s13 + $0x18] sm:$0xff] %v454_v62 }
  0xce   : > { %468 = vst [vmem:[%s816_s13 + $0x28] sm:$0xff] %v456_v3  ;;  %v452_v6 = vadd.f32 %v440_v0, %v399_v4  ;;  %v458_v7 = vadd.f32 %v446_v2, %v405_v5  ;;  %v497_v33 = vld [vmem:[%s816_s13] sm:$0xff] (%p749_p5) }
  0xcf   : > { %498 = vst [vmem:[%s484_s24] sm:$0xff] (%p749_p5), %v497_v33  ;;  %v505_v37 = vld [vmem:[%s816_s13 + $0x20] sm:$0xff] (%p749_p5) }
  0xd0   : > { %464 = vst [vmem:[%s816_s13 + $0x8] sm:$0xff] %v452_v6  ;;  %v375_v8 = vpop.f32.mrf.mxu3 }
  0xd1   : > { %470 = vst [vmem:[%s816_s13 + $0x38] sm:$0xff] %v458_v7  ;;  %v376_v10 = vadd.f32 %v375_v8, %v332_v55 }
  0xd2   : > { %v433_v12 = vpop.f32.mrf.mxu2  ;;  %506 = vst [vmem:[%s484_s24 + $0x50] sm:$0xff] (%p749_p5), %v505_v37 }
  0xd3   : > { %v457_v14 = vadd.f32 %v445_v9, %v376_v10  ;;  %v434_v15 = vadd.f32 %v433_v12, %v332_v55  ;;  %v407_v16 = vpop.f32.mrf.mxu1  ;;  %v427_v18 = vpop.f32.mrf.mxu0 }
  0xd4   : > { %v408_v20 = vadd.f32 %v407_v16, %v337_v11  ;;  %v428_v21 = vadd.f32 %v427_v18, %v322_v45  ;;  %v503_v36 = vld [vmem:[%s816_s13 + $0x18] sm:$0xff] (%p749_p5) }
  0xd5   : > { %469 = vst [vmem:[%s816_s13 + $0x30] sm:$0xff] %v457_v14  ;;  %v459_v22 = vadd.f32 %v447_v13, %v434_v15  ;;  %v507_v38 = vld [vmem:[%s816_s13 + $0x28] sm:$0xff] (%p749_p5) }
  0xd6   : > { %v461_v23 = vadd.f32 %v449_v17, %v408_v20  ;;  %v453_v24 = vadd.f32 %v441_v19, %v428_v21  ;;  %504 = vst [vmem:[%s484_s24 + $0x48] sm:$0xff] (%p749_p5), %v503_v36 }
  0xd7   : > { %471 = vst [vmem:[%s816_s13 + $0x40] sm:$0xff] %v459_v22  ;;  %v499_v34 = vld [vmem:[%s816_s13 + $0x8] sm:$0xff] (%p749_p5) }
  0xd8   : > { %473 = vst [vmem:[%s816_s13 + $0x50] sm:$0xff] %v461_v23  ;;  %v378_v25 = vpop.f32.mrf.mxu3  ;;  %v511_v40 = vld [vmem:[%s816_s13 + $0x38] sm:$0xff] (%p749_p5) }
  0xd9   : > { %465 = vst [vmem:[%s816_s13 + $0x10] sm:$0xff] %v453_v24  ;;  %v379_v27 = vadd.f32 %v378_v25, %v337_v11 }
  0xda   : > { %v436_v28 = vpop.f32.mrf.mxu2  ;;  %500 = vst [vmem:[%s484_s24 + $0x8] sm:$0xff] (%p749_p5), %v499_v34 }
  0xdb   : > { %v460_v30 = vadd.f32 %v448_v26, %v379_v27  ;;  %v437_v31 = vadd.f32 %v436_v28, %v337_v11  ;;  %481 = sbr.rel (!%p749_p5) target bundleno = 232 (0xe8), region = 86  ;;  %508 = vst [vmem:[%s484_s24 + $0x58] sm:$0xff] (%p749_p5), %v507_v38 }
  0xdc   : > { %v509_v39 = vld [vmem:[%s816_s13 + $0x30] sm:$0xff] (%p749_p5)  ;;  %512 = vst [vmem:[%s484_s24 + $0x98] sm:$0xff] (%p749_p5), %v511_v40 }
  0xdd   : > { %472 = vst [vmem:[%s816_s13 + $0x48] sm:$0xff] %v460_v30  ;;  %v462_v32 = vadd.f32 %v450_v29, %v437_v31 }
  0xde   : > { %v513_v41 = vld [vmem:[%s816_s13 + $0x40] sm:$0xff] (%p749_p5)  ;;  %510 = vst [vmem:[%s484_s24 + $0x90] sm:$0xff] (%p749_p5), %v509_v39 }
  0xdf   : > { %474 = vst [vmem:[%s816_s13 + $0x58] sm:$0xff] %v462_v32  ;;  %v517_v43 = vld [vmem:[%s816_s13 + $0x50] sm:$0xff] (%p749_p5) }
  0xe0   : > { %v501_v35 = vld [vmem:[%s816_s13 + $0x10] sm:$0xff]  ;;  %514 = vst [vmem:[%s484_s24 + $0xa0] sm:$0xff] %v513_v41 }
  0xe1   : > { %502 = vst [vmem:[%s484_s24 + $0x10] sm:$0xff] %v501_v35 }
  0xe2   : > { %518 = vst [vmem:[%s484_s24 + $0xe0] sm:$0xff] %v517_v43 }
  0xe4   : > { %v515_v42 = vld [vmem:[%s816_s13 + $0x48] sm:$0xff] }
  0xe5   : > { %516 = vst [vmem:[%s484_s24 + $0xd8] sm:$0xff] %v515_v42 }
  0xe6   : > { %v519_v44 = vld [vmem:[%s816_s13 + $0x58] sm:$0xff] }
  0xe7   : > { %520 = vst [vmem:[%s484_s24 + $0xe8] sm:$0xff] %v519_v44 }
  0xe8 PF: > { %p11_p10 = scmp.ge.s32.totalorder %s732_s19, 5   ;;  %s876_s15 = smov %s683_s16 }
  0xe9   : > { %s877_s16 = smov %s743_s22  ;;  %s878_s17 = smov %s732_s19 }
  0xea   :  { %13 = sbr.rel (!%p11_p10) target bundleno = 2 (0x2), region = 148 }

// kernel: fno2d_forward.19
= control target key start
LH: loop header
LB: loop body
LE: loop exit
PB: predicated region body
PF: predicated region fallthrough
CT: control target
= control target key end

     0   :  { %s2615_s0 = inlined_call_operand.vmem [shape: f32[32,512], index: 0, kind: input, shape index: {}]   ;;  %s2616_s1 = inlined_call_operand.vmem [shape: f32[128,32], index: 1, kind: input, shape index: {}]   ;;  %s2617_s2 = inlined_call_operand.vmem [shape: f32[128,1], index: 2, kind: input, shape index: {}]   ;;  %s2618_s3 = inlined_call_operand.vmem [shape: f32[1,128], index: 3, kind: input, shape index: {}]   ;;  %s2619_s4 = inlined_call_operand.<no memory space> [shape: f32[1,1], index: 4, kind: input, shape index: {}]   ;;  %s2620_s5 = inlined_call_operand.vmem [shape: f32[1,512], index: 5, kind: output, shape index: {}]  }
   0x1   :  { %10 = sst [smem:[#allocation2]] %s2619_s4 }
   0x2   :  { %s1768_s20 = smov 0   ;;  %s1770_s21 = smov 0  }
   0x3   :  { %s1772_s22 = smov 0  }
   0x4 LB: > { %s1501_s4 = sadd.s32 4294967295, %s1732_s22   ;;  %s1785_s23 = sadd.s32 1, %s1732_s22   ;;  %s1732_s22 = sphi %s1772_s22, %s2785_s22   ;;  %s1728_s21 = sphi %s1770_s21, %s2784_s21   ;;  %s1724_s20 = sphi %s1768_s20, %s2783_s20  }
   0x5   : > { %s20_s24 = ssub.s32 %s1732_s22, %s1785_s23  ;;  %s23_s25 = sadd.s32 1, %s1728_s21 }
   0x6   : > { %p21_p0 = scmp.eq.s32.totalorder %s20_s24, 0  ;;  %p30_p1 = scmp.ne.s32.totalorder %s1728_s21, %s1724_s20 }
   0x7   : > { %p31_p2 = scmp.eq.s32.totalorder %s1732_s22, 0  ;;  %p1504_p4 = scmp.ge.s32.totalorder %s1732_s22, 2 }
   0x8   : > { %s1794_s26 = scalar_select %p21_p0, %s1728_s21, %s23_s25  }
   0x9   : > { %p32_p3 = por %p31_p2, %p30_p1  ;;  %178 = sbr.rel (%p1504_p4) target bundleno = 26 (0x1a), region = 32 }
   0xe   : > { %181 = sbr.rel (!%p32_p3) target bundleno = 26 (0x1a), region = 36  ;;  %s183_s27 = sand.u32 (%p32_p3), 1, %s1728_s21  }
   0xf   : > { %s1545_s28 = sshll.u32 (%p32_p3), %s1732_s22, 4  ;;  %s1505_s29 = sshll.u32 (%p32_p3), %s183_s27, 6 }
  0x10   : > { %s188_s7 = scalar_lea.vmem (%p32_p3), %s2615_s0, %s1545_s28  ;;  %s185_s8 = scalar_lea.vmem (%p32_p3), [#allocation3], %s1505_s29 }
  0x11   : > { %v201_v0 = vld [vmem:[%s188_s7] sm:$0xff] (%p32_p3)  ;;  %v203_v1 = vld [vmem:[%s188_s7 + $0x8] sm:$0xff] (%p32_p3) }
  0x12   : > { %v205_v2 = vld [vmem:[%s188_s7 + $0x20] sm:$0xff] (%p32_p3)  ;;  %202 = vst [vmem:[%s185_s8] sm:$0xff] (%p32_p3), %v201_v0  ;;  %v207_v3 = vld [vmem:[%s188_s7 + $0x28] sm:$0xff] (%p32_p3) }
  0x13   : > { %204 = vst [vmem:[%s185_s8 + $0x8] sm:$0xff] %v203_v1  ;;  %v209_v4 = vld [vmem:[%s188_s7 + $0x40] sm:$0xff]  ;;  %v211_v5 = vld [vmem:[%s188_s7 + $0x48] sm:$0xff] }
  0x14   : > { %206 = vst [vmem:[%s185_s8 + $0x10] sm:$0xff] %v205_v2  ;;  %v213_v6 = vld [vmem:[%s188_s7 + $0x60] sm:$0xff]  ;;  %v215_v7 = vld [vmem:[%s188_s7 + $0x68] sm:$0xff] }
  0x15   : > { %208 = vst [vmem:[%s185_s8 + $0x18] sm:$0xff] %v207_v3 }
  0x16   : > { %210 = vst [vmem:[%s185_s8 + $0x20] sm:$0xff] %v209_v4 }
  0x17   : > { %212 = vst [vmem:[%s185_s8 + $0x28] sm:$0xff] %v211_v5 }
  0x18   : > { %214 = vst [vmem:[%s185_s8 + $0x30] sm:$0xff] %v213_v6 }
  0x19   : > { %216 = vst [vmem:[%s185_s8 + $0x38] sm:$0xff] %v215_v7 }
  0x1a PF: > { %p1508_p5 = scmp.ge.s32.totalorder %s1732_s22, 1  ;;  %p221_p6 = scmp.lt.s32.totalorder %s1732_s22, 3 }
  0x1c   : > { %p222_p7 = pnand %p1508_p5, %p221_p6 }
  0x1e   : > { %225 = sbr.rel (%p222_p7) target bundleno = 546 (0x222), region = 59 }
  0x23   : > { %v299_v8 = vld [vmem:[%s2617_s2 + $0x78] sm:$0xff]  ;;  %s228_s11 = sand.u32 1, %s1724_s20   ;;  %v297_v9 = vld [vmem:[%s2617_s2 + $0x68] sm:$0xff]  ;;  %v1734_v10 = vmov 0   ;;  %v298_v17 = vld [vmem:[%s2617_s2 + $0x70] sm:$0xff]  ;;  %vm380_vm0 = vcmask 261120  }
  0x24   : > { %1579 = vset.pattern.permute.xlu0 %v1734_v10  ;;  %s1509_s14 = sshll.u32 %s228_s11, 6  ;;  %1580 = vset.pattern.permute.xlu1 %v1734_v10  ;;  %v260_v20 = vld [vmem:[%s2616_s1] sm:$0xff]  ;;  %v270_v21 = vld [vmem:[%s2616_s1 + $0x50] sm:$0xff]  ;;  %v1823_v22 = vld [vmem:[%s2616_s1 + $0x48] sm:$0xff]  ;;  %s1510_s16 = sshll.u32 %s1501_s4, 1 }
  0x25   : > { %377 = vperm.xlu0 %1579, %v299_v8   ;;  %367 = vperm.xlu1 %1580, %v297_v9   ;;  %s230_s15 = scalar_lea.vmem [#allocation3], %s1509_s14  ;;  %v296_v23 = vld [vmem:[%s2617_s2 + $0x60] sm:$0xff]  ;;  %v295_v24 = vld [vmem:[%s2617_s2 + $0x58] sm:$0xff]  ;;  %v293_v25 = vld [vmem:[%s2617_s2 + $0x48] sm:$0xff]  ;;  %p256_p8 = scmp.lt.s32.totalorder %s1510_s16, 3 }
  0x26   : > { %v282_v11 = vld [vmem:[%s230_s15 + $0x30] sm:$0xff]  ;;  %v283_v12 = vld [vmem:[%s230_s15 + $0x38] sm:$0xff]  ;;  %v280_v13 = vld [vmem:[%s230_s15 + $0x20] sm:$0xff]  ;;  %1581 = vset.pattern.permute.xlu2 %v1734_v10 }
  0x27   : > { %441 = vmatpush.msra.mxu0 %v282_v11  ;;  %1546 = vmatpush.msra.mxu2 %v282_v11  ;;  %v281_v14 = vld [vmem:[%s230_s15 + $0x28] sm:$0xff]  ;;  %v278_v15 = vld [vmem:[%s230_s15 + $0x10] sm:$0xff]  ;;  %v279_v16 = vld [vmem:[%s230_s15 + $0x18] sm:$0xff]  ;;  %s2787_s16 = smov (!%p256_p8, %s1510_s16), 3 }
  0x28   : > { %506 = vmatpush.msra.mxu1 %v283_v12  ;;  %1550 = vmatpush.msra.mxu3 %v283_v12  ;;  %v276_v18 = vld [vmem:[%s230_s15] sm:$0xff]  ;;  %v277_v19 = vld [vmem:[%s230_s15 + $0x8] sm:$0xff]  ;;  %v271_v27 = vld [vmem:[%s2616_s1 + $0x58] sm:$0xff]  ;;  %s1392_s15 = sld [smem:[#allocation2]]  ;;  %s258_s19 = scalar_lea.vmem %s2620_s5, %s2787_s16 }
  0x29   : > { %442 = vmatpush.msra.mxu0 %v280_v13  ;;  %1547 = vmatpush.msra.mxu2 %v280_v13  ;;  %v261_v26 = vld [vmem:[%s2616_s1 + $0x8] sm:$0xff]  ;;  %v292_v28 = vld [vmem:[%s2617_s2 + $0x40] sm:$0xff]  ;;  %v294_v29 = vld [vmem:[%s2617_s2 + $0x50] sm:$0xff] }
  0x2a   : > { %507 = vmatpush.msra.mxu1 %v281_v14  ;;  %1551 = vmatpush.msra.mxu3 %v281_v14  ;;  %v290_v30 = vld [vmem:[%s2617_s2 + $0x30] sm:$0xff]  ;;  %v272_v32 = vld [vmem:[%s2616_s1 + $0x60] sm:$0xff]  ;;  %v289_v33 = vld [vmem:[%s2617_s2 + $0x28] sm:$0xff] }
  0x2b   : > { %443 = vmatpush.msra.mxu0 %v278_v15  ;;  %1548 = vmatpush.msra.mxu2 %v278_v15  ;;  %v262_v31 = vld [vmem:[%s2616_s1 + $0x10] sm:$0xff]  ;;  %v291_v34 = vld [vmem:[%s2617_s2 + $0x38] sm:$0xff]  ;;  %v273_v37 = vld [vmem:[%s2616_s1 + $0x68] sm:$0xff] }
  0x2c   : > { %508 = vmatpush.msra.mxu1 %v279_v16  ;;  %1552 = vmatpush.msra.mxu3 %v279_v16  ;;  %v287_v35 = vld [vmem:[%s2617_s2 + $0x18] sm:$0xff]  ;;  %v286_v38 = vld [vmem:[%s2617_s2 + $0x10] sm:$0xff]  ;;  %v288_v39 = vld [vmem:[%s2617_s2 + $0x20] sm:$0xff] }
  0x2d   : > { %372 = vperm.xlu0 %1579, %v298_v17   ;;  %444 = vmatpush.msra.mxu0 %v276_v18  ;;  %v263_v36 = vld [vmem:[%s2616_s1 + $0x18] sm:$0xff]  ;;  %v284_v40 = vld [vmem:[%s2617_s2] sm:$0xff]  ;;  %v274_v42 = vld [vmem:[%s2616_s1 + $0x70] sm:$0xff] }
  0x2e   : > { %1549 = vmatpush.msra.mxu2 %v276_v18  ;;  %509 = vmatpush.msra.mxu1 %v277_v19  ;;  %v264_v41 = vld [vmem:[%s2616_s1 + $0x20] sm:$0xff]  ;;  %v285_v43 = vld [vmem:[%s2617_s2 + $0x8] sm:$0xff]  ;;  %v275_v45 = vld [vmem:[%s2616_s1 + $0x78] sm:$0xff] }
  0x2f   : > { %1553 = vmatpush.msra.mxu3 %v277_v19  ;;  %1511 = vmatmul.msk.f32.vlgmr.msra.gmra.mxu0 %vm380_vm0, %v260_v20  ;;  %v265_v44 = vld [vmem:[%s2616_s1 + $0x28] sm:$0xff]  ;;  %v266_v46 = vld [vmem:[%s2616_s1 + $0x30] sm:$0xff]  ;;  %v267_v47 = vld [vmem:[%s2616_s1 + $0x38] sm:$0xff] }
  0x30   : > { %1521 = vmatmul.msk.f32.vlgmr.msra.gmra.mxu2 %vm380_vm0, %v270_v21  ;;  %1527 = vmatmul.msk.f32.vlgmr.msra.gmra.mxu1 %vm380_vm0, %v260_v20  ;;  %v268_v48 = vld [vmem:[%s2616_s1 + $0x40] sm:$0xff] }
  0x31   : > { %1536 = vmatmul.msk.f32.vlgmr.msra.gmra.mxu3 %vm380_vm0, %v1823_v22  ;;  %362 = vperm.xlu1 %1580, %v296_v23  }
  0x32   : > { %357 = vperm.xlu2 %1581, %v295_v24  }
  0x35   : > { %347 = vperm.xlu0 %1579, %v293_v25  }
  0x37   : > { %1512 = vmatmul.msk.f32.gmra.mxu0 %vm380_vm0, %v261_v26 }
  0x38   : > { %1522 = vmatmul.msk.f32.gmra.mxu2 %vm380_vm0, %v271_v27  ;;  %1528 = vmatmul.msk.f32.gmra.mxu1 %vm380_vm0, %v261_v26 }
  0x39   : > { %1537 = vmatmul.msk.f32.gmra.mxu3 %vm380_vm0, %v270_v21  ;;  %342 = vperm.xlu1 %1580, %v292_v28  }
  0x3a   : > { %352 = vperm.xlu2 %1581, %v294_v29  }
  0x3d   : > { %332 = vperm.xlu0 %1579, %v290_v30  }
  0x3f   : > { %1513 = vmatmul.msk.f32.gmra.mxu0 %vm380_vm0, %v262_v31 }
  0x40   : > { %1523 = vmatmul.msk.f32.gmra.mxu2 %vm380_vm0, %v272_v32  ;;  %1529 = vmatmul.msk.f32.gmra.mxu1 %vm380_vm0, %v262_v31 }
  0x41   : > { %1538 = vmatmul.msk.f32.gmra.mxu3 %vm380_vm0, %v271_v27  ;;  %327 = vperm.xlu1 %1580, %v289_v33  }
  0x42   : > { %337 = vperm.xlu2 %1581, %v291_v34  }
  0x45   : > { %317 = vperm.xlu0 %1579, %v287_v35  }
  0x47   : > { %1514 = vmatmul.msk.f32.gmra.mxu0 %vm380_vm0, %v263_v36 }
  0x48   : > { %1524 = vmatmul.msk.f32.gmra.mxu2 %vm380_vm0, %v273_v37  ;;  %1530 = vmatmul.msk.f32.gmra.mxu1 %vm380_vm0, %v263_v36 }
  0x49   : > { %1539 = vmatmul.msk.f32.gmra.mxu3 %vm380_vm0, %v272_v32  ;;  %312 = vperm.xlu1 %1580, %v286_v38  }
  0x4a   : > { %322 = vperm.xlu2 %1581, %v288_v39  }
  0x4d   : > { %302 = vperm.xlu0 %1579, %v284_v40  }
  0x4f   : > { %1515 = vmatmul.msk.f32.gmra.mxu0 %vm380_vm0, %v264_v41 }
  0x50   : > { %1525 = vmatmul.msk.f32.gmra.mxu2 %vm380_vm0, %v274_v42  ;;  %1531 = vmatmul.msk.f32.gmra.mxu1 %vm380_vm0, %v264_v41 }
  0x51   : > { %1540 = vmatmul.msk.f32.gmra.mxu3 %vm380_vm0, %v273_v37 }
  0x52   : > { %307 = vperm.xlu2 %1581, %v285_v43  }
  0x57   : > { %1516 = vmatmul.msk.f32.gmra.mxu0 %vm380_vm0, %v265_v44 }
  0x58   : > { %1526 = vmatmul.msk.f32.gmra.mxu2 %vm380_vm0, %v275_v45  ;;  %1532 = vmatmul.msk.f32.gmra.mxu1 %vm380_vm0, %v265_v44 }
  0x59   : > { %1541 = vmatmul.msk.f32.gmra.mxu3 %vm380_vm0, %v274_v42 }
  0x5f   : > { %1517 = vmatmul.msk.f32.gmra.mxu0 %vm380_vm0, %v266_v46 }
  0x60   : > { %1533 = vmatmul.msk.f32.gmra.mxu1 %vm380_vm0, %v266_v46 }
  0x61   : > { %1542 = vmatmul.msk.f32.gmra.mxu3 %vm380_vm0, %v275_v45 }
  0x67   : > { %1518 = vmatmul.msk.f32.gmra.mxu0 %vm380_vm0, %v267_v47 }
  0x68   : > { %1534 = vmatmul.msk.f32.gmra.mxu1 %vm380_vm0, %v267_v47 }
  0x6f   : > { %1519 = vmatmul.msk.f32.gmra.mxu0 %vm380_vm0, %v268_v48 }
  0x70   : > { %1535 = vmatmul.msk.f32.gmra.mxu1 %vm380_vm0, %v268_v48 }
  0x77   : > { %1520 = vmatmul.msk.f32.gmra.mxu0 %vm380_vm0, %v1823_v22 }
  0x8c   : > { %v1937_v49 = vpop.permute.xlu2 %357 }
  0x94   : > { %v353_v50 = vpop.permute.xlu2 %352 }
  0x97   : > { %v1939_v51 = vpop.permute.xlu0 %377  ;;  %v1941_v52 = vpop.permute.xlu1 %367 }
  0x9c   : > { %v1943_v53 = vpop.permute.xlu2 %337 }
  0x9f   : > { %v1945_v54 = vpop.permute.xlu0 %372 }
  0xa3   : > { %v1947_v55 = vpop.permute.xlu1 %362 }
  0xa4   : > { %v1951_v57 = vpop.permute.xlu2 %322 }
  0xa7   : > { %v1949_v56 = vpop.permute.xlu0 %347 }
  0xab   : > { %v1953_v58 = vpop.permute.xlu1 %342 }
  0xac   : > { %v1955_v59 = vpop.f32.mrf.mxu0  ;;  %v308_v62 = vpop.permute.xlu2 %307 }
  0xad   : > { %v1957_v60 = vpop.f32.mrf.mxu1 }
  0xaf   : > { %v1959_v61 = vpop.permute.xlu0 %332 }
  0xb3   : > { %v476_v63 = vpop.f32.mrf.mxu2  ;;  %v1961_v0 = vpop.permute.xlu1 %327 }
  0xb4   : > { %v1963_v1 = vadd.f32 %v476_v63, %v353_v50  ;;  %v538_v2 = vpop.f32.mrf.mxu3  ;;  %v449_v3 = vpop.f32.mrf.mxu0 }
  0xb5   : > { %v1966_v4 = vadd.f32 %v538_v2, %v1949_v56  ;;  %v1968_v5 = vadd.f32 %v449_v3, %v308_v62  ;;  %v514_v6 = vpop.f32.mrf.mxu1 }
  0xb6   : > { %v579_v7 = vand.u32 2147483647, %v1963_v1  ;;  %v1972_v9 = vadd.f32 %v514_v6, %v308_v62  ;;  %vm1219_vm6 = vcmp.lt.f32.partialorder %v1963_v1, 0.0 }
  0xb7   : > { %2673 = vst [vmem:[#allocation4_spill] sm:$0xff] %v1968_v5  ;;  %v578_v8 = vand.u32 2147483647, %v1966_v4  ;;  %v561_v10 = vand.u32 2147483647, %v1968_v5  ;;  %v1976_v14 = vpop.permute.xlu0 %317  ;;  %vm1218_vm13 = vcmp.lt.f32.partialorder %v1966_v4, 0.0 }
  0xb8   : > { %2674 = vst [vmem:[#allocation5_spill] sm:$0xff] %v1972_v9  ;;  %v611_v11 = vmul.f32 0.70710677, %v579_v7  ;;  %v562_v13 = vand.u32 2147483647, %v1972_v9 }
  0xb9   : > { %v610_v12 = vmul.f32 0.70710677, %v578_v8  ;;  %v593_v19 = vmul.f32 0.70710677, %v561_v10 }
  0xba   : > { %v1027_v15 = vsub.f32 0.0, %v611_v11  ;;  %v643_v22 = vmul.f32 0.3275911, %v611_v11  ;;  %v594_v24 = vmul.f32 0.70710677, %v562_v13 }
  0xbb   : > { %v479_v16 = vpop.f32.mrf.mxu2  ;;  %v1026_v18 = vsub.f32 0.0, %v610_v12  ;;  %v313_v21 = vpop.permute.xlu1 %312  ;;  %v642_v23 = vmul.f32 0.3275911, %v610_v12  ;;  %v1009_v31 = vsub.f32 0.0, %v593_v19  ;;  %v625_v40 = vmul.f32 0.3275911, %v593_v19 }
  0xbc   : > { %v452_v17 = vpop.f32.mrf.mxu0  ;;  %v541_v20 = vpop.f32.mrf.mxu3  ;;  %v1979_v25 = vadd.f32 %v479_v16, %v1937_v49  ;;  %v1059_v27 = vmul.f32 %v1027_v15, %v611_v11  ;;  %v1010_v32 = vsub.f32 0.0, %v594_v24  ;;  %v675_v34 = vadd.f32 1.0, %v643_v22 }
  0xbd   : > { %v517_v26 = vpop.f32.mrf.mxu1  ;;  %v1981_v28 = vadd.f32 %v541_v20, %v353_v50  ;;  %v1983_v29 = vadd.f32 %v452_v17, %v313_v21  ;;  %v1058_v30 = vmul.f32 %v1026_v18, %v610_v12  ;;  %v674_v38 = vadd.f32 1.0, %v642_v23 }
  0xbe   : > { %v581_v33 = vand.u32 2147483647, %v1979_v25  ;;  %v1988_v37 = vadd.f32 %v517_v26, %v313_v21  ;;  %v1111_v39 = vmul.f32 1.442695, %v1059_v27  ;;  %v626_v41 = vmul.f32 0.3275911, %v594_v24 }
  0xbf   : > { %2675 = vst [vmem:[#allocation6_spill] sm:$0xff] %v1983_v29  ;;  %v580_v35 = vand.u32 2147483647, %v1981_v28  ;;  %v563_v36 = vand.u32 2147483647, %v1983_v29  ;;  %v1041_v44 = vmul.f32 %v1009_v31, %v593_v19  ;;  %v1042_v45 = vmul.f32 %v1010_v32, %v594_v24  ;;  %v303_v63 = vpop.permute.xlu0 %302 }
  0xc0   : > { %2676 = vst [vmem:[#allocation7_spill] sm:$0xff] %v1988_v37  ;;  %v1109_v43 = vmul.f32 1.442695, %v1058_v30  ;;  %v613_v46 = vmul.f32 0.70710677, %v581_v33  ;;  %1582 = vrcp.f32 %v675_v34  ;;  %v657_v2 = vadd.f32 1.0, %v625_v40 }
  0xc1   : > { %v612_v47 = vmul.f32 0.70710677, %v580_v35  ;;  %v595_v48 = vmul.f32 0.70710677, %v563_v36  ;;  %v564_v50 = vand.u32 2147483647, %v1988_v37  ;;  %1584 = vrcp.f32 %v674_v38 }
  0xc2   : > { %v1029_v62 = vsub.f32 0.0, %v613_v46  ;;  %1586 = vpow2.f32 %v1111_v39  ;;  %v658_v3 = vadd.f32 1.0, %v626_v41  ;;  %v1075_v8 = vmul.f32 1.442695, %v1041_v44 }
  0xc3   : > { %v1028_v6 = vsub.f32 0.0, %v612_v47  ;;  %v482_v7 = vpop.f32.mrf.mxu2  ;;  %1588 = vpow2.f32 %v1109_v43  ;;  %v1077_v10 = vmul.f32 1.442695, %v1042_v45  ;;  %v645_v11 = vmul.f32 0.3275911, %v613_v46 }
  0xc4   : > { %v1990_v42 = vpop.f32.mrf.mxu0  ;;  %v544_v12 = vpop.f32.mrf.mxu3  ;;  %v644_v13 = vmul.f32 0.3275911, %v612_v47  ;;  %v627_v15 = vmul.f32 0.3275911, %v595_v48  ;;  %v596_v16 = vmul.f32 0.70710677, %v564_v50  ;;  %v1994_v17 = vadd.f32 %v1955_v59, %v303_v63 }
  0xc5   : > { %v1061_v18 = vmul.f32 %v1029_v62, %v613_v46  ;;  %v1011_v19 = vsub.f32 0.0, %v595_v48  ;;  %v1997_v20 = vadd.f32 %v1957_v60, %v303_v63  ;;  %v2000_v21 = vadd.f32 %v482_v7, %v1947_v55  ;;  %v520_v32 = vpop.f32.mrf.mxu1 }
  0xc6   : > { %2677 = vst [vmem:[#allocation8_spill] sm:$0xff] %v1994_v17  ;;  %v2002_v22 = vpop.eup %1582  ;;  %v1060_v23 = vmul.f32 %v1028_v6, %v612_v47  ;;  %v1012_v24 = vsub.f32 0.0, %v596_v16  ;;  %v559_v26 = vand.u32 2147483647, %v1994_v17  ;;  %v2006_v27 = vadd.f32 %v544_v12, %v1937_v49 }
  0xc7   : > { %2678 = vst [vmem:[#allocation9_spill] sm:$0xff] %v1997_v20  ;;  %v2008_v30 = vpop.eup %1584  ;;  %1590 = vrcp.f32 %v657_v2  ;;  %v677_v59 = vadd.f32 1.0, %v645_v11  ;;  %v560_v31 = vand.u32 2147483647, %v1997_v20  ;;  %v583_v60 = vand.u32 2147483647, %v2000_v21 }
  0xc8   : > { %v2012_v33 = vpop.eup %1586  ;;  %1592 = vpow2.f32 %v1075_v8  ;;  %v676_v34 = vadd.f32 1.0, %v644_v13  ;;  %v2014_v35 = vmul.f32 0.70710677, %v559_v26  ;;  %v582_v36 = vand.u32 2147483647, %v2006_v27 }
  0xc9   : > { %v2019_v49 = vpop.eup %1588  ;;  %1594 = vrcp.f32 %v658_v3  ;;  %v1115_v39 = vmul.f32 1.442695, %v1061_v18  ;;  %v628_v40 = vmul.f32 0.3275911, %v596_v16  ;;  %v592_v41 = vmul.f32 0.70710677, %v560_v31 }
  0xca   : > { %2679 = vst [vmem:[#allocation10_spill] sm:$0xff] %v2019_v49  ;;  %1596 = vpow2.f32 %v1077_v10  ;;  %v1113_v43 = vmul.f32 1.442695, %v1060_v23  ;;  %v1043_v44 = vmul.f32 %v1011_v19, %v595_v48  ;;  %v1044_v45 = vmul.f32 %v1012_v24, %v596_v16 }
  0xcb   : > { %1598 = vrcp.f32 %v677_v59  ;;  %v659_v46 = vadd.f32 1.0, %v627_v15  ;;  %v1008_v47 = vsub.f32 0.0, %v592_v41  ;;  %v615_v50 = vmul.f32 0.70710677, %v583_v60  ;;  %v485_v7 = vpop.f32.mrf.mxu2 }
  0xcc   : > { %v2017_v38 = vpop.f32.mrf.mxu0  ;;  %1600 = vrcp.f32 %v676_v34  ;;  %v623_v62 = vmul.f32 0.3275911, %v2014_v35  ;;  %v614_v63 = vmul.f32 0.70710677, %v582_v36  ;;  %v660_v6 = vadd.f32 1.0, %v628_v40  ;;  %v547_v12 = vpop.f32.mrf.mxu3 }
  0xcd   : > { %v2022_v2 = vpop.eup %1590  ;;  %1602 = vpow2.f32 %v1115_v39  ;;  %v1031_v3 = vsub.f32 0.0, %v615_v50  ;;  %v1079_v10 = vmul.f32 1.442695, %v1043_v44  ;;  %v1081_v48 = vmul.f32 1.442695, %v1044_v45 }
  0xce   : > { %2680 = vst [vmem:[#allocation11_spill] sm:$0xff] %v2022_v2  ;;  %v2024_v8 = vpop.eup %1592  ;;  %1604 = vpow2.f32 %v1113_v43  ;;  %v624_v11 = vmul.f32 0.3275911, %v592_v41  ;;  %v1040_v15 = vmul.f32 %v1008_v47, %v592_v41  ;;  %v647_v16 = vmul.f32 0.3275911, %v615_v50 }
  0xcf   : > { %2681 = vst [vmem:[#allocation12_spill] sm:$0xff] %v2024_v8  ;;  %v2026_v13 = vpop.eup %1594  ;;  %1606 = vrcp.f32 %v659_v46  ;;  %v2030_v18 = vadd.f32 %v1990_v42, %v1976_v14  ;;  %v655_v23 = vadd.f32 1.0, %v623_v62  ;;  %v646_v24 = vmul.f32 0.3275911, %v614_v63  ;;  %v523_v42 = vpop.f32.mrf.mxu1 }
  0xd0   : > { %2682 = vst [vmem:[#allocation13_spill] sm:$0xff] %v2026_v13  ;;  %v2032_v19 = vpop.eup %1596  ;;  %v2035_v26 = vadd.f32 %v520_v32, %v1976_v14  ;;  %v2038_v59 = vadd.f32 %v485_v7, %v1941_v52  ;;  %v1063_v60 = vmul.f32 %v1031_v3, %v615_v50  ;;  %v1030_v34 = vsub.f32 0.0, %v614_v63 }
  0xd1   : > { %2683 = vst [vmem:[#allocation14_spill] sm:$0xff] %v2030_v18  ;;  %v2040_v31 = vpop.eup %1598  ;;  %v565_v36 = vand.u32 2147483647, %v2030_v18  ;;  %v2044_v39 = vadd.f32 %v547_v12, %v1947_v55  ;;  %1608 = vpow2.f32 %v1079_v10  ;;  %v656_v41 = vadd.f32 1.0, %v624_v11 }
  0xd2   : > { %2684 = vst [vmem:[#allocation15_spill] sm:$0xff] %v2032_v19  ;;  %v2046_v40 = vpop.eup %1600  ;;  %v566_v14 = vand.u32 2147483647, %v2035_v26  ;;  %v585_v32 = vand.u32 2147483647, %v2038_v59  ;;  %1610 = vrcp.f32 %v660_v6  ;;  %v679_v55 = vadd.f32 1.0, %v647_v16 }
  0xd3   : > { %2685 = vst [vmem:[#allocation16_spill] sm:$0xff] %v2035_v26  ;;  %v2052_v44 = vpop.eup %1602  ;;  %v1073_v45 = vmul.f32 1.442695, %v1040_v15  ;;  %v597_v46 = vmul.f32 0.70710677, %v565_v36  ;;  %1612 = vpow2.f32 %v1081_v48  ;;  %v1062_v7 = vmul.f32 %v1030_v34, %v614_v63  ;;  %v488_v16 = vpop.f32.mrf.mxu2 }
  0xd4   : > { %v2050_v43 = vpop.f32.mrf.mxu0  ;;  %v2054_v47 = vpop.eup %1604  ;;  %v598_v50 = vmul.f32 0.70710677, %v566_v14  ;;  %1614 = vrcp.f32 %v655_v23  ;;  %v1119_v3 = vmul.f32 1.442695, %v1063_v60  ;;  %v584_v10 = vand.u32 2147483647, %v2044_v39 }
  0xd5   : > { %2686 = vst [vmem:[#allocation17_spill] sm:$0xff] %v2054_v47  ;;  %v2056_v62 = vpop.eup %1606  ;;  %1616 = vrcp.f32 %v656_v41  ;;  %v678_v11 = vadd.f32 1.0, %v646_v24  ;;  %v1013_v12 = vsub.f32 0.0, %v597_v46  ;;  %v617_v17 = vmul.f32 0.70710677, %v585_v32  ;;  %v550_v34 = vpop.f32.mrf.mxu3 }
  0xd6   : > { %2687 = vst [vmem:[#allocation18_spill] sm:$0xff] %v2056_v62  ;;  %1618 = vpow2.f32 %v1073_v45  ;;  %v629_v6 = vmul.f32 0.3275911, %v597_v46  ;;  %v1014_v15 = vsub.f32 0.0, %v598_v50  ;;  %v630_v48 = vmul.f32 0.3275911, %v598_v50 }
  0xd7   : > { %v2059_v36 = vpop.eup %1608  ;;  %1620 = vrcp.f32 %v679_v55  ;;  %v1117_v23 = vmul.f32 1.442695, %v1062_v7  ;;  %v1033_v60 = vsub.f32 0.0, %v617_v17  ;;  %v616_v63 = vmul.f32 0.70710677, %v584_v10  ;;  %v526_v7 = vpop.f32.mrf.mxu1 }
  0xd8   : > { %2688 = vst [vmem:[#allocation19_spill] sm:$0xff] %v2059_v36  ;;  %v2061_v14 = vpop.eup %1610  ;;  %1622 = vpow2.f32 %v1119_v3  ;;  %v1045_v24 = vmul.f32 %v1013_v12, %v597_v46  ;;  %v649_v41 = vmul.f32 0.3275911, %v617_v17  ;;  %v2067_v32 = vadd.f32 %v2017_v38, %v1951_v57 }
  0xd9   : > { %2689 = vst [vmem:[#allocation20_spill] sm:$0xff] %v2061_v14  ;;  %v2063_v5 = vpop.eup %1612  ;;  %1624 = vrcp.f32 %v678_v11  ;;  %v661_v55 = vadd.f32 1.0, %v629_v6  ;;  %v1046_v29 = vmul.f32 %v1014_v15, %v598_v50  ;;  %v2072_v8 = vadd.f32 %v523_v42, %v1951_v57 }
  0xda   : > { %2690 = vst [vmem:[#allocation21_spill] sm:$0xff] %v2063_v5  ;;  %v2069_v45 = vpop.eup %1614  ;;  %v2075_v3 = vadd.f32 %v488_v16, %v1945_v54  ;;  %v662_v11 = vadd.f32 1.0, %v630_v48  ;;  %v1032_v46 = vsub.f32 0.0, %v616_v63  ;;  %v567_v12 = vand.u32 2147483647, %v2067_v32 }
  0xdb   : > { %2691 = vst [vmem:[#allocation22_spill] sm:$0xff] %v2067_v32  ;;  %v2077_v10 = vpop.eup %1616  ;;  %v2081_v38 = vadd.f32 %v550_v34, %v1941_v52  ;;  %v1065_v50 = vmul.f32 %v1033_v60, %v617_v17  ;;  %v648_v57 = vmul.f32 0.3275911, %v616_v63  ;;  %v568_v42 = vand.u32 2147483647, %v2072_v8 }
  0xdc   : > { %2692 = vst [vmem:[#allocation23_spill] sm:$0xff] %v2069_v45  ;;  %v2083_v36 = vpop.f32.mrf.mxu0  ;;  %v2085_v6 = vpop.eup %1618  ;;  %v587_v15 = vand.u32 2147483647, %v2075_v3  ;;  %1626 = vpow2.f32 %v1117_v23  ;;  %v1083_v48 = vmul.f32 1.442695, %v1045_v24  ;;  %v681_v60 = vadd.f32 1.0, %v649_v41 }
  0xdd   : > { %2693 = vst [vmem:[#allocation24_spill] sm:$0xff] %v2072_v8  ;;  %v2089_v16 = vpop.eup %1620  ;;  %v2091_v20 = vmul.f32 0.70710677, %v567_v12  ;;  %v586_v19 = vand.u32 2147483647, %v2081_v38  ;;  %1628 = vrcp.f32 %v661_v55  ;;  %v1064_v18 = vmul.f32 %v1032_v46, %v616_v63 }
  0xde   : > { %2694 = vst [vmem:[#allocation25_spill] sm:$0xff] %v2077_v10  ;;  %v2094_v52 = vpop.eup %1622  ;;  %v1085_v34 = vmul.f32 1.442695, %v1046_v29  ;;  %v600_v45 = vmul.f32 0.70710677, %v568_v42  ;;  %1630 = vrcp.f32 %v662_v11  ;;  %v1007_v32 = vsub.f32 0.0, %v2014_v35  ;;  %v491_v42 = vpop.f32.mrf.mxu2 }
  0xdf   : > { %2695 = vst [vmem:[#allocation26_spill] sm:$0xff] %v2085_v6  ;;  %v619_v6 = vmul.f32 0.70710677, %v587_v15  ;;  %v2096_v17 = vpop.eup %1624  ;;  %v618_v5 = vmul.f32 0.70710677, %v586_v19  ;;  %1632 = vpow2.f32 %v1083_v48  ;;  %v680_v41 = vadd.f32 1.0, %v648_v57  ;;  %v553_v11 = vpop.f32.mrf.mxu3 }
  0xe0   : > { %v1123_v2 = vmul.f32 1.442695, %v1065_v50  ;;  %v631_v23 = vmul.f32 0.3275911, %v2091_v20  ;;  %v1016_v24 = vsub.f32 0.0, %v600_v45  ;;  %1634 = vpow2.f32 %v1085_v34  ;;  %v529_v34 = vpop.f32.mrf.mxu1 }
  0xe1   : > { %v1035_v12 = vsub.f32 0.0, %v619_v6  ;;  %v632_v9 = vmul.f32 0.3275911, %v600_v45  ;;  %v1034_v62 = vsub.f32 0.0, %v618_v5  ;;  %v651_v29 = vmul.f32 0.3275911, %v619_v6 }
  0xe2   : > { %v650_v55 = vmul.f32 0.3275911, %v618_v5  ;;  %v2100_v15 = vpop.eup %1626  ;;  %1636 = vrcp.f32 %v681_v60  ;;  %v1121_v63 = vmul.f32 1.442695, %v1064_v18  ;;  %v1048_v19 = vmul.f32 %v1016_v24, %v600_v45 }
  0xe3   : > { %2696 = vst [vmem:[#allocation27_spill] sm:$0xff] %v2100_v15  ;;  %v2102_v46 = vpop.eup %1628  ;;  %1638 = vpow2.f32 %v1123_v2  ;;  %v663_v50 = vadd.f32 1.0, %v631_v23  ;;  %v1067_v48 = vmul.f32 %v1035_v12, %v619_v6  ;;  %v2106_v10 = vadd.f32 %v2050_v43, %v1961_v0 }
  0xe4   : > { %2697 = vst [vmem:[#allocation28_spill] sm:$0xff] %v2102_v46  ;;  %v2108_v37 = vpop.eup %1630  ;;  %v664_v13 = vadd.f32 1.0, %v632_v9  ;;  %v1066_v14 = vmul.f32 %v1034_v62, %v618_v5  ;;  %v2111_v60 = vadd.f32 %v526_v7, %v1961_v0  ;;  %v2114_v18 = vadd.f32 %v491_v42, %v1939_v51  ;;  %v467_v45 = vpop.f32.mrf.mxu0 }
  0xe5   : > { %2698 = vst [vmem:[#allocation29_spill] sm:$0xff] %v2106_v10  ;;  %v683_v57 = vadd.f32 1.0, %v651_v29  ;;  %v682_v2 = vadd.f32 1.0, %v650_v55  ;;  %v569_v6 = vand.u32 2147483647, %v2106_v10  ;;  %v2118_v23 = vadd.f32 %v553_v11, %v1945_v54  ;;  %v2120_v43 = vpop.eup %1632 }
  0xe6   : > { %2699 = vst [vmem:[#allocation30_spill] sm:$0xff] %v2108_v37  ;;  %1640 = vrcp.f32 %v680_v41  ;;  %v1089_v24 = vmul.f32 1.442695, %v1048_v19  ;;  %v570_v5 = vand.u32 2147483647, %v2111_v60  ;;  %v2124_v9 = vpop.eup %1634  ;;  %v1015_v49 = vsub.f32 0.0, %v2091_v20 }
  0xe7   : > { %2700 = vst [vmem:[#allocation31_spill] sm:$0xff] %v2111_v60  ;;  %v589_v0 = vand.u32 2147483647, %v2114_v18  ;;  %1642 = vpow2.f32 %v1121_v63  ;;  %v1127_v62 = vmul.f32 1.442695, %v1067_v48  ;;  %vm1229_vm1 = vcmp.lt.f32.partialorder %v2114_v18, 0.0 }
  0xe8   : > { %2701 = vst [vmem:[#allocation32_spill] sm:$0xff] %v2120_v43  ;;  %v601_v7 = vmul.f32 0.70710677, %v569_v6  ;;  %v588_v12 = vand.u32 2147483647, %v2118_v23  ;;  %v2127_v29 = vpop.eup %1636  ;;  %1644 = vrcp.f32 %v663_v50  ;;  %v532_v8 = vpop.f32.mrf.mxu1  ;;  %vm1227_vm2 = vcmp.lt.f32.partialorder %v2075_v3, 0.0 }
  0xe9   : > { %2702 = vst [vmem:[#allocation33_spill] sm:$0xff] %v2124_v9  ;;  %v1125_v54 = vmul.f32 1.442695, %v1066_v14  ;;  %v602_v55 = vmul.f32 0.70710677, %v570_v5  ;;  %v2129_v11 = vpop.eup %1638  ;;  %1646 = vrcp.f32 %v664_v13  ;;  %v1039_v13 = vmul.f32 %v1007_v32, %v2014_v35 }
  0xea   : > { %v621_v42 = vmul.f32 0.70710677, %v589_v0  ;;  %v633_v41 = vmul.f32 0.3275911, %v601_v7  ;;  %v1017_v19 = vsub.f32 0.0, %v601_v7  ;;  %1648 = vpow2.f32 %v1089_v24  ;;  %v556_v0 = vpop.f32.mrf.mxu3 }
  0xeb   : > { %v620_v43 = vmul.f32 0.70710677, %v588_v12  ;;  %v634_v46 = vmul.f32 0.3275911, %v602_v55  ;;  %v1018_v9 = vsub.f32 0.0, %v602_v55  ;;  %1650 = vrcp.f32 %v683_v57 }
  0xec   : > { %v1037_v63 = vsub.f32 0.0, %v621_v42  ;;  %v1049_v48 = vmul.f32 %v1017_v19, %v601_v7  ;;  %v2131_v10 = vpop.eup %1640  ;;  %1652 = vpow2.f32 %v1127_v62  ;;  %v665_v50 = vadd.f32 1.0, %v633_v41 }
  0xed   : > { %v1036_v6 = vsub.f32 0.0, %v620_v43  ;;  %v1050_v14 = vmul.f32 %v1018_v9, %v602_v55  ;;  %v653_v5 = vmul.f32 0.3275911, %v621_v42  ;;  %v2133_v26 = vpop.eup %1642  ;;  %1654 = vrcp.f32 %v682_v2  ;;  %v470_v9 = vpop.f32.mrf.mxu0 }
  0xee   : > { %v666_v12 = vadd.f32 1.0, %v634_v46  ;;  %v652_v24 = vmul.f32 0.3275911, %v620_v43  ;;  %v2136_v37 = vpop.eup %1644  ;;  %1656 = vpow2.f32 %v1125_v54  ;;  %v1091_v57 = vmul.f32 1.442695, %v1049_v48 }
  0xef   : > { %2703 = vst [vmem:[#allocation34_spill] sm:$0xff] %v2136_v37  ;;  %v1069_v7 = vmul.f32 %v1037_v63, %v621_v42  ;;  %v2140_v62 = vadd.f32 %v2083_v36, %v1959_v61  ;;  %v2142_v55 = vpop.eup %1646  ;;  %v1093_v41 = vmul.f32 1.442695, %v1050_v14  ;;  %v1068_v19 = vmul.f32 %v1036_v6, %v620_v43 }
  0xf0   : > { %2705 = vst [vmem:[#allocation36_spill] sm:$0xff] %v2142_v55  ;;  %v2145_v35 = vadd.f32 %v529_v34, %v1959_v61  ;;  %v2148_v32 = vadd.f32 %v556_v0, %v1939_v51  ;;  %v2150_v46 = vpop.eup %1648  ;;  %1658 = vrcp.f32 %v665_v50  ;;  %v685_v2 = vadd.f32 1.0, %v653_v5 }
  0xf1   : > { %2704 = vst [vmem:[#allocation35_spill] sm:$0xff] %v2140_v62  ;;  %v571_v54 = vand.u32 2147483647, %v2140_v62  ;;  %v2154_v36 = vadd.f32 %v467_v45, %v1943_v53  ;;  %v2156_v42 = vpop.eup %1650  ;;  %1660 = vrcp.f32 %v666_v12  ;;  %v684_v63 = vadd.f32 1.0, %v652_v24 }
  0xf2   : > { %2706 = vst [vmem:[#allocation37_spill] sm:$0xff] %v2145_v35  ;;  %v572_v43 = vand.u32 2147483647, %v2145_v35  ;;  %v590_v61 = vand.u32 2147483647, %v2148_v32  ;;  %v2160_v34 = vpop.eup %1652  ;;  %1662 = vpow2.f32 %v1091_v57  ;;  %vm1225_vm3 = vcmp.lt.f32.partialorder %v2038_v59, 0.0 }
  0xf3   : > { %2707 = vst [vmem:[#allocation38_spill] sm:$0xff] %v2150_v46  ;;  %v1131_v51 = vmul.f32 1.442695, %v1069_v7  ;;  %v603_v48 = vmul.f32 0.70710677, %v571_v54  ;;  %v2163_v50 = vpop.eup %1654  ;;  %1664 = vpow2.f32 %v1093_v41  ;;  %vm1223_vm4 = vcmp.lt.f32.partialorder %v2000_v21, 0.0 }
  0xf4   : > { %2708 = vst [vmem:[#allocation39_spill] sm:$0xff] %v2154_v36  ;;  %v573_v6 = vand.u32 2147483647, %v2154_v36  ;;  %v1129_v45 = vmul.f32 1.442695, %v1068_v19  ;;  %v2165_v0 = vpop.eup %1656  ;;  %1666 = vrcp.f32 %v685_v2  ;;  %v535_v2 = vpop.f32.mrf.mxu1  ;;  %vm1221_vm5 = vcmp.lt.f32.partialorder %v1979_v25, 0.0 }
  0xf5   : > { %v604_v14 = vmul.f32 0.70710677, %v572_v43  ;;  %v622_v5 = vmul.f32 0.70710677, %v590_v61  ;;  %v635_v12 = vmul.f32 0.3275911, %v603_v48  ;;  %1668 = vpow2.f32 %v1131_v51 }
  0xf6   : > { %v1019_v24 = vsub.f32 0.0, %v603_v48  ;;  %v605_v37 = vmul.f32 0.70710677, %v573_v6  ;;  %v2167_v7 = vpop.eup %1658  ;;  %1670 = vrcp.f32 %v684_v63  ;;  %v2173_v6 = vmul.f32 1.442695, %v1039_v13 }
  0xf7   : > { %v636_v62 = vmul.f32 0.3275911, %v604_v14  ;;  %v1020_v46 = vsub.f32 0.0, %v604_v14  ;;  %v654_v60 = vmul.f32 0.3275911, %v622_v5  ;;  %v1038_v57 = vsub.f32 0.0, %v622_v5  ;;  %v2169_v41 = vpop.eup %1660 }
  0xf8   : > { %2709 = vst [vmem:[#allocation40_spill] sm:$0xff] %v2167_v7  ;;  %v667_v54 = vadd.f32 1.0, %v635_v12  ;;  %v1051_v36 = vmul.f32 %v1019_v24, %v603_v48  ;;  %v1021_v55 = vsub.f32 0.0, %v605_v37  ;;  %v2171_v35 = vpop.eup %1662  ;;  %1672 = vpow2.f32 %v1129_v45  ;;  %v473_v7 = vpop.f32.mrf.mxu0 }
  0xf9   : > { %2710 = vst [vmem:[#allocation41_spill] sm:$0xff] %v2169_v41  ;;  %v668_v19 = vadd.f32 1.0, %v636_v62  ;;  %v1052_v43 = vmul.f32 %v1020_v46, %v604_v14  ;;  %v1070_v61 = vmul.f32 %v1038_v57, %v622_v5  ;;  %v2176_v51 = vpop.eup %1664  ;;  %v686_v12 = vadd.f32 1.0, %v654_v60 }
  0xfa   : > { %2711 = vst [vmem:[#allocation42_spill] sm:$0xff] %v2171_v35  ;;  %v1095_v47 = vmul.f32 1.442695, %v1051_v36  ;;  %v637_v24 = vmul.f32 0.3275911, %v605_v37  ;;  %v2179_v63 = vadd.f32 %v532_v8, %v1943_v53  ;;  %v2181_v62 = vpop.eup %1666  ;;  %1674 = vrcp.f32 %v667_v54 }
  0xfb   : > { %2712 = vst [vmem:[#allocation43_spill] sm:$0xff] %v2173_v6  ;;  %v1097_v48 = vmul.f32 1.442695, %v1052_v43  ;;  %v1053_v46 = vmul.f32 %v1021_v55, %v605_v37  ;;  %v2184_v13 = vadd.f32 %v470_v9, %v1953_v58  ;;  %v2187_v14 = vadd.f32 %v535_v2, %v1953_v58  ;;  %v2193_v5 = vpop.eup %1668 }
  0xfc   : > { %2713 = vst [vmem:[#allocation44_spill] sm:$0xff] %v2176_v51  ;;  %1676 = vrcp.f32 %v668_v19  ;;  %v1133_v36 = vmul.f32 1.442695, %v1070_v61  ;;  %v574_v45 = vand.u32 2147483647, %v2179_v63  ;;  %v2191_v60 = vadd.f32 %v473_v7, %v1949_v56  ;;  %v2198_v9 = vpop.eup %1670 }
  0xfd   : > { %2714 = vst [vmem:[#allocation45_spill] sm:$0xff] %v2179_v63  ;;  %v1047_v53 = vmul.f32 %v1015_v49, %v2091_v20  ;;  %1678 = vpow2.f32 %v1095_v47  ;;  %v575_v37 = vand.u32 2147483647, %v2184_v13  ;;  %v576_v8 = vand.u32 2147483647, %v2187_v14 }
  0xfe   : > { %2715 = vst [vmem:[#allocation46_spill] sm:$0xff] %v2184_v13  ;;  %1680 = vpow2.f32 %v1097_v48  ;;  %v669_v58 = vadd.f32 1.0, %v637_v24  ;;  %v606_v55 = vmul.f32 0.70710677, %v574_v45  ;;  %v577_v57 = vand.u32 2147483647, %v2191_v60  ;;  %v2201_v54 = vpop.eup %1672 }
  0xff   : > { %2716 = vst [vmem:[#allocation47_spill] sm:$0xff] %v2191_v60  ;;  %1682 = vrcp.f32 %v686_v12  ;;  %v1099_v56 = vmul.f32 1.442695, %v1053_v46  ;;  %v607_v7 = vmul.f32 0.70710677, %v575_v37  ;;  %vm1230_vm7 = vcmp.lt.f32.partialorder %v2148_v32, 0.0 }
 0x100   : > { %v608_v19 = vmul.f32 0.70710677, %v576_v8  ;;  %1684 = vpow2.f32 %v1133_v36  ;;  %v638_v20 = vmul.f32 0.3275911, %v606_v55  ;;  %v1022_v49 = vsub.f32 0.0, %v606_v55  ;;  %v2203_v43 = vpop.eup %1674 }
 0x101   : > { %v609_v47 = vmul.f32 0.70710677, %v577_v57  ;;  %2717 = vst [vmem:[#allocation48_spill] sm:$0xff] %v2203_v43  ;;  %v639_v61 = vmul.f32 0.3275911, %v607_v7  ;;  %v1023_v2 = vsub.f32 0.0, %v607_v7  ;;  %1686 = vrcp.f32 %v669_v58 }
 0x102   : > { %v640_v6 = vmul.f32 0.3275911, %v608_v19  ;;  %v1024_v48 = vsub.f32 0.0, %v608_v19  ;;  %v2205_v24 = vpop.eup %1676  ;;  %v670_v45 = vadd.f32 1.0, %v638_v20  ;;  %v1054_v35 = vmul.f32 %v1022_v49, %v606_v55 }
 0x103   : > { %2718 = vst [vmem:[#allocation49_spill] sm:$0xff] %v2205_v24  ;;  %v641_v51 = vmul.f32 0.3275911, %v609_v47  ;;  %v1025_v13 = vsub.f32 0.0, %v609_v47  ;;  %v2207_v12 = vpop.eup %1678  ;;  %v671_v46 = vadd.f32 1.0, %v639_v61  ;;  %v1055_v36 = vmul.f32 %v1023_v2, %v607_v7 }
 0x104   : > { %2719 = vst [vmem:[#allocation50_spill] sm:$0xff] %v2207_v12  ;;  %v1056_v37 = vmul.f32 %v1024_v48, %v608_v19  ;;  %v2209_v8 = vpop.eup %1680  ;;  %v2211_v57 = vmul.f32 1.442695, %v1047_v53  ;;  %1688 = vpow2.f32 %v1099_v56  ;;  %v1101_v43 = vmul.f32 1.442695, %v1054_v35 }
 0x105   : > { %2720 = vst [vmem:[#allocation51_spill] sm:$0xff] %v2209_v8  ;;  %v1057_v41 = vmul.f32 %v1025_v13, %v609_v47  ;;  %v2213_v60 = vpop.eup %1682  ;;  %1690 = vrcp.f32 %v670_v45  ;;  %v1103_v20 = vmul.f32 1.442695, %v1055_v36  ;;  %v672_v55 = vadd.f32 1.0, %v640_v6 }
 0x106   : > { %2721 = vst [vmem:[#allocation52_spill] sm:$0xff] %v2211_v57  ;;  %v749_v49 = vmul.f32 1.0614054, %v2181_v62  ;;  %v2216_v24 = vpop.eup %1684  ;;  %1692 = vrcp.f32 %v671_v46  ;;  %v1105_v58 = vmul.f32 1.442695, %v1056_v37  ;;  %v673_v7 = vadd.f32 1.0, %v641_v51 }
 0x107   : > { %v747_v19 = vmul.f32 1.0614054, %v2156_v42  ;;  %1694 = vpow2.f32 %v1101_v43  ;;  %v1107_v53 = vmul.f32 1.442695, %v1057_v41  ;;  %v745_v35 = vmul.f32 1.0614054, %v2127_v29  ;;  %v2224_v47 = vpop.eup %1686 }
 0x108   : > { %v781_v61 = vadd.f32 -1.4531521, %v749_v49  ;;  %1696 = vpow2.f32 %v1103_v20  ;;  %v2221_v13 = vmul.f32 0.5, %v2114_v18  ;;  %v743_v6 = vmul.f32 1.0614054, %v2089_v16  ;;  %2722 = vst [vmem:[#allocation53_spill] sm:$0xff] %v2224_v47 }
 0x109   : > { %v779_v56 = vadd.f32 -1.4531521, %v747_v19  ;;  %1698 = vrcp.f32 %v672_v55  ;;  %v2228_v51 = vmul.f32 0.5, %v2075_v3  ;;  %v777_v43 = vadd.f32 -1.4531521, %v745_v35 }
 0x10a   : > { %v813_v2 = vmul.f32 %v2181_v62, %v781_v61  ;;  %v2230_v41 = vpop.eup %1688  ;;  %v2234_v45 = vmul.f32 0.5, %v2038_v59  ;;  %v775_v46 = vadd.f32 -1.4531521, %v743_v6  ;;  %v741_v36 = vmul.f32 1.0614054, %v2040_v31 }
 0x10b   : > { %2723 = vst [vmem:[#allocation54_spill] sm:$0xff] %v2230_v41  ;;  %v811_v48 = vmul.f32 %v2156_v42, %v779_v56  ;;  %v2237_v37 = vpop.eup %1690  ;;  %1700 = vpow2.f32 %v1105_v58  ;;  %v809_v55 = vmul.f32 %v2127_v29, %v777_v43  ;;  %v2241_v49 = vmul.f32 0.5, %v2000_v21 }
 0x10c   : > { %v845_v20 = vadd.f32 1.4214138, %v813_v2  ;;  %v2243_v19 = vpop.eup %1692  ;;  %v807_v35 = vmul.f32 %v2089_v16, %v775_v46  ;;  %v773_v56 = vadd.f32 -1.4531521, %v741_v36  ;;  %v750_v57 = vmul.f32 1.0614054, %v2213_v60 }
 0x10d   : > { %2724 = vst [vmem:[#allocation55_spill] sm:$0xff] %v2243_v19  ;;  %v843_v61 = vadd.f32 1.4214138, %v811_v48  ;;  %v2247_v6 = vpop.eup %1694  ;;  %1702 = vrcp.f32 %v673_v7  ;;  %v841_v58 = vadd.f32 1.4214138, %v809_v55  ;;  %v1317_v3 = vmul.f32 0.5, %v1979_v25 }
 0x10e   : > { %2725 = vst [vmem:[#allocation56_spill] sm:$0xff] %v2247_v6  ;;  %v877_v12 = vmul.f32 %v2181_v62, %v845_v20  ;;  %v739_v2 = vmul.f32 1.0614054, %v2002_v22  ;;  %v2251_v43 = vpop.eup %1696  ;;  %v839_v8 = vadd.f32 1.4214138, %v807_v35  ;;  %v805_v48 = vmul.f32 %v2040_v31, %v773_v56 }
 0x10f   : > { %2726 = vst [vmem:[#allocation57_spill] sm:$0xff] %v2251_v43  ;;  %v875_v41 = vmul.f32 %v2156_v42, %v843_v61  ;;  %v782_v47 = vadd.f32 -1.4531521, %v750_v57  ;;  %v2255_v46 = vpop.eup %1698  ;;  %1704 = vpow2.f32 %v1107_v53  ;;  %v873_v19 = vmul.f32 %v2127_v29, %v841_v58 }
 0x110   : > { %v909_v36 = vadd.f32 -0.28449672, %v877_v12  ;;  %v771_v7 = vadd.f32 -1.4531521, %v739_v2  ;;  %v871_v20 = vmul.f32 %v2089_v16, %v839_v8  ;;  %v837_v55 = vadd.f32 1.4214138, %v805_v48 }
 0x111   : > { %v907_v6 = vadd.f32 -0.28449672, %v875_v41  ;;  %v814_v63 = vmul.f32 %v2213_v60, %v782_v47  ;;  %v2260_v43 = vpop.eup %1700  ;;  %v905_v35 = vadd.f32 -0.28449672, %v873_v19  ;;  %v748_v56 = vmul.f32 1.0614054, %v2198_v9 }
 0x112   : > { %2727 = vst [vmem:[#allocation58_spill] sm:$0xff] %v2260_v43  ;;  %v941_v61 = vmul.f32 %v2181_v62, %v909_v36  ;;  %v803_v57 = vmul.f32 %v2002_v22, %v771_v7  ;;  %v903_v53 = vadd.f32 -0.28449672, %v871_v20  ;;  %v869_v58 = vmul.f32 %v2040_v31, %v837_v55 }
 0x113   : > { %v939_v12 = vmul.f32 %v2156_v42, %v907_v6  ;;  %v846_v41 = vadd.f32 1.4214138, %v814_v63  ;;  %v2267_v2 = vpop.eup %1702  ;;  %v937_v47 = vmul.f32 %v2127_v29, %v905_v35  ;;  %v780_v43 = vadd.f32 -1.4531521, %v748_v56 }
 0x114   : > { %v973_v8 = vadd.f32 0.2548296, %v941_v61  ;;  %v835_v48 = vadd.f32 1.4214138, %v803_v57  ;;  %v935_v36 = vmul.f32 %v2089_v16, %v903_v53  ;;  %v901_v7 = vadd.f32 -0.28449672, %v869_v58 }
 0x115   : > { %v971_v19 = vadd.f32 0.2548296, %v939_v12  ;;  %v878_v15 = vmul.f32 %v2213_v60, %v846_v41  ;;  %v2273_v6 = vpop.eup %1704  ;;  %v969_v20 = vadd.f32 0.2548296, %v937_v47  ;;  %v812_v61 = vmul.f32 %v2198_v9, %v780_v43 }
 0x116   : > { %v1005_v63 = vmul.f32 %v2181_v62, %v973_v8  ;;  %v867_v55 = vmul.f32 %v2002_v22, %v835_v48  ;;  %v967_v57 = vadd.f32 0.2548296, %v935_v36  ;;  %v933_v56 = vmul.f32 %v2040_v31, %v901_v7 }
 0x117   : > { %v1003_v35 = vmul.f32 %v2156_v42, %v971_v19  ;;  %v910_v12 = vadd.f32 -0.28449672, %v878_v15  ;;  %v1001_v58 = vmul.f32 %v2127_v29, %v969_v20  ;;  %v844_v41 = vadd.f32 1.4214138, %v812_v61 }
 0x118   : > { %v1165_v53 = vmul.f32 %v2193_v5, %v1005_v63  ;;  %v899_v62 = vadd.f32 -0.28449672, %v867_v55  ;;  %v999_v43 = vmul.f32 %v2089_v16, %v967_v57  ;;  %v965_v47 = vadd.f32 0.2548296, %v933_v56 }
 0x119   : > { %v1163_v8 = vmul.f32 %v2160_v34, %v1003_v35  ;;  %v942_v48 = vmul.f32 %v2213_v60, %v910_v12  ;;  %v1161_v15 = vmul.f32 %v2129_v11, %v1001_v58  ;;  %v876_v5 = vmul.f32 %v2198_v9, %v844_v41 }
 0x11a   : > { %v1197_v42 = vsub.f32 1.0, %v1165_v53  ;;  %v931_v19 = vmul.f32 %v2002_v22, %v899_v62  ;;  %v1159_v29 = vmul.f32 %v2094_v52, %v999_v43  ;;  %v997_v7 = vmul.f32 %v2040_v31, %v965_v47 }
 0x11b   : > { %v1195_v36 = vsub.f32 1.0, %v1163_v8  ;;  %v974_v34 = vadd.f32 0.2548296, %v942_v48  ;;  %v1193_v16 = vsub.f32 1.0, %v1161_v15  ;;  %v908_v55 = vadd.f32 -0.28449672, %v876_v5 }
 0x11c   : > { %v1261_v63 = vsub.f32 0.0, %v1197_v42  ;;  %v963_v20 = vadd.f32 0.2548296, %v931_v19  ;;  %v1191_v11 = vsub.f32 1.0, %v1159_v29  ;;  %v1157_v35 = vmul.f32 %v2052_v44, %v997_v7 }
 0x11d   : > { %v1259_v61 = vsub.f32 0.0, %v1195_v36  ;;  %v1006_v57 = vmul.f32 %v2213_v60, %v974_v34  ;;  %v1257_v56 = vsub.f32 0.0, %v1193_v16  ;;  %v940_v12 = vmul.f32 %v2198_v9, %v908_v55 }
 0x11e   : > { %v1293_v52 = vsel %vm1229_vm1, %v1261_v63, %v1197_v42  ;;  %v995_v31 = vmul.f32 %v2002_v22, %v963_v20  ;;  %v1255_v62 = vsub.f32 0.0, %v1191_v11  ;;  %v1189_v41 = vsub.f32 1.0, %v1157_v35 }
 0x11f   : > { %v1357_v53 = vadd.f32 1.0, %v1293_v52  ;;  %v1291_v58 = vsel %vm1227_vm2, %v1259_v61, %v1195_v36  ;;  %v1289_v44 = vsel %vm1225_vm3, %v1257_v56, %v1193_v16  ;;  %v1166_v60 = vmul.f32 %v2216_v24, %v1006_v57 }
 0x120   : > { %v1355_v8 = vadd.f32 1.0, %v1291_v58  ;;  %v1155_v18 = vmul.f32 %v2012_v33, %v995_v31  ;;  %v1353_v47 = vadd.f32 1.0, %v1289_v44  ;;  %v1287_v22 = vsel %vm1223_vm4, %v1255_v62, %v1191_v11 }
 0x121   : > { %v1389_v43 = vmul.f32 %v1357_v53, %v2221_v13  ;;  %v1253_v48 = vsub.f32 0.0, %v1189_v41  ;;  %v1351_v42 = vadd.f32 1.0, %v1287_v22  ;;  %v1198_v15 = vsub.f32 1.0, %v1166_v60 }
 0x122   : > { %v1187_v19 = vsub.f32 1.0, %v1155_v18  ;;  %v1387_v59 = vmul.f32 %v1355_v8, %v2228_v51  ;;  %v1326_v33 = vmul.f32 0.5, %v2148_v32  ;;  %v972_v5 = vadd.f32 0.2548296, %v940_v12 }
 0x123   : > { %1394 = vmatpush.msrb.mxu2 %v1389_v43  ;;  %v1285_v24 = vsel %vm1221_vm5, %v1253_v48, %v1189_v41  ;;  %vm1228_vm8 = vcmp.lt.f32.partialorder %v2118_v23, 0.0  ;;  %v1262_v21 = vsub.f32 0.0, %v1198_v15  ;;  %v1315_v29 = vmul.f32 0.5, %v1963_v1 }
 0x124   : > { %v1349_v13 = vadd.f32 1.0, %v1285_v24  ;;  %v1251_v36 = vsub.f32 0.0, %v1187_v19  ;;  %v1385_v7 = vmul.f32 %v1353_v47, %v2234_v45  ;;  %v1004_v34 = vmul.f32 %v2198_v9, %v972_v5 }
 0x125   : > { %1395 = vmatpush.msrb.mxu2 %v1387_v59  ;;  %v746_v51 = vmul.f32 1.0614054, %v2163_v50  ;;  %v744_v25 = vmul.f32 1.0614054, %v2131_v10  ;;  %v1383_v63 = vmul.f32 %v1351_v42, %v2241_v49  ;;  %v1294_v16 = vsel %vm1230_vm7, %v1262_v21, %v1198_v15 }
 0x126   : > { %v1283_v20 = vsel %vm1219_vm6, %v1251_v36, %v1187_v19  ;;  %v1324_v55 = vmul.f32 0.5, %v2118_v23  ;;  %v1358_v61 = vadd.f32 1.0, %v1294_v16  ;;  %v1164_v45 = vmul.f32 %v2201_v54, %v1004_v34 }
 0x127   : > { %1396 = vmatpush.msrb.mxu2 %v1385_v7  ;;  %v1347_v11 = vadd.f32 1.0, %v1283_v20  ;;  %v778_v9 = vadd.f32 -1.4531521, %v746_v51  ;;  %v1381_v35 = vmul.f32 %v1349_v13, %v1317_v3  ;;  %v2330_v57 = vmul.f32 0.5, %v2081_v38 }
 0x128   : > { %v776_v52 = vadd.f32 -1.4531521, %v744_v25  ;;  %v742_v49 = vmul.f32 1.0614054, %v2096_v17  ;;  %v1390_v32 = vmul.f32 %v1358_v61, %v1326_v33  ;;  %v1196_v56 = vsub.f32 1.0, %v1164_v45 }
 0x129   : > { %1397 = vmatpush.msrb.mxu2 %v1383_v63  ;;  %v810_v1 = vmul.f32 %v2163_v50, %v778_v9  ;;  %v2335_v31 = vmul.f32 0.5, %v2044_v39  ;;  %v740_v54 = vmul.f32 1.0614054, %v2046_v40  ;;  %v738_v58 = vmul.f32 1.0614054, %v2008_v30 }
 0x12a   : > { %v808_v12 = vmul.f32 %v2131_v10, %v776_v52  ;;  %v774_v53 = vadd.f32 -1.4531521, %v742_v49  ;;  %1414 = vmatpush.msrb.mxu3 %v1390_v32  ;;  %v1379_v62 = vmul.f32 %v1347_v11, %v1315_v29  ;;  %v1260_v41 = vsub.f32 0.0, %v1196_v56 }
 0x12b   : > { %1398 = vmatpush.msrb.mxu2 %v1381_v35  ;;  %v842_v8 = vadd.f32 1.4214138, %v810_v1  ;;  %v736_v44 = vmul.f32 1.0614054, %v2255_v46  ;;  %v772_v43 = vadd.f32 -1.4531521, %v740_v54 }
 0x12c   : > { %v840_v60 = vadd.f32 1.4214138, %v808_v12  ;;  %v806_v18 = vmul.f32 %v2096_v17, %v774_v53  ;;  %v770_v47 = vadd.f32 -1.4531521, %v738_v58  ;;  %v1292_v22 = vsel %vm1228_vm8, %v1260_v41, %v1196_v56 }
 0x12d   : > { %1399 = vmatpush.msrb.mxu2 %v1379_v62  ;;  %v874_v48 = vmul.f32 %v2163_v50, %v842_v8  ;;  %v2346_v42 = vmul.f32 0.5, %v2006_v27  ;;  %v768_v3 = vadd.f32 -1.4531521, %v736_v44  ;;  %v1356_v15 = vadd.f32 1.0, %v1292_v22 }
 0x12e   : > { %v872_v19 = vmul.f32 %v2131_v10, %v840_v60  ;;  %v838_v59 = vadd.f32 1.4214138, %v806_v18  ;;  %v804_v24 = vmul.f32 %v2046_v40, %v772_v43  ;;  %v802_v5 = vmul.f32 %v2008_v30, %v770_v47 }
 0x12f   : > { %v906_v33 = vadd.f32 -0.28449672, %v874_v48  ;;  %v800_v13 = vmul.f32 %v2255_v46, %v768_v3  ;;  %v734_v23 = vmul.f32 1.0614054, %v2237_v37  ;;  %v1388_v21 = vmul.f32 %v1356_v15, %v1324_v55 }
 0x130   : > { %v904_v36 = vadd.f32 -0.28449672, %v872_v19  ;;  %v870_v29 = vmul.f32 %v2096_v17, %v838_v59  ;;  %v836_v7 = vadd.f32 1.4214138, %v804_v24  ;;  %v834_v51 = vadd.f32 1.4214138, %v802_v5 }
 0x131   : > { %v938_v34 = vmul.f32 %v2163_v50, %v906_v33  ;;  %v832_v25 = vadd.f32 1.4214138, %v800_v13  ;;  %v766_v63 = vadd.f32 -1.4531521, %v734_v23  ;;  %1415 = vmatpush.msrb.mxu3 %v1388_v21  ;;  %v2358_v11 = vmul.f32 0.5, %v1981_v28  ;;  %v2728_v59 = vld [vmem:[#allocation27_spill] sm:$0xff] }
 0x132   : > { %v936_v16 = vmul.f32 %v2131_v10, %v904_v36  ;;  %v902_v20 = vadd.f32 -0.28449672, %v870_v29  ;;  %v868_v61 = vmul.f32 %v2046_v40, %v836_v7  ;;  %v866_v55 = vmul.f32 %v2008_v30, %v834_v51  ;;  %v2729_v29 = vld [vmem:[#allocation17_spill] sm:$0xff] }
 0x133   : > { %v970_v45 = vadd.f32 0.2548296, %v938_v34  ;;  %v864_v9 = vmul.f32 %v2255_v46, %v832_v25  ;;  %v798_v35 = vmul.f32 %v2237_v37, %v766_v63  ;;  %vm1226_vm9 = vcmp.lt.f32.partialorder %v2081_v38, 0.0  ;;  %v2730_v25 = vld [vmem:[#allocation10_spill] sm:$0xff] }
 0x134   : > { %v968_v52 = vadd.f32 0.2548296, %v936_v16  ;;  %v934_v49 = vmul.f32 %v2096_v17, %v902_v20  ;;  %v900_v32 = vadd.f32 -0.28449672, %v868_v61  ;;  %v737_v56 = vmul.f32 1.0614054, %v2267_v2 }
 0x135   : > { %vm1224_vm10 = vcmp.lt.f32.partialorder %v2044_v39, 0.0  ;;  %v1002_v1 = vmul.f32 %v2163_v50, %v970_v45  ;;  %v898_v12 = vadd.f32 -0.28449672, %v866_v55  ;;  %v896_v53 = vadd.f32 -0.28449672, %v864_v9  ;;  %v2731_v16 = vld [vmem:[#allocation58_spill] sm:$0xff] }
 0x136   : > { %v830_v54 = vadd.f32 1.4214138, %v798_v35  ;;  %v1000_v58 = vmul.f32 %v2131_v10, %v968_v52  ;;  %v966_v62 = vadd.f32 0.2548296, %v934_v49  ;;  %v932_v41 = vmul.f32 %v2046_v40, %v900_v32 }
 0x137   : > { %v769_v8 = vadd.f32 -1.4531521, %v737_v56  ;;  %vm1222_vm11 = vcmp.lt.f32.partialorder %v2006_v27, 0.0  ;;  %v1162_v44 = vmul.f32 %v2165_v0, %v1002_v1  ;;  %v930_v60 = vmul.f32 %v2008_v30, %v898_v12  ;;  %v2732_v1 = vld [vmem:[#allocation45_spill] sm:$0xff] }
 0x138   : > { %v928_v18 = vmul.f32 %v2255_v46, %v896_v53  ;;  %v862_v43 = vmul.f32 %v2237_v37, %v830_v54  ;;  %v1160_v50 = vmul.f32 %v2133_v26, %v1000_v58  ;;  %v998_v47 = vmul.f32 %v2096_v17, %v966_v62 }
 0x139   : > { %v964_v22 = vadd.f32 0.2548296, %v932_v41  ;;  %v801_v10 = vmul.f32 %v2267_v2, %v769_v8  ;;  %vm1220_vm12 = vcmp.lt.f32.partialorder %v1981_v28, 0.0  ;;  %v1194_v48 = vsub.f32 1.0, %v1162_v44  ;;  %v2733_v41 = vld [vmem:[#allocation49_spill] sm:$0xff] }
 0x13a   : > { %v962_v3 = vadd.f32 0.2548296, %v930_v60  ;;  %v2380_v15 = vmul.f32 0.5, %v1966_v4  ;;  %v960_v0 = vadd.f32 0.2548296, %v928_v18  ;;  %vm1216_vm14 = vcmp.lt.f32.partialorder %v2187_v14, 0.0 }
 0x13b   : > { %v1192_v19 = vsub.f32 1.0, %v1160_v50  ;;  %v1158_v26 = vmul.f32 %v2728_v59, %v998_v47  ;;  %v996_v17 = vmul.f32 %v2046_v40, %v964_v22  ;;  %v894_v24 = vadd.f32 -0.28449672, %v862_v43  ;;  %v2734_v43 = vld [vmem:[#allocation56_spill] sm:$0xff]  ;;  %v2735_v47 = vld [vmem:[#allocation47_spill] sm:$0xff] }
 0x13c   : > { %v1258_v33 = vsub.f32 0.0, %v1194_v48  ;;  %v994_v5 = vmul.f32 %v2008_v30, %v962_v3  ;;  %v992_v13 = vmul.f32 %v2255_v46, %v960_v0  ;;  %v833_v23 = vadd.f32 1.4214138, %v801_v10  ;;  %v2736_v4 = vld [vmem:[#allocation55_spill] sm:$0xff] }
 0x13d   : > { %v1256_v21 = vsub.f32 0.0, %v1192_v19  ;;  %v1190_v36 = vsub.f32 1.0, %v1158_v26  ;;  %v1156_v7 = vmul.f32 %v2729_v29, %v996_v17  ;;  %v926_v34 = vmul.f32 %v2237_v37, %v894_v24  ;;  %v2737_v26 = vld [vmem:[#allocation37_spill] sm:$0xff] }
 0x13e   : > { %v1290_v51 = vsel %vm1226_vm9, %v1258_v33, %v1194_v48  ;;  %v1154_v63 = vmul.f32 %v2730_v25, %v994_v5  ;;  %v1152_v40 = vmul.f32 %v2731_v16, %v992_v13  ;;  %v865_v20 = vmul.f32 %v2267_v2, %v833_v23  ;;  %v2738_v33 = vld [vmem:[#allocation41_spill] sm:$0xff]  ;;  %v2740_v16 = vld [vmem:[#allocation36_spill] sm:$0xff] }
 0x13f   : > { %v1354_v61 = vadd.f32 1.0, %v1290_v51  ;;  %v1288_v30 = vsel %vm1224_vm10, %v1256_v21, %v1192_v19  ;;  %v1254_v46 = vsub.f32 0.0, %v1190_v36  ;;  %v1188_v45 = vsub.f32 1.0, %v1156_v7 }
 0x140   : > { %v1352_v55 = vadd.f32 1.0, %v1288_v30  ;;  %v1186_v9 = vsub.f32 1.0, %v1154_v63  ;;  %v1184_v35 = vsub.f32 1.0, %v1152_v40  ;;  %v958_v52 = vadd.f32 0.2548296, %v926_v34 }
 0x141   : > { %v1386_v49 = vmul.f32 %v1354_v61, %v2330_v57  ;;  %v1286_v38 = vsel %vm1222_vm11, %v1254_v46, %v1190_v36  ;;  %v1252_v32 = vsub.f32 0.0, %v1188_v45  ;;  %v897_v56 = vadd.f32 -0.28449672, %v865_v20  ;;  %v2741_v46 = vld [vmem:[#allocation46_spill] sm:$0xff] }
 0x142   : > { %vm1214_vm15 = vcmp.lt.f32.partialorder %v2732_v1, 0.0  ;;  %v1384_v12 = vmul.f32 %v1352_v55, %v2335_v31  ;;  %v1350_v53 = vadd.f32 1.0, %v1286_v38  ;;  %v1250_v39 = vsub.f32 0.0, %v1186_v9 }
 0x143   : > { %v1248_v54 = vsub.f32 0.0, %v1184_v35  ;;  %1416 = vmatpush.msrb.mxu3 %v1386_v49  ;;  %v1284_v58 = vsel %vm1220_vm12, %v1252_v32, %v1188_v45  ;;  %v990_v62 = vmul.f32 %v2237_v37, %v958_v52  ;;  %v929_v57 = vmul.f32 %v2267_v2, %v897_v56 }
 0x144   : > { %v732_v27 = vmul.f32 1.0614054, %v2733_v41  ;;  %v1348_v8 = vadd.f32 1.0, %v1284_v58  ;;  %v1282_v44 = vsel %vm1218_vm13, %v1250_v39, %v1186_v9  ;;  %v1312_v60 = vmul.f32 0.5, %v2187_v14 }
 0x145   : > { %v1280_v31 = vsel %vm1216_vm14, %v1248_v54, %v1184_v35  ;;  %1417 = vmatpush.msrb.mxu3 %v1384_v12  ;;  %v1382_v18 = vmul.f32 %v1350_v53, %v2346_v42  ;;  %v1346_v28 = vadd.f32 1.0, %v1282_v44  ;;  %v1150_v50 = vmul.f32 %v2734_v43, %v990_v62  ;;  %v2742_v12 = vld [vmem:[#allocation48_spill] sm:$0xff] }
 0x146   : > { %v961_v37 = vadd.f32 0.2548296, %v929_v57  ;;  %vm1217_vm0 = vcmp.lt.f32.partialorder %v2735_v47, 0.0  ;;  %v1344_v22 = vadd.f32 1.0, %v1280_v31  ;;  %v1310_v10 = vmul.f32 0.5, %v2732_v1  ;;  %v2743_v57 = vld [vmem:[#allocation31_spill] sm:$0xff] }
 0x147   : > { %v764_v48 = vadd.f32 -1.4531521, %v732_v27  ;;  %v735_v3 = vmul.f32 1.0614054, %v2736_v4  ;;  %1418 = vmatpush.msrb.mxu3 %v1382_v18  ;;  %v1380_v0 = vmul.f32 %v1348_v8, %v2358_v11  ;;  %v1182_v19 = vsub.f32 1.0, %v1150_v50  ;;  %v2739_v11 = vld [vmem:[#allocation53_spill] sm:$0xff] }
 0x148   : > { %v993_v14 = vmul.f32 %v2267_v2, %v961_v37  ;;  %v1313_v42 = vmul.f32 0.5, %v2735_v47  ;;  %v2422_v17 = vmul.f32 0.5, %v2737_v26  ;;  %v730_v5 = vmul.f32 1.0614054, %v2738_v33 }
 0x149   : > { %v796_v59 = vmul.f32 %v2733_v41, %v764_v48  ;;  %v767_v24 = vadd.f32 -1.4531521, %v735_v3  ;;  %1419 = vmatpush.msrb.mxu3 %v1380_v0  ;;  %v1378_v13 = vmul.f32 %v1346_v28, %v2380_v15  ;;  %v1246_v23 = vsub.f32 0.0, %v1182_v19 }
 0x14a   : > { %v1153_v21 = vmul.f32 %v2273_v6, %v993_v14  ;;  %v733_v36 = vmul.f32 1.0614054, %v2739_v11  ;;  %v1376_v29 = vmul.f32 %v1344_v22, %v1312_v60  ;;  %v762_v34 = vadd.f32 -1.4531521, %v730_v5  ;;  %v2744_v22 = vld [vmem:[#allocation30_spill] sm:$0xff] }
 0x14b   : > { %v828_v2 = vadd.f32 1.4214138, %v796_v59  ;;  %v799_v7 = vmul.f32 %v2736_v4, %v767_v24  ;;  %1420 = vmatpush.msrb.mxu3 %v1378_v13  ;;  %v1278_v51 = vsel %vm1214_vm15, %v1246_v23, %v1182_v19  ;;  %v728_v40 = vmul.f32 1.0614054, %v2740_v16  ;;  %v2745_v19 = vld [vmem:[#allocation39_spill] sm:$0xff] }
 0x14c   : > { %v1185_v25 = vsub.f32 1.0, %v1153_v21  ;;  %v765_v63 = vadd.f32 -1.4531521, %v733_v36  ;;  %v1342_v20 = vadd.f32 1.0, %v1278_v51  ;;  %v794_v6 = vmul.f32 %v2738_v33, %v762_v34  ;;  %v2746_v13 = vld [vmem:[#allocation51_spill] sm:$0xff] }
 0x14d   : > { %v860_v15 = vmul.f32 %v2733_v41, %v828_v2  ;;  %v831_v61 = vadd.f32 1.4214138, %v799_v7  ;;  %1421 = vmatpush.msrb.mxu3 %v1376_v29  ;;  %v2435_v45 = vmul.f32 0.5, %v2741_v46  ;;  %v760_v9 = vadd.f32 -1.4531521, %v728_v40  ;;  %v2747_v29 = vld [vmem:[#allocation40_spill] sm:$0xff] }
 0x14e   : > { %v1249_v30 = vsub.f32 0.0, %v1185_v25  ;;  %v797_v55 = vmul.f32 %v2739_v11, %v765_v63  ;;  %v1374_v35 = vmul.f32 %v1342_v20, %v1310_v10  ;;  %v826_v38 = vadd.f32 1.4214138, %v794_v6  ;;  %v2748_v63 = vld [vmem:[#allocation57_spill] sm:$0xff] }
 0x14f   : > { %v892_v52 = vadd.f32 -0.28449672, %v860_v15  ;;  %v863_v49 = vmul.f32 %v2736_v4, %v831_v61  ;;  %v792_v1 = vmul.f32 %v2740_v16, %v760_v9  ;;  %v731_v53 = vmul.f32 1.0614054, %v2742_v12 }
 0x150   : > { %v1281_v32 = vsel %vm1217_vm0, %v1249_v30, %v1185_v25  ;;  %v829_v56 = vadd.f32 1.4214138, %v797_v55  ;;  %1422 = vmatpush.msrb.mxu3 %v1374_v35  ;;  %v858_v62 = vmul.f32 %v2738_v33, %v826_v38  ;;  %v2446_v27 = vmul.f32 0.5, %v2743_v57  ;;  %v2749_v55 = vld [vmem:[#allocation24_spill] sm:$0xff] }
 0x151   : > { %v1345_v39 = vadd.f32 1.0, %v1281_v32  ;;  %v924_v54 = vmul.f32 %v2733_v41, %v892_v52  ;;  %v895_v58 = vadd.f32 -0.28449672, %v863_v49  ;;  %v824_v44 = vadd.f32 1.4214138, %v792_v1  ;;  %v2750_v52 = vld [vmem:[#allocation44_spill] sm:$0xff] }
 0x152   : > { %v861_v8 = vmul.f32 %v2739_v11, %v829_v56  ;;  %v763_v31 = vadd.f32 -1.4531521, %v731_v53  ;;  %v890_v43 = vadd.f32 -0.28449672, %v858_v62  ;;  %vm1212_vm1 = vcmp.lt.f32.partialorder %v2737_v26, 0.0  ;;  %v2751_v32 = vld [vmem:[#allocation54_spill] sm:$0xff] }
 0x153   : > { %v1377_v60 = vmul.f32 %v1345_v39, %v1313_v42  ;;  %v956_v18 = vadd.f32 0.2548296, %v924_v54  ;;  %v927_v28 = vmul.f32 %v2736_v4, %v895_v58  ;;  %v856_v37 = vmul.f32 %v2740_v16, %v824_v44  ;;  %v2752_v44 = vld [vmem:[#allocation38_spill] sm:$0xff] }
 0x154   : > { %v893_v50 = vadd.f32 -0.28449672, %v861_v8  ;;  %v795_v47 = vmul.f32 %v2742_v12, %v763_v31  ;;  %v726_v10 = vmul.f32 1.0614054, %v2744_v22  ;;  %v922_v0 = vmul.f32 %v2738_v33, %v890_v43 }
 0x155   : > { %1400 = vmatpush.msrb.mxu2 %v1377_v60  ;;  %v988_v48 = vmul.f32 %v2733_v41, %v956_v18  ;;  %v959_v3 = vadd.f32 0.2548296, %v927_v28  ;;  %v2457_v14 = vmul.f32 0.5, %v2745_v19  ;;  %vm1215_vm2 = vcmp.lt.f32.partialorder %v2741_v46, 0.0 }
 0x156   : > { %v925_v42 = vmul.f32 %v2739_v11, %v893_v50  ;;  %v888_v59 = vadd.f32 -0.28449672, %v856_v37  ;;  %v827_v24 = vadd.f32 1.4214138, %v795_v47  ;;  %v758_v5 = vadd.f32 -1.4531521, %v726_v10 }
 0x157   : > { %v1148_v23 = vmul.f32 %v2746_v13, %v988_v48  ;;  %v991_v21 = vmul.f32 %v2736_v4, %v959_v3  ;;  %v954_v36 = vadd.f32 0.2548296, %v922_v0  ;;  %v729_v41 = vmul.f32 1.0614054, %v2747_v29  ;;  %v2753_v50 = vld [vmem:[#allocation35_spill] sm:$0xff]  ;;  %v2754_v13 = vld [vmem:[#allocation50_spill] sm:$0xff] }
 0x158   : > { %vm1210_vm3 = vcmp.lt.f32.partialorder %v2743_v57, 0.0  ;;  %v957_v2 = vadd.f32 0.2548296, %v925_v42  ;;  %v920_v7 = vmul.f32 %v2740_v16, %v888_v59  ;;  %v859_v34 = vmul.f32 %v2742_v12, %v827_v24 }
 0x159   : > { %v790_v51 = vmul.f32 %v2744_v22, %v758_v5  ;;  %vm1213_vm4 = vcmp.lt.f32.partialorder %v2745_v19, 0.0  ;;  %v1180_v25 = vsub.f32 1.0, %v1148_v23  ;;  %v1151_v40 = vmul.f32 %v2748_v63, %v991_v21 }
 0x15a   : > { %v986_v20 = vmul.f32 %v2738_v33, %v954_v36  ;;  %v761_v4 = vadd.f32 -1.4531521, %v729_v41  ;;  %v989_v15 = vmul.f32 %v2739_v11, %v957_v2  ;;  %v952_v61 = vadd.f32 0.2548296, %v920_v7  ;;  %v2755_v36 = vld [vmem:[#allocation16_spill] sm:$0xff] }
 0x15b   : > { %v891_v6 = vadd.f32 -0.28449672, %v859_v34  ;;  %v822_v30 = vadd.f32 1.4214138, %v790_v51  ;;  %vm1208_vm5 = vcmp.lt.f32.partialorder %v2749_v55, 0.0  ;;  %v1244_v9 = vsub.f32 0.0, %v1180_v25 }
 0x15c   : > { %v1183_v35 = vsub.f32 1.0, %v1151_v40  ;;  %v1146_v49 = vmul.f32 %v2750_v52, %v986_v20  ;;  %v793_v38 = vmul.f32 %v2747_v29, %v761_v4  ;;  %v1149_v56 = vmul.f32 %v2751_v32, %v989_v15  ;;  %v2756_v2 = vld [vmem:[#allocation20_spill] sm:$0xff]  ;;  %v2757_v4 = vld [vmem:[#allocation29_spill] sm:$0xff] }
 0x15d   : > { %v984_v1 = vmul.f32 %v2740_v16, %v952_v61  ;;  %v923_v33 = vmul.f32 %v2742_v12, %v891_v6  ;;  %v854_v53 = vmul.f32 %v2744_v22, %v822_v30  ;;  %v1276_v11 = vsel %vm1212_vm1, %v1244_v9, %v1180_v25  ;;  %v2758_v6 = vld [vmem:[#allocation33_spill] sm:$0xff] }
 0x15e   : > { %v1247_v39 = vsub.f32 0.0, %v1183_v35  ;;  %v1178_v54 = vsub.f32 1.0, %v1146_v49  ;;  %v825_v58 = vadd.f32 1.4214138, %v793_v38  ;;  %v1340_v62 = vadd.f32 1.0, %v1276_v11  ;;  %v2760_v52 = vld [vmem:[#allocation13_spill] sm:$0xff] }
 0x15f   : > { %v1181_v8 = vsub.f32 1.0, %v1149_v56  ;;  %v1144_v31 = vmul.f32 %v2752_v44, %v984_v1  ;;  %v955_v60 = vadd.f32 0.2548296, %v923_v33  ;;  %v886_v16 = vadd.f32 -0.28449672, %v854_v53  ;;  %v2761_v1 = vld [vmem:[#allocation28_spill] sm:$0xff] }
 0x160   : > { %v1279_v18 = vsel %vm1215_vm2, %v1247_v39, %v1183_v35  ;;  %v1242_v28 = vsub.f32 0.0, %v1178_v54  ;;  %v857_v43 = vmul.f32 %v2747_v29, %v825_v58  ;;  %vm1211_vm6 = vcmp.lt.f32.partialorder %v2753_v50, 0.0  ;;  %v2762_v11 = vld [vmem:[#allocation42_spill] sm:$0xff] }
 0x161   : > { %v1372_v26 = vmul.f32 %v1340_v62, %v2422_v17  ;;  %v1343_v37 = vadd.f32 1.0, %v1279_v18  ;;  %v1245_v47 = vsub.f32 0.0, %v1181_v8  ;;  %v1176_v10 = vsub.f32 1.0, %v1144_v31  ;;  %v2763_v62 = vld [vmem:[#allocation7_spill] sm:$0xff] }
 0x162   : > { %v1274_v48 = vsel %vm1210_vm3, %v1242_v28, %v1178_v54  ;;  %v987_v3 = vmul.f32 %v2742_v12, %v955_v60  ;;  %v918_v0 = vmul.f32 %v2744_v22, %v886_v16  ;;  %v889_v46 = vadd.f32 -0.28449672, %v857_v43 }
 0x163   : > { %1423 = vmatpush.msrb.mxu3 %v1372_v26  ;;  %v1375_v42 = vmul.f32 %v1343_v37, %v2435_v45  ;;  %v1338_v59 = vadd.f32 1.0, %v1274_v48  ;;  %v1277_v24 = vsel %vm1213_vm4, %v1245_v47, %v1181_v8  ;;  %v1240_v5 = vsub.f32 0.0, %v1176_v10  ;;  %v2764_v37 = vld [vmem:[#allocation25_spill] sm:$0xff] }
 0x164   : > { %v1341_v17 = vadd.f32 1.0, %v1277_v24  ;;  %v1147_v23 = vmul.f32 %v2754_v13, %v987_v3  ;;  %v950_v21 = vadd.f32 0.2548296, %v918_v0  ;;  %v921_v57 = vmul.f32 %v2747_v29, %v889_v46 }
 0x165   : > { %vm1206_vm7 = vcmp.lt.f32.partialorder %v2755_v36, 0.0  ;;  %1401 = vmatpush.msrb.mxu2 %v1375_v42  ;;  %v1370_v12 = vmul.f32 %v1338_v59, %v2446_v27  ;;  %v1272_v41 = vsel %vm1208_vm5, %v1240_v5, %v1176_v10  ;;  %v1304_v45 = vmul.f32 0.5, %v2749_v55  ;;  %v2759_v55 = vld [vmem:[#allocation34_spill] sm:$0xff] }
 0x166   : > { %v724_v19 = vmul.f32 1.0614054, %v2756_v2  ;;  %v1373_v7 = vmul.f32 %v1341_v17, %v2457_v14  ;;  %v1336_v34 = vadd.f32 1.0, %v1272_v41  ;;  %v1179_v51 = vsub.f32 1.0, %v1147_v23  ;;  %v2765_v42 = vld [vmem:[#allocation22_spill] sm:$0xff] }
 0x167   : > { %v982_v25 = vmul.f32 %v2744_v22, %v950_v21  ;;  %1424 = vmatpush.msrb.mxu3 %v1370_v12  ;;  %v1307_v63 = vmul.f32 0.5, %v2753_v50  ;;  %v1302_v40 = vmul.f32 0.5, %v2755_v36  ;;  %v953_v20 = vadd.f32 0.2548296, %v921_v57 }
 0x168   : > { %v756_v27 = vadd.f32 -1.4531521, %v724_v19  ;;  %vm1209_vm8 = vcmp.lt.f32.partialorder %v2757_v4, 0.0  ;;  %1402 = vmatpush.msrb.mxu2 %v1373_v7  ;;  %v1368_v15 = vmul.f32 %v1336_v34, %v1304_v45  ;;  %v1243_v61 = vsub.f32 0.0, %v1179_v51  ;;  %v2766_v45 = vld [vmem:[#allocation52_spill] sm:$0xff]  ;;  %v2767_v34 = vld [vmem:[#allocation18_spill] sm:$0xff] }
 0x169   : > { %v1142_v30 = vmul.f32 %v2758_v6, %v982_v25  ;;  %v727_v14 = vmul.f32 1.0614054, %v2759_v55  ;;  %v985_v9 = vmul.f32 %v2747_v29, %v953_v20  ;;  %v1305_v22 = vmul.f32 0.5, %v2757_v4 }
 0x16a   : > { %v788_v35 = vmul.f32 %v2756_v2, %v756_v27  ;;  %v722_v49 = vmul.f32 1.0614054, %v2760_v52  ;;  %1425 = vmatpush.msrb.mxu3 %v1368_v15  ;;  %v1275_v38 = vsel %vm1211_vm6, %v1243_v61, %v1179_v51  ;;  %v725_v33 = vmul.f32 1.0614054, %v2761_v1  ;;  %v2768_v15 = vld [vmem:[#allocation5_spill] sm:$0xff] }
 0x16b   : > { %v1174_v32 = vsub.f32 1.0, %v1142_v30  ;;  %v759_v56 = vadd.f32 -1.4531521, %v727_v14  ;;  %v1339_v53 = vadd.f32 1.0, %v1275_v38  ;;  %v1145_v39 = vmul.f32 %v2762_v11, %v985_v9 }
 0x16c   : > { %v820_v54 = vadd.f32 1.4214138, %v788_v35  ;;  %v754_v58 = vadd.f32 -1.4531521, %v722_v49  ;;  %v2518_v8 = vmul.f32 0.5, %v2763_v62  ;;  %v2529_v59 = vmul.f32 0.5, %v2765_v42 }
 0x16d   : > { %v1238_v29 = vsub.f32 0.0, %v1174_v32  ;;  %v791_v44 = vmul.f32 %v2759_v55, %v759_v56  ;;  %v757_v31 = vadd.f32 -1.4531521, %v725_v33  ;;  %v1371_v60 = vmul.f32 %v1339_v53, %v1307_v63  ;;  %v2769_v35 = vld [vmem:[#allocation11_spill] sm:$0xff]  ;;  %v2770_v49 = vld [vmem:[#allocation21_spill] sm:$0xff] }
 0x16e   : > { %v1177_v18 = vsub.f32 1.0, %v1145_v39  ;;  %v852_v28 = vmul.f32 %v2756_v2, %v820_v54  ;;  %v786_v16 = vmul.f32 %v2760_v52, %v754_v58  ;;  %v720_v47 = vmul.f32 1.0614054, %v2764_v37 }
 0x16f   : > { %v1270_v43 = vsel %vm1206_vm7, %v1238_v29, %v1174_v32  ;;  %v823_v50 = vadd.f32 1.4214138, %v791_v44  ;;  %v789_v26 = vmul.f32 %v2761_v1, %v757_v31  ;;  %1403 = vmatpush.msrb.mxu2 %v1371_v60  ;;  %1706 = vpow2.f32 %v2766_v45  ;;  %v2772_v60 = vld [vmem:[#allocation23_spill] sm:$0xff] }
 0x170   : > { %v1334_v10 = vadd.f32 1.0, %v1270_v43  ;;  %v1241_v48 = vsub.f32 0.0, %v1177_v18  ;;  %v884_v3 = vadd.f32 -0.28449672, %v852_v28  ;;  %v818_v0 = vadd.f32 1.4214138, %v786_v16 }
 0x171   : > { %v855_v46 = vmul.f32 %v2759_v55, %v823_v50  ;;  %v821_v24 = vadd.f32 1.4214138, %v789_v26  ;;  %v752_v5 = vadd.f32 -1.4531521, %v720_v47  ;;  %v723_v51 = vmul.f32 1.0614054, %v2767_v34 }
 0x172   : > { %v1366_v17 = vmul.f32 %v1334_v10, %v1302_v40  ;;  %v1273_v13 = vsel %vm1209_vm8, %v1241_v48, %v1177_v18  ;;  %v916_v23 = vmul.f32 %v2756_v2, %v884_v3  ;;  %v850_v21 = vmul.f32 %v2760_v52, %v818_v0  ;;  %v2773_v26 = vld [vmem:[#allocation15_spill] sm:$0xff]  ;;  %v2774_v0 = vld [vmem:[#allocation32_spill] sm:$0xff] }
 0x173   : > { %v1337_v57 = vadd.f32 1.0, %v1273_v13  ;;  %v887_v36 = vadd.f32 -0.28449672, %v855_v46  ;;  %v853_v12 = vmul.f32 %v2761_v1, %v821_v24  ;;  %v784_v41 = vmul.f32 %v2764_v37, %v752_v5 }
 0x174   : > { %1426 = vmatpush.msrb.mxu3 %v1366_v17  ;;  %v948_v19 = vadd.f32 0.2548296, %v916_v23  ;;  %v882_v7 = vadd.f32 -0.28449672, %v850_v21  ;;  %vm1204_vm9 = vcmp.lt.f32.partialorder %v2763_v62, 0.0  ;;  %v2544_v61 = vmul.f32 0.5, %v2768_v15 }
 0x175   : > { %v1369_v25 = vmul.f32 %v1337_v57, %v1305_v22  ;;  %v919_v63 = vmul.f32 %v2759_v55, %v887_v36  ;;  %v885_v40 = vadd.f32 -0.28449672, %v853_v12  ;;  %v816_v20 = vadd.f32 1.4214138, %v784_v41  ;;  %v1707_v58 = vpop.eup %1706 }
 0x176   : > { %v980_v27 = vmul.f32 %v2756_v2, %v948_v19  ;;  %v914_v4 = vmul.f32 %v2760_v52, %v882_v7  ;;  %v755_v6 = vadd.f32 -1.4531521, %v723_v51  ;;  %v721_v22 = vmul.f32 1.0614054, %v2769_v35  ;;  %v2771_v2 = vld [vmem:[#allocation14_spill] sm:$0xff] }
 0x177   : > { %1404 = vmatpush.msrb.mxu2 %v1369_v25  ;;  %v951_v30 = vadd.f32 0.2548296, %v919_v63  ;;  %v917_v14 = vmul.f32 %v2761_v1, %v885_v40  ;;  %v848_v9 = vmul.f32 %v2764_v37, %v816_v20  ;;  %vm1207_vm10 = vcmp.lt.f32.partialorder %v2765_v42, 0.0  ;;  %v2775_v25 = vld [vmem:[#allocation26_spill] sm:$0xff] }
 0x178   : > { %v1140_v38 = vmul.f32 %v2770_v49, %v980_v27  ;;  %v946_v32 = vadd.f32 0.2548296, %v914_v4  ;;  %v1301_v56 = vmul.f32 0.5, %v2771_v2  ;;  %v787_v33 = vmul.f32 %v2767_v34, %v755_v6  ;;  %v2776_v49 = vld [vmem:[#allocation9_spill] sm:$0xff] }
 0x179   : > { %vm1202_vm11 = vcmp.lt.f32.partialorder %v2768_v15, 0.0  ;;  %v983_v53 = vmul.f32 %v2759_v55, %v951_v30  ;;  %v949_v11 = vadd.f32 0.2548296, %v917_v14  ;;  %v880_v39 = vadd.f32 -0.28449672, %v848_v9 }
 0x17a   : > { %v753_v54 = vadd.f32 -1.4531521, %v721_v22  ;;  %vm1205_vm12 = vcmp.lt.f32.partialorder %v2771_v2, 0.0  ;;  %v1172_v29 = vsub.f32 1.0, %v1140_v38  ;;  %v978_v44 = vmul.f32 %v2760_v52, %v946_v32 }
 0x17b   : > { %v819_v31 = vadd.f32 1.4214138, %v787_v33  ;;  %v719_v18 = vmul.f32 1.0614054, %v2772_v60  ;;  %v1143_v28 = vmul.f32 %v1707_v58, %v983_v53  ;;  %v981_v16 = vmul.f32 %v2761_v1, %v949_v11  ;;  %v2777_v33 = vld [vmem:[#allocation43_spill] sm:$0xff] }
 0x17c   : > { %v912_v43 = vmul.f32 %v2764_v37, %v880_v39  ;;  %v785_v50 = vmul.f32 %v2769_v35, %v753_v54  ;;  %v1236_v55 = vsub.f32 0.0, %v1172_v29  ;;  %v1138_v47 = vmul.f32 %v2773_v26, %v978_v44  ;;  %v2778_v53 = vld [vmem:[#allocation19_spill] sm:$0xff] }
 0x17d   : > { %v851_v10 = vmul.f32 %v2767_v34, %v819_v31  ;;  %v751_v48 = vadd.f32 -1.4531521, %v719_v18  ;;  %v1175_v3 = vsub.f32 1.0, %v1143_v28  ;;  %v1141_v46 = vmul.f32 %v2774_v0, %v981_v16  ;;  %v2779_v28 = vld [vmem:[#allocation12_spill] sm:$0xff] }
 0x17e   : > { %v944_v52 = vadd.f32 0.2548296, %v912_v43  ;;  %v817_v24 = vadd.f32 1.4214138, %v785_v50  ;;  %v1268_v5 = vsel %vm1204_vm9, %v1236_v55, %v1172_v29  ;;  %v1170_v17 = vsub.f32 1.0, %v1138_v47  ;;  %v2780_v43 = vld [vmem:[#allocation6_spill] sm:$0xff] }
 0x17f   : > { %v883_v1 = vadd.f32 -0.28449672, %v851_v10  ;;  %v783_v13 = vmul.f32 %v2772_v60, %v751_v48  ;;  %v1332_v23 = vadd.f32 1.0, %v1268_v5  ;;  %v1239_v21 = vsub.f32 0.0, %v1175_v3  ;;  %v2781_v0 = vld [vmem:[#allocation4_spill] sm:$0xff] }
 0x180   : > { %v1173_v57 = vsub.f32 1.0, %v1141_v46  ;;  %v976_v36 = vmul.f32 %v2764_v37, %v944_v52  ;;  %v1234_v12 = vsub.f32 0.0, %v1170_v17  ;;  %v849_v45 = vmul.f32 %v2769_v35, %v817_v24 }
 0x181   : > { %v915_v41 = vmul.f32 %v2767_v34, %v883_v1  ;;  %v815_v19 = vadd.f32 1.4214138, %v783_v13  ;;  %v1364_v7 = vmul.f32 %v1332_v23, %v2518_v8  ;;  %v1271_v62 = vsel %vm1207_vm10, %v1239_v21, %v1175_v3  ;;  %v2782_v1 = vld [vmem:[#allocation8_spill] sm:$0xff] }
 0x182   : > { %v1237_v51 = vsub.f32 0.0, %v1173_v57  ;;  %v1136_v63 = vmul.f32 %v2775_v25, %v976_v36  ;;  %v1335_v40 = vadd.f32 1.0, %v1271_v62  ;;  %v1266_v20 = vsel %vm1202_vm11, %v1234_v12, %v1170_v17 }
 0x183   : > { %v947_v27 = vadd.f32 0.2548296, %v915_v41  ;;  %v881_v37 = vadd.f32 -0.28449672, %v849_v45  ;;  %1427 = vmatpush.msrb.mxu3 %v1364_v7  ;;  %v1330_v4 = vadd.f32 1.0, %v1266_v20  ;;  %v847_v8 = vmul.f32 %v2772_v60, %v815_v19 }
 0x184   : > { %v1269_v6 = vsel %vm1205_vm12, %v1237_v51, %v1173_v57  ;;  %v1168_v30 = vsub.f32 1.0, %v1136_v63  ;;  %v1367_v42 = vmul.f32 %v1335_v40, %v2529_v59  ;;  %vm1200_vm13 = vcmp.lt.f32.partialorder %v2776_v49, 0.0 }
 0x185   : > { %v1333_v14 = vadd.f32 1.0, %v1269_v6  ;;  %v979_v9 = vmul.f32 %v2767_v34, %v947_v27  ;;  %v913_v22 = vmul.f32 %v2769_v35, %v881_v37  ;;  %v1362_v15 = vmul.f32 %v1330_v4, %v2544_v61 }
 0x186   : > { %v1232_v38 = vsub.f32 0.0, %v1168_v30  ;;  %v879_v32 = vadd.f32 -0.28449672, %v847_v8  ;;  %1708 = vpow2.f32 %v2777_v33  ;;  %1405 = vmatpush.msrb.mxu2 %v1367_v42  ;;  %v1296_v34 = vmul.f32 0.5, %v2776_v49 }
 0x187   : > { %v1365_v2 = vmul.f32 %v1333_v14, %v1301_v56  ;;  %v1139_v11 = vmul.f32 %v2778_v53, %v979_v9  ;;  %v945_v39 = vadd.f32 0.2548296, %v913_v22  ;;  %1428 = vmatpush.msrb.mxu3 %v1362_v15  ;;  %v1391_v56 = vld [vmem:[%s2618_s3] sm:$0x1]  ;;  %vm1203_vm14 = vcmp.lt.f32.partialorder %v2780_v43, 0.0 }
 0x188   : > { %v1264_v59 = vsel %vm1200_vm13, %v1232_v38, %v1168_v30  ;;  %v911_v54 = vmul.f32 %v2772_v60, %v879_v32  ;;  %v1299_v10 = vmul.f32 0.5, %v2780_v43  ;;  %vm1201_vm15 = vcmp.lt.f32.partialorder %v2781_v0, 0.0 }
 0x189   : > { %1406 = vmatpush.msrb.mxu2 %v1365_v2  ;;  %v1328_v58 = vadd.f32 1.0, %v1264_v59  ;;  %v1171_v29 = vsub.f32 1.0, %v1139_v11  ;;  %v977_v61 = vmul.f32 %v2769_v35, %v945_v39  ;;  %v1297_v5 = vmul.f32 0.5, %v2781_v0 }
 0x18a   : > { %v943_v44 = vadd.f32 0.2548296, %v911_v54  ;;  %vm1199_vm0 = vcmp.lt.f32.partialorder %v2782_v1, 0.0  ;;  %v1295_v21 = vmul.f32 0.5, %v2782_v1  ;;  %v1393_v12 = vstv %s1392_s15 }
 0x18b   : > { %v1360_v31 = vmul.f32 %v1328_v58, %v1296_v34  ;;  %v1235_v18 = vsub.f32 0.0, %v1171_v29  ;;  %v1137_v16 = vmul.f32 %v2779_v28, %v977_v61  ;;  %v1440_v19 = vlaneseq }
 0x18c   : > { %v975_v50 = vmul.f32 %v2772_v60, %v943_v44  ;;  %v1709_v55 = vpop.eup %1708  ;;  %vm1437_vm1 = vcmask 1040384  }
 0x18d   : > { %1429 = vmatpush.msrb.mxu3 %v1360_v31  ;;  %v1267_v26 = vsel %vm1203_vm14, %v1235_v18, %v1171_v29  ;;  %v1169_v47 = vsub.f32 1.0, %v1137_v16  ;;  %vm1442_vm2 = vcmp.lt.s32.totalorder %v1440_v19, 256 }
 0x18e   : > { %v1331_v35 = vadd.f32 1.0, %v1267_v26  ;;  %v1135_v48 = vmul.f32 %v1709_v55, %v975_v50  ;;  %1430 = vmatmul.f32.vlgmr.msrb.gmra.mxu3 %v1391_v56 }
 0x18f   : > { %v1233_v3 = vsub.f32 0.0, %v1169_v47 }
 0x190   : > { %v1363_v46 = vmul.f32 %v1331_v35, %v1299_v10  ;;  %v1167_v52 = vsub.f32 1.0, %v1135_v48 }
 0x191   : > { %v1265_v24 = vsel %vm1201_vm15, %v1233_v3, %v1169_v47 }
 0x192   : > { %1407 = vmatpush.msrb.mxu2 %v1363_v46  ;;  %v1329_v60 = vadd.f32 1.0, %v1265_v24  ;;  %v1231_v17 = vsub.f32 0.0, %v1167_v52 }
 0x194   : > { %v1361_v13 = vmul.f32 %v1329_v60, %v1297_v5  ;;  %v1263_v23 = vsel %vm1199_vm0, %v1231_v17, %v1167_v52 }
 0x195   : > { %v1327_v57 = vadd.f32 1.0, %v1263_v23 }
 0x196   : > { %1408 = vmatpush.msrb.mxu2 %v1361_v13 }
 0x197   : > { %v1359_v36 = vmul.f32 %v1327_v57, %v1295_v21 }
 0x199   : > { %1409 = vmatpush.msrb.mxu2 %v1359_v36 }
 0x19a   : > { %1410 = vmatmul.f32.vlgmr.msrb.gmra.mxu2 %v1391_v56 }
 0x211   : > { %v1431_v41 = vpop.f32.mrf.mxu3 }
 0x212   : > { %v1432_v45 = vadd.f32 %v1431_v41, %v1393_v12 }
 0x214   : > { %v1436_v7 = vrot.slane %v1432_v45, 7 }
 0x21d   : > { %v1411_v62 = vpop.f32.mrf.mxu2 }
 0x21e   : > { %v1412_v51 = vadd.f32 %v1411_v62, %v1393_v12 }
 0x220   : > { %v1438_v25 = vsel %vm1437_vm1, %v1412_v51, %v1436_v7 }
 0x221   : > { %1444 = vst.msk [vmem:[%s258_s19] sm:$0x3] %vm1442_vm2, %v1438_v25 }
 0x222 PF: > { %p13_p9 = scmp.ge.s32.totalorder %s1785_s23, 4   ;;  %s2783_s20 = smov %s1728_s21 }
 0x223   : > { %s2784_s21 = smov %s1794_s26  ;;  %s2785_s22 = smov %s1785_s23 }
 0x224   :  { %15 = sbr.rel (!%p13_p9) target bundleno = 4 (0x4), region = 98 }

// kernel: squeeze.1
= control target key start
LH: loop header
LB: loop body
LE: loop exit
PB: predicated region body
PF: predicated region fallthrough
CT: control target
= control target key end

     0   :  { %s130_s0 = inlined_call_operand.vmem [shape: f32[512], index: 0, kind: input, shape index: {}]   ;;  %s131_s1 = inlined_call_operand.hbm [shape: f32[2,16,16,1], index: 1, kind: output, shape index: {}]  }
   0x1   :  { %v5_v0 = vld [vmem:[%s130_s0] sm:$0xf] }
   0x2   :  { %6 = vst [vmem:[#allocation2] sm:$0xf] %v5_v0 }
   0x3   :  { %2 = vsyncpa [#allocation1], 0  ;;  %s98_s0 = smov 112   ;;  %s99_s8 = smov 80   ;;  %vm8_vm0 = vcmask 130048  }
   0x4   :  { %s100_s9 = smov 48   ;;  %s101_s10 = smov 96  }
   0x5   :  { %s102_s11 = smov 64   ;;  %s103_s12 = smov 32  }
   0x6   :  { %s104_s13 = smov 16   ;;  %s105_s14 = smov [#allocation0]  }
   0x7   :  { %s55_s15 = sshll.u32 %s105_s14, 4  ;;  %s57_s1 = sshll.u32 %s131_s1, 4  ;;  %s56_s15 = int_to_ptr.vmem [resolvable:$true] %s55_s15  ;;  %s58_s1 = int_to_ptr.hbm [resolvable:$true] %s57_s1 }
   0x9   :  { %v10_v1 = vld [vmem:[#allocation2] sm:$0xf]  }
   0xa   :  { %v22_v2 = vld [vmem:[#allocation2] sm:$0xf]   ;;  %11 = vrot.lane.b32.xlu0 %v10_v1, %s98_s0 }
   0xb   :  { %23 = vrot.lane.b32.xlu1 %v22_v2, %s99_s8  ;;  %v34_v3 = vld [vmem:[#allocation2] sm:$0xf]  }
   0xc   :  { %35 = vrot.lane.b32.xlu2 %v34_v3, %s100_s9  ;;  %v16_v4 = vld [vmem:[#allocation2] sm:$0xf]  }
   0xd   :  { %v28_v5 = vld [vmem:[#allocation2] sm:$0xf]  }
   0xe   :  { %v40_v6 = vld [vmem:[#allocation2] sm:$0xf]  }
   0xf   :  { %v46_v7 = vld [vmem:[#allocation2] sm:$0xf]  }
  0x10   :  { %v7_v9 = vld [vmem:[#allocation2] sm:$0xf]  }
  0x11   :  { %9 = vst.msk [vmem:[#allocation0] ss:$8 sm:$0xf] %vm8_vm0, %v7_v9  }
  0x12   :  { %17 = vrot.lane.b32.xlu0 %v16_v4, %s101_s10 }
  0x13   :  { %29 = vrot.lane.b32.xlu1 %v28_v5, %s102_s11 }
  0x14   :  { %41 = vrot.lane.b32.xlu2 %v40_v6, %s103_s12 }
  0x1a   :  { %47 = vrot.lane.b32.xlu0 %v46_v7, %s104_s13 }
  0x66   :  { %v36_v8 = vpop.permute.xlu2 %35  }
  0x67   :  { %39 = vst.msk [vmem:[#allocation0 + $0x5] ss:$8 sm:$0xf] %vm8_vm0, %v36_v8  }
  0x6e   :  { %v42_v10 = vpop.permute.xlu2 %41  }
  0x6f   :  { %45 = vst.msk [vmem:[#allocation0 + $0x6] ss:$8 sm:$0xf] %vm8_vm0, %v42_v10  }
  0x7c   :  { %v12_v11 = vpop.permute.xlu0 %11  }
  0x7d   :  { %v24_v12 = vpop.permute.xlu1 %23   ;;  %15 = vst.msk [vmem:[#allocation0 + $0x1] ss:$8 sm:$0xf] %vm8_vm0, %v12_v11  }
  0x7e   :  { %27 = vst.msk [vmem:[#allocation0 + $0x3] ss:$8 sm:$0xf] %vm8_vm0, %v24_v12  }
  0x84   :  { %v18_v13 = vpop.permute.xlu0 %17  }
  0x85   :  { %v30_v14 = vpop.permute.xlu1 %29   ;;  %21 = vst.msk [vmem:[#allocation0 + $0x2] ss:$8 sm:$0xf] %vm8_vm0, %v18_v13  }
  0x86   :  { %33 = vst.msk [vmem:[#allocation0 + $0x4] ss:$8 sm:$0xf] %vm8_vm0, %v30_v14  }
  0x8c   :  { %v48_v15 = vpop.permute.xlu0 %47  }
  0x8d   :  { %51 = vst.msk [vmem:[#allocation0 + $0x7] ss:$8 sm:$0xf] %vm8_vm0, %v48_v15  }
  0x8e   :  { %60 = dma.vmem_to_hbm [thread:$0]  %s56_s15, 512, %s58_s1, [#allocation1]  }
  0x8f   :  { %96 = dma.done.wait [#allocation1], 512  }
  0x90   :  { %97 = vsyncadd [#allocation1], 4294966784 }
  0x91   :  { %63 = vsyncpa [#allocation1], 1 }

</bundles_post_ra>
